<compile_context>
chip_gen: v6e
topology: v6e:2x2x1
jax: 0.10.0
libtpu: 0.0.40
codegen_flags: <defaults>
</compile_context>

<pallas_src>
import functools

import jax
import jax.numpy as jnp
from jax.experimental import pallas as pl
from jax.experimental.pallas import tpu as pltpu


def _round_up(x, m):
    return (x + m - 1) // m * m


# ----------------------------------------------------------------------------
# Kernel
# ----------------------------------------------------------------------------
def _wavenet_kernel(x_ref, cw_ref, cb_ref, wfg_ref, bfg_ref, wrs_ref, brs_ref,
                    o1w_ref, o1b_ref, o2w_ref, o2b_ref, out_ref, pad_ref,
                    *, stack_size, layer_size, kernel_size, pad_lead):
    """One grid step = TB batch rows; matmul M dim is TB*Tp."""
    TB, T, Cp = x_ref.shape
    K = kernel_size

    # Zero only the causal left-pad rows; the data region [pad_lead:, :] is
    # rewritten before every read.  (Scratch persists across grid steps but
    # this zero is tiny and keeps every step / every core self-contained.)
    pad_ref[:, :pad_lead, :] = jnp.zeros((TB, pad_lead, Cp), pad_ref.dtype)

    def taps(cur, dilation):
        """im2col of the K causally-shifted views (bf16), concat on lanes."""
        cur_bf = cur.astype(jnp.bfloat16)
        pad_ref[:, pad_lead:, :] = cur_bf
        cols = []
        for k in range(K):
            s = (K - 1 - k) * dilation
            if s == 0:
                cols.append(cur_bf)
            else:
                cols.append(pad_ref[:, pad_lead - s:pad_lead - s + T, :])
        return jnp.concatenate(cols, axis=-1)            # (TB, T, K*Cp) bf16

    def mm(a, w, b):
        """(TB, T, Ci) @ (Ci, Co) + (1, Co) -> (TB, T, Co); bf16 MXU, f32 acc."""
        ci = a.shape[-1]
        y = jnp.dot(a.reshape(TB * T, ci).astype(w.dtype), w,
                    preferred_element_type=jnp.float32)
        return (y + b.astype(jnp.float32)).reshape(TB, T, -1)

    x = x_ref[...]                                        # bf16 (TB, T, Cp)

    # ---- initial causal conv (dilation 1): one fused matmul ----------------
    res = mm(taps(x, 1), cw_ref[...], cb_ref[...])        # f32 (TB, T, Cp)

    # ---- dilated gated residual blocks --------------------------------------
    skip = jnp.zeros((TB, T, Cp), jnp.float32)
    # Unrolled: dilation (hence the static slice offsets) differs per layer.
    # TODO(synk): for large stack_size*layer_size use lax.fori_loop + dynamic
    #             pl.ds shifts and streamed per-layer weights.
    idx = 0
    for _stack in range(stack_size):
        for layer in range(layer_size):
            d = 2 ** layer
            # filter|gate fused: one (TB*T, K*Cp) @ (K*Cp, 2*Cp) matmul
            fg = mm(taps(res, d), wfg_ref[idx], bfg_ref[idx])
            z = jnp.tanh(fg[..., :Cp]) * jax.nn.sigmoid(fg[..., Cp:])
            # residual|skip fused: one (TB*T, Cp) @ (Cp, 2*Cp) matmul
            rs = mm(z, wrs_ref[idx], brs_ref[idx])
            res = res + rs[..., :Cp]
            skip = skip + rs[..., Cp:]
            idx += 1

    # ---- output head: ReLU -> 1x1 -> ReLU -> 1x1 ----------------------------
    h = jnp.maximum(skip, 0.0)
    h = jnp.maximum(mm(h, o1w_ref[...], o1b_ref[...]), 0.0)
    y = mm(h, o2w_ref[...], o2b_ref[...])
    out_ref[...] = y.astype(out_ref.dtype)


# ----------------------------------------------------------------------------
# Weight packing (wrapper side, pure JAX)
# ----------------------------------------------------------------------------
def _pack_params(params, Cp, kernel_size, w_dtype=jnp.bfloat16):
    """Zero-pad channel dims to Cp and fuse taps / filter|gate / residual|skip.
    Matmul weights bf16, biases f32."""
    (cw, cb, fw, fb, gw, gb, rw, rb, sw, sb, o1w, o1b, o2w, o2b) = params
    K = kernel_size
    L = fw.shape[0]

    def padw(w, *tail_targets):
        pads = [(0, 0)] * (w.ndim - len(tail_targets))
        pads += [(0, t - s) for t, s in
                 zip(tail_targets, w.shape[-len(tail_targets):])]
        return jnp.pad(w, pads)

    cw_p = padw(cw, Cp, Cp).reshape(K * Cp, Cp)                    # (K*Cp, Cp)
    cb_p = padw(cb, Cp)                                            # (1, Cp)

    fw_p = padw(fw, Cp, Cp).reshape(L, K * Cp, Cp)
    gw_p = padw(gw, Cp, Cp).reshape(L, K * Cp, Cp)
    wfg = jnp.concatenate([fw_p, gw_p], axis=-1)                   # (L,K*Cp,2Cp)
    bfg = jnp.concatenate([padw(fb, Cp), padw(gb, Cp)], axis=-1)   # (L,1,2Cp)

    wrs = jnp.concatenate([padw(rw, Cp, Cp), padw(sw, Cp, Cp)], axis=-1)
    brs = jnp.concatenate([padw(rb, Cp), padw(sb, Cp)], axis=-1)

    o1w_p, o1b_p = padw(o1w, Cp, Cp), padw(o1b, Cp)
    o2w_p, o2b_p = padw(o2w, Cp, Cp), padw(o2b, Cp)

    wt = lambda a: a.astype(w_dtype)
    f32 = lambda a: a.astype(jnp.float32)
    return (wt(cw_p), f32(cb_p), wt(wfg), f32(bfg), wt(wrs), f32(brs),
            wt(o1w_p), f32(o1b_p), wt(o2w_p), f32(o2b_p))


# ----------------------------------------------------------------------------
# Batch-tile sizing
# ----------------------------------------------------------------------------
def _pick_batch_tile(B, T, Cp, K, pad_lead, weight_bytes, vmem_limit):
    """Largest TB whose per-step live set + resident weights fit the budget."""
    per_row = (
        2 * 2 * T * Cp                 # x tile, bf16, double-buffered
        + 2 * 2 * T * Cp               # out tile, bf16, double-buffered
        + 2 * (pad_lead + T) * Cp      # bf16 causal-shift scratch
        + 2 * T * K * Cp               # bf16 im2col
        + 4 * T * 2 * Cp * 2           # f32 fg and rs temporaries
        + 4 * T * Cp * 3               # f32 res, skip, misc temporaries
    )
    budget = vmem_limit - weight_bytes - (4 << 20)
    # TODO(synk): if even one batch row does not fit, tile over T with a
    #             receptive-field halo instead of failing over to spills.
    tb = max(1, min(B, budget // per_row))
    return int(tb)


# ----------------------------------------------------------------------------
# Public wrapper
# ----------------------------------------------------------------------------
def generator_with_wavenet(x_ncl, params, *, kernel_size, stack_size,
                           layer_size):
    """x_ncl: (B, latent_space_dim, T) float32 -> (B, output_dim, T) float32."""
    B, Cin, T = x_ncl.shape
    (cw, cb, fw, fb, gw, gb, rw, rb, sw, sb, o1w, o1b, o2w, o2b) = params
    Cres, Cskip, Cout = fw.shape[2], sw.shape[-1], o2w.shape[-1]
    K, L = kernel_size, stack_size * layer_size

    # lane-dense channel width used for every activation/weight in the kernel
    Cp = _round_up(max(Cin, Cres, Cskip, Cout), 128)
    # causal left-pad rows, rounded to 16 for bf16 sublane packing
    max_shift = (K - 1) * (2 ** (layer_size - 1))
    pad_lead = _round_up(max(max_shift, 1), 16)
    # time rounded to 16 so the (TB*Tp, C) reshape is free and bf16 stores
    # along time stay sublane-dense (right-padding is causally inert)
    Tp = _round_up(T, 16)

    packed = _pack_params(params, Cp, K)
    weight_bytes = sum(int(p.size) * p.dtype.itemsize for p in packed)

    VMEM_LIMIT = 48 << 20          # conservative across v5e/v6e/v7x
    TB = _pick_batch_tile(B, Tp, Cp, K, pad_lead, weight_bytes, VMEM_LIMIT)
    Bp = _round_up(B, TB)
    nb = Bp // TB

    # NCL -> NTC (channels -> lanes), bf16, zero-pad batch/time/channels.
    x = jnp.transpose(x_ncl, (0, 2, 1)).astype(jnp.bfloat16)
    x = jnp.pad(x, ((0, Bp - B), (0, Tp - T), (0, Cp - Cin)))

    kernel = functools.partial(_wavenet_kernel, stack_size=stack_size,
                               layer_size=layer_size, kernel_size=K,
                               pad_lead=pad_lead)

    # weights: full-array blocks with constant index_map -> VMEM-resident,
    # never re-DMA'd across batch grid steps
    weight_specs = [pl.BlockSpec(p.shape, lambda b, _nd=p.ndim: (0,) * _nd)
                    for p in packed]
    in_specs = [pl.BlockSpec((TB, Tp, Cp), lambda b: (b, 0, 0))] + weight_specs
    out_specs = pl.BlockSpec((TB, Tp, Cp), lambda b: (b, 0, 0))

    # cost estimate counts useful (unpadded-channel) work
    useful_flops = 2 * B * T * (
        K * Cin * Cres
        + L * (K * Cres * 2 * Cres + Cres * (Cres + Cskip))
        + Cskip * Cskip + Cskip * Cout)
    bytes_accessed = (x.size * x.dtype.itemsize            # input DMA
                      + Bp * Tp * Cp * 2                   # bf16 output
                      + weight_bytes)
    cost = pl.CostEstimate(flops=int(useful_flops),
                           transcendentals=int(2 * L * B * T * Cres),
                           bytes_accessed=int(bytes_accessed))

    out_pad = pl.pallas_call(
        kernel,
        out_shape=jax.ShapeDtypeStruct((Bp, Tp, Cp), jnp.bfloat16),
        grid=(nb,),
        in_specs=in_specs,
        out_specs=out_specs,
        scratch_shapes=[pltpu.VMEM((TB, pad_lead + Tp, Cp), jnp.bfloat16)],
        compiler_params=pltpu.CompilerParams(
            dimension_semantics=("parallel",),     # shards over 2 TCs on v7x
            vmem_limit_bytes=VMEM_LIMIT),
        cost_estimate=cost,
    )(x, *packed)

    # slice away batch/time/lane padding and return PyTorch NCL layout
    y = out_pad[:B, :T, :Cout].astype(jnp.float32)
    return jnp.transpose(y, (0, 2, 1))


# ----------------------------------------------------------------------------
# Parameters + pure-JAX reference (wiring sanity check)
# ----------------------------------------------------------------------------
def init_params(key, latent_space_dim, output_dim, kernel_size,
                stack_size, layer_size):
    """Deterministic synthetic parameters.  Residual/skip width = latent dim."""
    L = stack_size * layer_size
    Cres = latent_space_dim
    Cskip = latent_space_dim
    ks = jax.random.split(key, 14)

    def w(k, shape, scale=0.1):
        return scale * jax.random.normal(k, shape, jnp.float32)

    cw = w(ks[0], (kernel_size, latent_space_dim, Cres))   # causal conv
    cb = w(ks[1], (1, Cres))
    fw = w(ks[2], (L, kernel_size, Cres, Cres))            # filter convs
    fb = w(ks[3], (L, 1, Cres))
    gw = w(ks[4], (L, kernel_size, Cres, Cres))            # gate convs
    gb = w(ks[5], (L, 1, Cres))
    rw = w(ks[6], (L, Cres, Cres))                         # residual 1x1
    rb = w(ks[7], (L, 1, Cres))
    sw = w(ks[8], (L, Cres, Cskip))                        # skip 1x1
    sb = w(ks[9], (L, 1, Cskip))
    o1w = w(ks[10], (Cskip, Cskip))                        # head conv 1
    o1b = w(ks[11], (1, Cskip))
    o2w = w(ks[12], (Cskip, output_dim))                   # head conv 2
    o2b = w(ks[13], (1, output_dim))
    return (cw, cb, fw, fb, gw, gb, rw, rb, sw, sb, o1w, o1b, o2w, o2b)


def _wavenet_reference(x_ncl, params, *, kernel_size, stack_size, layer_size):
    (cw, cb, fw, fb, gw, gb, rw, rb, sw, sb, o1w, o1b, o2w, o2b) = params
    B, Cin, T = x_ncl.shape
    K = kernel_size
    x = jnp.transpose(x_ncl, (0, 2, 1))

    def shift(v, s):
        if s == 0:
            return v
        return jnp.pad(v[:, :T - s, :], ((0, 0), (s, 0), (0, 0)))

    res = sum(jnp.einsum('btc,cd->btd', shift(x, K - 1 - k), cw[k])
              for k in range(K)) + cb[None]
    skip = jnp.zeros((B, T, sw.shape[-1]), jnp.float32)
    idx = 0
    for _ in range(stack_size):
        for layer in range(layer_size):
            d = 2 ** layer
            f = sum(jnp.einsum('btc,cd->btd', shift(res, (K - 1 - k) * d),
                               fw[idx, k]) for k in range(K)) + fb[idx][None]
            g = sum(jnp.einsum('btc,cd->btd', shift(res, (K - 1 - k) * d),
                               gw[idx, k]) for k in range(K)) + gb[idx][None]
            z = jnp.tanh(f) * jax.nn.sigmoid(g)
            skip = skip + jnp.einsum('btc,cd->btd', z, sw[idx]) + sb[idx][None]
            res = res + jnp.einsum('btc,cd->btd', z, rw[idx]) + rb[idx][None]
            idx += 1
    h = jnp.maximum(skip, 0.0)
    h = jnp.maximum(jnp.einsum('btc,cd->btd', h, o1w) + o1b[None], 0.0)
    y = jnp.einsum('btc,cd->btd', h, o2w) + o2b[None]
    return jnp.transpose(y, (0, 2, 1))


if __name__ == "__main__":
    # Small config consistent with GeneratorWithWaveNet.__init__
    latent_space_dim = 8
    output_dim = 4
    kernel_size = 2
    stack_size = 2
    layer_size = 3
    B, T = 2, 16

    key = jax.random.PRNGKey(0)
    kx, kp = jax.random.split(key)
    x = jax.random.normal(kx, (B, latent_space_dim, T), jnp.float32)  # NCL
    params = init_params(kp, latent_space_dim, output_dim, kernel_size,
                         stack_size, layer_size)

    fn = jax.jit(functools.partial(generator_with_wavenet,
                                   kernel_size=kernel_size,
                                   stack_size=stack_size,
                                   layer_size=layer_size))
    y = fn(x, params)
    jax.block_until_ready(y)
    assert y.shape == (B, output_dim, T), y.shape

    y_ref = _wavenet_reference(x, params, kernel_size=kernel_size,
                               stack_size=stack_size, layer_size=layer_size)
    err = float(jnp.max(jnp.abs(y - y_ref)))
    assert jnp.allclose(y, y_ref, atol=3e-2, rtol=3e-2), err
    print("KERNEL_OK")
</pallas_src>

<mosaic_0001>
module attributes {stable_mosaic.version = 11 : i64} {
  func.func @_wavenet_kernel(%arg0: i32, %arg1: memref<2x16x128xbf16, #tpu.memory_space<vmem>>, %arg2: memref<256x128xbf16, #tpu.memory_space<vmem>>, %arg3: memref<1x128xf32, #tpu.memory_space<vmem>>, %arg4: memref<6x256x256xbf16, #tpu.memory_space<vmem>>, %arg5: memref<6x1x256xf32, #tpu.memory_space<vmem>>, %arg6: memref<6x128x256xbf16, #tpu.memory_space<vmem>>, %arg7: memref<6x1x256xf32, #tpu.memory_space<vmem>>, %arg8: memref<128x128xbf16, #tpu.memory_space<vmem>>, %arg9: memref<1x128xf32, #tpu.memory_space<vmem>>, %arg10: memref<128x128xbf16, #tpu.memory_space<vmem>>, %arg11: memref<1x128xf32, #tpu.memory_space<vmem>>, %arg12: memref<2x16x128xbf16, #tpu.memory_space<vmem>>, %arg13: memref<2x32x128xbf16, #tpu.memory_space<vmem>>) attributes {dimension_semantics = [#tpu.dimension_semantics<parallel>], iteration_bounds = array<i64: 1>, scalar_prefetch = 0 : i64, scratch_operands = 1 : i64, tpu.core_type = #tpu.core_type<tc>, window_params = [{transform_indices = @transform_0, window_bounds = array<i64: 2, 16, 128>}, {pipeline_mode = #tpu.pipeline_mode<synchronous>, transform_indices = @transform_1, window_bounds = array<i64: 256, 128>}, {pipeline_mode = #tpu.pipeline_mode<synchronous>, transform_indices = @transform_2, window_bounds = array<i64: 1, 128>}, {pipeline_mode = #tpu.pipeline_mode<synchronous>, transform_indices = @transform_3, window_bounds = array<i64: 6, 256, 256>}, {pipeline_mode = #tpu.pipeline_mode<synchronous>, transform_indices = @transform_4, window_bounds = array<i64: 6, 1, 256>}, {pipeline_mode = #tpu.pipeline_mode<synchronous>, transform_indices = @transform_5, window_bounds = array<i64: 6, 128, 256>}, {pipeline_mode = #tpu.pipeline_mode<synchronous>, transform_indices = @transform_6, window_bounds = array<i64: 6, 1, 256>}, {pipeline_mode = #tpu.pipeline_mode<synchronous>, transform_indices = @transform_7, window_bounds = array<i64: 128, 128>}, {pipeline_mode = #tpu.pipeline_mode<synchronous>, transform_indices = @transform_8, window_bounds = array<i64: 1, 128>}, {pipeline_mode = #tpu.pipeline_mode<synchronous>, transform_indices = @transform_9, window_bounds = array<i64: 128, 128>}, {pipeline_mode = #tpu.pipeline_mode<synchronous>, transform_indices = @transform_10, window_bounds = array<i64: 1, 128>}, {transform_indices = @transform_11, window_bounds = array<i64: 2, 16, 128>}]} {
    %cst = arith.constant 0.000000e+00 : bf16
    %0 = vector.broadcast %cst : bf16 to vector<2x16x128xbf16>
    %c0 = arith.constant 0 : index
    %c0_0 = arith.constant 0 : index
    %c0_1 = arith.constant 0 : index
    %1 = vector.load %arg13[%c0, %c0_0, %c0_1] : memref<2x32x128xbf16, #tpu.memory_space<vmem>>, vector<2x16x128xbf16>
    tpu.vector_store %arg13[%c0, %c0_0, %c0_1], %0 {strides = array<i32>} : memref<2x32x128xbf16, #tpu.memory_space<vmem>>, vector<2x16x128xbf16>,
    %c0_2 = arith.constant 0 : index
    %c0_3 = arith.constant 0 : index
    %c0_4 = arith.constant 0 : index
    %2 = vector.load %arg1[%c0_2, %c0_3, %c0_4] : memref<2x16x128xbf16, #tpu.memory_space<vmem>>, vector<2x16x128xbf16>
    %c0_5 = arith.constant 0 : index
    %c16 = arith.constant 16 : index
    %c0_6 = arith.constant 0 : index
    %3 = vector.load %arg13[%c0_5, %c16, %c0_6] : memref<2x32x128xbf16, #tpu.memory_space<vmem>>, vector<2x16x128xbf16>
    tpu.vector_store %arg13[%c0_5, %c16, %c0_6], %2 {strides = array<i32>} : memref<2x32x128xbf16, #tpu.memory_space<vmem>>, vector<2x16x128xbf16>,
    %c0_7 = arith.constant 0 : index
    %c15 = arith.constant 15 : index
    %c0_8 = arith.constant 0 : index
    %4 = vector.load %arg13[%c0_7, %c15, %c0_8] : memref<2x32x128xbf16, #tpu.memory_space<vmem>>, vector<2x16x128xbf16>
    %5 = tpu.concatenate %4, %2 in 2 : vector<2x16x128xbf16>, vector<2x16x128xbf16> -> vector<2x16x256xbf16>
    %c0_9 = arith.constant 0 : index
    %c0_10 = arith.constant 0 : index
    %6 = vector.load %arg2[%c0_9, %c0_10] : memref<256x128xbf16, #tpu.memory_space<vmem>>, vector<256x128xbf16>
    %c0_11 = arith.constant 0 : index
    %c0_12 = arith.constant 0 : index
    %7 = vector.load %arg3[%c0_11, %c0_12] : memref<1x128xf32, #tpu.memory_space<vmem>>, vector<1x128xf32>
    %8 = vector.shape_cast %5 : vector<2x16x256xbf16> to vector<32x256xbf16>
    %cst_13 = arith.constant dense<0.000000e+00> : vector<32x128xf32>
    %9 = tpu.matmul %8, %6, %cst_13 {dimension_numbers = #tpu.dot_dimension_numbers<[1], [0], [0], [1], [0, 0, 1, 1], [], []>} : vector<32x256xbf16>, vector<256x128xbf16>, vector<32x128xf32> -> vector<32x128xf32>
    %10 = vector.broadcast %7 : vector<1x128xf32> to vector<32x128xf32>
    %11 = arith.addf %9, %10 : vector<32x128xf32>
    %12 = vector.shape_cast %11 : vector<32x128xf32> to vector<2x16x128xf32>
    %cst_14 = arith.constant 0.000000e+00 : f32
    %13 = vector.broadcast %cst_14 : f32 to vector<2x16x128xf32>
    %14 = arith.truncf %12 : vector<2x16x128xf32> to vector<2x16x128xbf16>
    %c0_15 = arith.constant 0 : index
    %c16_16 = arith.constant 16 : index
    %c0_17 = arith.constant 0 : index
    %15 = vector.load %arg13[%c0_15, %c16_16, %c0_17] : memref<2x32x128xbf16, #tpu.memory_space<vmem>>, vector<2x16x128xbf16>
    tpu.vector_store %arg13[%c0_15, %c16_16, %c0_17], %14 {strides = array<i32>} : memref<2x32x128xbf16, #tpu.memory_space<vmem>>, vector<2x16x128xbf16>,
    %c0_18 = arith.constant 0 : index
    %c15_19 = arith.constant 15 : index
    %c0_20 = arith.constant 0 : index
    %16 = vector.load %arg13[%c0_18, %c15_19, %c0_20] : memref<2x32x128xbf16, #tpu.memory_space<vmem>>, vector<2x16x128xbf16>
    %17 = tpu.concatenate %16, %14 in 2 : vector<2x16x128xbf16>, vector<2x16x128xbf16> -> vector<2x16x256xbf16>
    %c0_21 = arith.constant 0 : index
    %c0_22 = arith.constant 0 : index
    %c0_23 = arith.constant 0 : index
    %18 = vector.load %arg4[%c0_21, %c0_22, %c0_23] : memref<6x256x256xbf16, #tpu.memory_space<vmem>>, vector<1x256x256xbf16>
    %19 = vector.shape_cast %18 : vector<1x256x256xbf16> to vector<256x256xbf16>
    %c0_24 = arith.constant 0 : index
    %c0_25 = arith.constant 0 : index
    %c0_26 = arith.constant 0 : index
    %20 = vector.load %arg5[%c0_24, %c0_25, %c0_26] : memref<6x1x256xf32, #tpu.memory_space<vmem>>, vector<1x1x256xf32>
    %21 = vector.shape_cast %20 : vector<1x1x256xf32> to vector<1x256xf32>
    %22 = vector.shape_cast %17 : vector<2x16x256xbf16> to vector<32x256xbf16>
    %cst_27 = arith.constant dense<0.000000e+00> : vector<32x256xf32>
    %23 = tpu.matmul %22, %19, %cst_27 {dimension_numbers = #tpu.dot_dimension_numbers<[1], [0], [0], [1], [0, 0, 1, 1], [], []>} : vector<32x256xbf16>, vector<256x256xbf16>, vector<32x256xf32> -> vector<32x256xf32>
    %24 = vector.broadcast %21 : vector<1x256xf32> to vector<32x256xf32>
    %25 = arith.addf %23, %24 : vector<32x256xf32>
    %26 = vector.shape_cast %25 : vector<32x256xf32> to vector<2x16x256xf32>
    %27 = vector.extract_strided_slice %26 {offsets = [0, 0, 0], sizes = [2, 16, 128], strides = [1, 1, 1]} : vector<2x16x256xf32> to vector<2x16x128xf32>
    %28 = math.tanh %27 : vector<2x16x128xf32>
    %29 = vector.extract_strided_slice %26 {offsets = [0, 0, 128], sizes = [2, 16, 128], strides = [1, 1, 1]} : vector<2x16x256xf32> to vector<2x16x128xf32>
    %30 = arith.negf %29 : vector<2x16x128xf32>
    %31 = math.exp %30 : vector<2x16x128xf32>
    %cst_28 = arith.constant 1.000000e+00 : f32
    %32 = vector.broadcast %cst_28 : f32 to vector<2x16x128xf32>
    %33 = arith.addf %32, %31 : vector<2x16x128xf32>
    %34 = arith.divf %32, %33 : vector<2x16x128xf32>
    %35 = arith.mulf %28, %34 : vector<2x16x128xf32>
    %c0_29 = arith.constant 0 : index
    %c0_30 = arith.constant 0 : index
    %c0_31 = arith.constant 0 : index
    %36 = vector.load %arg6[%c0_29, %c0_30, %c0_31] : memref<6x128x256xbf16, #tpu.memory_space<vmem>>, vector<1x128x256xbf16>
    %37 = vector.shape_cast %36 : vector<1x128x256xbf16> to vector<128x256xbf16>
    %c0_32 = arith.constant 0 : index
    %c0_33 = arith.constant 0 : index
    %c0_34 = arith.constant 0 : index
    %38 = vector.load %arg7[%c0_32, %c0_33, %c0_34] : memref<6x1x256xf32, #tpu.memory_space<vmem>>, vector<1x1x256xf32>
    %39 = vector.shape_cast %38 : vector<1x1x256xf32> to vector<1x256xf32>
    %40 = vector.shape_cast %35 : vector<2x16x128xf32> to vector<32x128xf32>
    %41 = arith.truncf %40 : vector<32x128xf32> to vector<32x128xbf16>
    %cst_35 = arith.constant dense<0.000000e+00> : vector<32x256xf32>
    %42 = tpu.matmul %41, %37, %cst_35 {dimension_numbers = #tpu.dot_dimension_numbers<[1], [0], [0], [1], [0, 0, 1, 1], [], []>} : vector<32x128xbf16>, vector<128x256xbf16>, vector<32x256xf32> -> vector<32x256xf32>
    %43 = vector.broadcast %39 : vector<1x256xf32> to vector<32x256xf32>
    %44 = arith.addf %42, %43 : vector<32x256xf32>
    %45 = vector.shape_cast %44 : vector<32x256xf32> to vector<2x16x256xf32>
    %46 = vector.extract_strided_slice %45 {offsets = [0, 0, 0], sizes = [2, 16, 128], strides = [1, 1, 1]} : vector<2x16x256xf32> to vector<2x16x128xf32>
    %47 = arith.addf %12, %46 : vector<2x16x128xf32>
    %48 = vector.extract_strided_slice %45 {offsets = [0, 0, 128], sizes = [2, 16, 128], strides = [1, 1, 1]} : vector<2x16x256xf32> to vector<2x16x128xf32>
    %49 = arith.addf %13, %48 : vector<2x16x128xf32>
    %50 = arith.truncf %47 : vector<2x16x128xf32> to vector<2x16x128xbf16>
    %c0_36 = arith.constant 0 : index
    %c16_37 = arith.constant 16 : index
    %c0_38 = arith.constant 0 : index
    %51 = vector.load %arg13[%c0_36, %c16_37, %c0_38] : memref<2x32x128xbf16, #tpu.memory_space<vmem>>, vector<2x16x128xbf16>
    tpu.vector_store %arg13[%c0_36, %c16_37, %c0_38], %50 {strides = array<i32>} : memref<2x32x128xbf16, #tpu.memory_space<vmem>>, vector<2x16x128xbf16>,
    %c0_39 = arith.constant 0 : index
    %c14 = arith.constant 14 : index
    %c0_40 = arith.constant 0 : index
    %52 = vector.load %arg13[%c0_39, %c14, %c0_40] : memref<2x32x128xbf16, #tpu.memory_space<vmem>>, vector<2x16x128xbf16>
    %53 = tpu.concatenate %52, %50 in 2 : vector<2x16x128xbf16>, vector<2x16x128xbf16> -> vector<2x16x256xbf16>
    %c1 = arith.constant 1 : index
    %c0_41 = arith.constant 0 : index
    %c0_42 = arith.constant 0 : index
    %54 = vector.load %arg4[%c1, %c0_41, %c0_42] : memref<6x256x256xbf16, #tpu.memory_space<vmem>>, vector<1x256x256xbf16>
    %55 = vector.shape_cast %54 : vector<1x256x256xbf16> to vector<256x256xbf16>
    %c1_43 = arith.constant 1 : index
    %c0_44 = arith.constant 0 : index
    %c0_45 = arith.constant 0 : index
    %56 = vector.load %arg5[%c1_43, %c0_44, %c0_45] : memref<6x1x256xf32, #tpu.memory_space<vmem>>, vector<1x1x256xf32>
    %57 = vector.shape_cast %56 : vector<1x1x256xf32> to vector<1x256xf32>
    %58 = vector.shape_cast %53 : vector<2x16x256xbf16> to vector<32x256xbf16>
    %cst_46 = arith.constant dense<0.000000e+00> : vector<32x256xf32>
    %59 = tpu.matmul %58, %55, %cst_46 {dimension_numbers = #tpu.dot_dimension_numbers<[1], [0], [0], [1], [0, 0, 1, 1], [], []>} : vector<32x256xbf16>, vector<256x256xbf16>, vector<32x256xf32> -> vector<32x256xf32>
    %60 = vector.broadcast %57 : vector<1x256xf32> to vector<32x256xf32>
    %61 = arith.addf %59, %60 : vector<32x256xf32>
    %62 = vector.shape_cast %61 : vector<32x256xf32> to vector<2x16x256xf32>
    %63 = vector.extract_strided_slice %62 {offsets = [0, 0, 0], sizes = [2, 16, 128], strides = [1, 1, 1]} : vector<2x16x256xf32> to vector<2x16x128xf32>
    %64 = math.tanh %63 : vector<2x16x128xf32>
    %65 = vector.extract_strided_slice %62 {offsets = [0, 0, 128], sizes = [2, 16, 128], strides = [1, 1, 1]} : vector<2x16x256xf32> to vector<2x16x128xf32>
    %66 = arith.negf %65 : vector<2x16x128xf32>
    %67 = math.exp %66 : vector<2x16x128xf32>
    %cst_47 = arith.constant 1.000000e+00 : f32
    %68 = vector.broadcast %cst_47 : f32 to vector<2x16x128xf32>
    %69 = arith.addf %68, %67 : vector<2x16x128xf32>
    %70 = arith.divf %68, %69 : vector<2x16x128xf32>
    %71 = arith.mulf %64, %70 : vector<2x16x128xf32>
    %c1_48 = arith.constant 1 : index
    %c0_49 = arith.constant 0 : index
    %c0_50 = arith.constant 0 : index
    %72 = vector.load %arg6[%c1_48, %c0_49, %c0_50] : memref<6x128x256xbf16, #tpu.memory_space<vmem>>, vector<1x128x256xbf16>
    %73 = vector.shape_cast %72 : vector<1x128x256xbf16> to vector<128x256xbf16>
    %c1_51 = arith.constant 1 : index
    %c0_52 = arith.constant 0 : index
    %c0_53 = arith.constant 0 : index
    %74 = vector.load %arg7[%c1_51, %c0_52, %c0_53] : memref<6x1x256xf32, #tpu.memory_space<vmem>>, vector<1x1x256xf32>
    %75 = vector.shape_cast %74 : vector<1x1x256xf32> to vector<1x256xf32>
    %76 = vector.shape_cast %71 : vector<2x16x128xf32> to vector<32x128xf32>
    %77 = arith.truncf %76 : vector<32x128xf32> to vector<32x128xbf16>
    %cst_54 = arith.constant dense<0.000000e+00> : vector<32x256xf32>
    %78 = tpu.matmul %77, %73, %cst_54 {dimension_numbers = #tpu.dot_dimension_numbers<[1], [0], [0], [1], [0, 0, 1, 1], [], []>} : vector<32x128xbf16>, vector<128x256xbf16>, vector<32x256xf32> -> vector<32x256xf32>
    %79 = vector.broadcast %75 : vector<1x256xf32> to vector<32x256xf32>
    %80 = arith.addf %78, %79 : vector<32x256xf32>
    %81 = vector.shape_cast %80 : vector<32x256xf32> to vector<2x16x256xf32>
    %82 = vector.extract_strided_slice %81 {offsets = [0, 0, 0], sizes = [2, 16, 128], strides = [1, 1, 1]} : vector<2x16x256xf32> to vector<2x16x128xf32>
    %83 = arith.addf %47, %82 : vector<2x16x128xf32>
    %84 = vector.extract_strided_slice %81 {offsets = [0, 0, 128], sizes = [2, 16, 128], strides = [1, 1, 1]} : vector<2x16x256xf32> to vector<2x16x128xf32>
    %85 = arith.addf %49, %84 : vector<2x16x128xf32>
    %86 = arith.truncf %83 : vector<2x16x128xf32> to vector<2x16x128xbf16>
    %c0_55 = arith.constant 0 : index
    %c16_56 = arith.constant 16 : index
    %c0_57 = arith.constant 0 : index
    %87 = vector.load %arg13[%c0_55, %c16_56, %c0_57] : memref<2x32x128xbf16, #tpu.memory_space<vmem>>, vector<2x16x128xbf16>
    tpu.vector_store %arg13[%c0_55, %c16_56, %c0_57], %86 {strides = array<i32>} : memref<2x32x128xbf16, #tpu.memory_space<vmem>>, vector<2x16x128xbf16>,
    %c0_58 = arith.constant 0 : index
    %c12 = arith.constant 12 : index
    %c0_59 = arith.constant 0 : index
    %88 = vector.load %arg13[%c0_58, %c12, %c0_59] : memref<2x32x128xbf16, #tpu.memory_space<vmem>>, vector<2x16x128xbf16>
    %89 = tpu.concatenate %88, %86 in 2 : vector<2x16x128xbf16>, vector<2x16x128xbf16> -> vector<2x16x256xbf16>
    %c2 = arith.constant 2 : index
    %c0_60 = arith.constant 0 : index
    %c0_61 = arith.constant 0 : index
    %90 = vector.load %arg4[%c2, %c0_60, %c0_61] : memref<6x256x256xbf16, #tpu.memory_space<vmem>>, vector<1x256x256xbf16>
    %91 = vector.shape_cast %90 : vector<1x256x256xbf16> to vector<256x256xbf16>
    %c2_62 = arith.constant 2 : index
    %c0_63 = arith.constant 0 : index
    %c0_64 = arith.constant 0 : index
    %92 = vector.load %arg5[%c2_62, %c0_63, %c0_64] : memref<6x1x256xf32, #tpu.memory_space<vmem>>, vector<1x1x256xf32>
    %93 = vector.shape_cast %92 : vector<1x1x256xf32> to vector<1x256xf32>
    %94 = vector.shape_cast %89 : vector<2x16x256xbf16> to vector<32x256xbf16>
    %cst_65 = arith.constant dense<0.000000e+00> : vector<32x256xf32>
    %95 = tpu.matmul %94, %91, %cst_65 {dimension_numbers = #tpu.dot_dimension_numbers<[1], [0], [0], [1], [0, 0, 1, 1], [], []>} : vector<32x256xbf16>, vector<256x256xbf16>, vector<32x256xf32> -> vector<32x256xf32>
    %96 = vector.broadcast %93 : vector<1x256xf32> to vector<32x256xf32>
    %97 = arith.addf %95, %96 : vector<32x256xf32>
    %98 = vector.shape_cast %97 : vector<32x256xf32> to vector<2x16x256xf32>
    %99 = vector.extract_strided_slice %98 {offsets = [0, 0, 0], sizes = [2, 16, 128], strides = [1, 1, 1]} : vector<2x16x256xf32> to vector<2x16x128xf32>
    %100 = math.tanh %99 : vector<2x16x128xf32>
    %101 = vector.extract_strided_slice %98 {offsets = [0, 0, 128], sizes = [2, 16, 128], strides = [1, 1, 1]} : vector<2x16x256xf32> to vector<2x16x128xf32>
    %102 = arith.negf %101 : vector<2x16x128xf32>
    %103 = math.exp %102 : vector<2x16x128xf32>
    %cst_66 = arith.constant 1.000000e+00 : f32
    %104 = vector.broadcast %cst_66 : f32 to vector<2x16x128xf32>
    %105 = arith.addf %104, %103 : vector<2x16x128xf32>
    %106 = arith.divf %104, %105 : vector<2x16x128xf32>
    %107 = arith.mulf %100, %106 : vector<2x16x128xf32>
    %c2_67 = arith.constant 2 : index
    %c0_68 = arith.constant 0 : index
    %c0_69 = arith.constant 0 : index
    %108 = vector.load %arg6[%c2_67, %c0_68, %c0_69] : memref<6x128x256xbf16, #tpu.memory_space<vmem>>, vector<1x128x256xbf16>
    %109 = vector.shape_cast %108 : vector<1x128x256xbf16> to vector<128x256xbf16>
    %c2_70 = arith.constant 2 : index
    %c0_71 = arith.constant 0 : index
    %c0_72 = arith.constant 0 : index
    %110 = vector.load %arg7[%c2_70, %c0_71, %c0_72] : memref<6x1x256xf32, #tpu.memory_space<vmem>>, vector<1x1x256xf32>
    %111 = vector.shape_cast %110 : vector<1x1x256xf32> to vector<1x256xf32>
    %112 = vector.shape_cast %107 : vector<2x16x128xf32> to vector<32x128xf32>
    %113 = arith.truncf %112 : vector<32x128xf32> to vector<32x128xbf16>
    %cst_73 = arith.constant dense<0.000000e+00> : vector<32x256xf32>
    %114 = tpu.matmul %113, %109, %cst_73 {dimension_numbers = #tpu.dot_dimension_numbers<[1], [0], [0], [1], [0, 0, 1, 1], [], []>} : vector<32x128xbf16>, vector<128x256xbf16>, vector<32x256xf32> -> vector<32x256xf32>
    %115 = vector.broadcast %111 : vector<1x256xf32> to vector<32x256xf32>
    %116 = arith.addf %114, %115 : vector<32x256xf32>
    %117 = vector.shape_cast %116 : vector<32x256xf32> to vector<2x16x256xf32>
    %118 = vector.extract_strided_slice %117 {offsets = [0, 0, 0], sizes = [2, 16, 128], strides = [1, 1, 1]} : vector<2x16x256xf32> to vector<2x16x128xf32>
    %119 = arith.addf %83, %118 : vector<2x16x128xf32>
    %120 = vector.extract_strided_slice %117 {offsets = [0, 0, 128], sizes = [2, 16, 128], strides = [1, 1, 1]} : vector<2x16x256xf32> to vector<2x16x128xf32>
    %121 = arith.addf %85, %120 : vector<2x16x128xf32>
    %122 = arith.truncf %119 : vector<2x16x128xf32> to vector<2x16x128xbf16>
    %c0_74 = arith.constant 0 : index
    %c16_75 = arith.constant 16 : index
    %c0_76 = arith.constant 0 : index
    %123 = vector.load %arg13[%c0_74, %c16_75, %c0_76] : memref<2x32x128xbf16, #tpu.memory_space<vmem>>, vector<2x16x128xbf16>
    tpu.vector_store %arg13[%c0_74, %c16_75, %c0_76], %122 {strides = array<i32>} : memref<2x32x128xbf16, #tpu.memory_space<vmem>>, vector<2x16x128xbf16>,
    %c0_77 = arith.constant 0 : index
    %c15_78 = arith.constant 15 : index
    %c0_79 = arith.constant 0 : index
    %124 = vector.load %arg13[%c0_77, %c15_78, %c0_79] : memref<2x32x128xbf16, #tpu.memory_space<vmem>>, vector<2x16x128xbf16>
    %125 = tpu.concatenate %124, %122 in 2 : vector<2x16x128xbf16>, vector<2x16x128xbf16> -> vector<2x16x256xbf16>
    %c3 = arith.constant 3 : index
    %c0_80 = arith.constant 0 : index
    %c0_81 = arith.constant 0 : index
    %126 = vector.load %arg4[%c3, %c0_80, %c0_81] : memref<6x256x256xbf16, #tpu.memory_space<vmem>>, vector<1x256x256xbf16>
    %127 = vector.shape_cast %126 : vector<1x256x256xbf16> to vector<256x256xbf16>
    %c3_82 = arith.constant 3 : index
    %c0_83 = arith.constant 0 : index
    %c0_84 = arith.constant 0 : index
    %128 = vector.load %arg5[%c3_82, %c0_83, %c0_84] : memref<6x1x256xf32, #tpu.memory_space<vmem>>, vector<1x1x256xf32>
    %129 = vector.shape_cast %128 : vector<1x1x256xf32> to vector<1x256xf32>
    %130 = vector.shape_cast %125 : vector<2x16x256xbf16> to vector<32x256xbf16>
    %cst_85 = arith.constant dense<0.000000e+00> : vector<32x256xf32>
    %131 = tpu.matmul %130, %127, %cst_85 {dimension_numbers = #tpu.dot_dimension_numbers<[1], [0], [0], [1], [0, 0, 1, 1], [], []>} : vector<32x256xbf16>, vector<256x256xbf16>, vector<32x256xf32> -> vector<32x256xf32>
    %132 = vector.broadcast %129 : vector<1x256xf32> to vector<32x256xf32>
    %133 = arith.addf %131, %132 : vector<32x256xf32>
    %134 = vector.shape_cast %133 : vector<32x256xf32> to vector<2x16x256xf32>
    %135 = vector.extract_strided_slice %134 {offsets = [0, 0, 0], sizes = [2, 16, 128], strides = [1, 1, 1]} : vector<2x16x256xf32> to vector<2x16x128xf32>
    %136 = math.tanh %135 : vector<2x16x128xf32>
    %137 = vector.extract_strided_slice %134 {offsets = [0, 0, 128], sizes = [2, 16, 128], strides = [1, 1, 1]} : vector<2x16x256xf32> to vector<2x16x128xf32>
    %138 = arith.negf %137 : vector<2x16x128xf32>
    %139 = math.exp %138 : vector<2x16x128xf32>
    %cst_86 = arith.constant 1.000000e+00 : f32
    %140 = vector.broadcast %cst_86 : f32 to vector<2x16x128xf32>
    %141 = arith.addf %140, %139 : vector<2x16x128xf32>
    %142 = arith.divf %140, %141 : vector<2x16x128xf32>
    %143 = arith.mulf %136, %142 : vector<2x16x128xf32>
    %c3_87 = arith.constant 3 : index
    %c0_88 = arith.constant 0 : index
    %c0_89 = arith.constant 0 : index
    %144 = vector.load %arg6[%c3_87, %c0_88, %c0_89] : memref<6x128x256xbf16, #tpu.memory_space<vmem>>, vector<1x128x256xbf16>
    %145 = vector.shape_cast %144 : vector<1x128x256xbf16> to vector<128x256xbf16>
    %c3_90 = arith.constant 3 : index
    %c0_91 = arith.constant 0 : index
    %c0_92 = arith.constant 0 : index
    %146 = vector.load %arg7[%c3_90, %c0_91, %c0_92] : memref<6x1x256xf32, #tpu.memory_space<vmem>>, vector<1x1x256xf32>
    %147 = vector.shape_cast %146 : vector<1x1x256xf32> to vector<1x256xf32>
    %148 = vector.shape_cast %143 : vector<2x16x128xf32> to vector<32x128xf32>
    %149 = arith.truncf %148 : vector<32x128xf32> to vector<32x128xbf16>
    %cst_93 = arith.constant dense<0.000000e+00> : vector<32x256xf32>
    %150 = tpu.matmul %149, %145, %cst_93 {dimension_numbers = #tpu.dot_dimension_numbers<[1], [0], [0], [1], [0, 0, 1, 1], [], []>} : vector<32x128xbf16>, vector<128x256xbf16>, vector<32x256xf32> -> vector<32x256xf32>
    %151 = vector.broadcast %147 : vector<1x256xf32> to vector<32x256xf32>
    %152 = arith.addf %150, %151 : vector<32x256xf32>
    %153 = vector.shape_cast %152 : vector<32x256xf32> to vector<2x16x256xf32>
    %154 = vector.extract_strided_slice %153 {offsets = [0, 0, 0], sizes = [2, 16, 128], strides = [1, 1, 1]} : vector<2x16x256xf32> to vector<2x16x128xf32>
    %155 = arith.addf %119, %154 : vector<2x16x128xf32>
    %156 = vector.extract_strided_slice %153 {offsets = [0, 0, 128], sizes = [2, 16, 128], strides = [1, 1, 1]} : vector<2x16x256xf32> to vector<2x16x128xf32>
    %157 = arith.addf %121, %156 : vector<2x16x128xf32>
    %158 = arith.truncf %155 : vector<2x16x128xf32> to vector<2x16x128xbf16>
    %c0_94 = arith.constant 0 : index
    %c16_95 = arith.constant 16 : index
    %c0_96 = arith.constant 0 : index
    %159 = vector.load %arg13[%c0_94, %c16_95, %c0_96] : memref<2x32x128xbf16, #tpu.memory_space<vmem>>, vector<2x16x128xbf16>
    tpu.vector_store %arg13[%c0_94, %c16_95, %c0_96], %158 {strides = array<i32>} : memref<2x32x128xbf16, #tpu.memory_space<vmem>>, vector<2x16x128xbf16>,
    %c0_97 = arith.constant 0 : index
    %c14_98 = arith.constant 14 : index
    %c0_99 = arith.constant 0 : index
    %160 = vector.load %arg13[%c0_97, %c14_98, %c0_99] : memref<2x32x128xbf16, #tpu.memory_space<vmem>>, vector<2x16x128xbf16>
    %161 = tpu.concatenate %160, %158 in 2 : vector<2x16x128xbf16>, vector<2x16x128xbf16> -> vector<2x16x256xbf16>
    %c4 = arith.constant 4 : index
    %c0_100 = arith.constant 0 : index
    %c0_101 = arith.constant 0 : index
    %162 = vector.load %arg4[%c4, %c0_100, %c0_101] : memref<6x256x256xbf16, #tpu.memory_space<vmem>>, vector<1x256x256xbf16>
    %163 = vector.shape_cast %162 : vector<1x256x256xbf16> to vector<256x256xbf16>
    %c4_102 = arith.constant 4 : index
    %c0_103 = arith.constant 0 : index
    %c0_104 = arith.constant 0 : index
    %164 = vector.load %arg5[%c4_102, %c0_103, %c0_104] : memref<6x1x256xf32, #tpu.memory_space<vmem>>, vector<1x1x256xf32>
    %165 = vector.shape_cast %164 : vector<1x1x256xf32> to vector<1x256xf32>
    %166 = vector.shape_cast %161 : vector<2x16x256xbf16> to vector<32x256xbf16>
    %cst_105 = arith.constant dense<0.000000e+00> : vector<32x256xf32>
    %167 = tpu.matmul %166, %163, %cst_105 {dimension_numbers = #tpu.dot_dimension_numbers<[1], [0], [0], [1], [0, 0, 1, 1], [], []>} : vector<32x256xbf16>, vector<256x256xbf16>, vector<32x256xf32> -> vector<32x256xf32>
    %168 = vector.broadcast %165 : vector<1x256xf32> to vector<32x256xf32>
    %169 = arith.addf %167, %168 : vector<32x256xf32>
    %170 = vector.shape_cast %169 : vector<32x256xf32> to vector<2x16x256xf32>
    %171 = vector.extract_strided_slice %170 {offsets = [0, 0, 0], sizes = [2, 16, 128], strides = [1, 1, 1]} : vector<2x16x256xf32> to vector<2x16x128xf32>
    %172 = math.tanh %171 : vector<2x16x128xf32>
    %173 = vector.extract_strided_slice %170 {offsets = [0, 0, 128], sizes = [2, 16, 128], strides = [1, 1, 1]} : vector<2x16x256xf32> to vector<2x16x128xf32>
    %174 = arith.negf %173 : vector<2x16x128xf32>
    %175 = math.exp %174 : vector<2x16x128xf32>
    %cst_106 = arith.constant 1.000000e+00 : f32
    %176 = vector.broadcast %cst_106 : f32 to vector<2x16x128xf32>
    %177 = arith.addf %176, %175 : vector<2x16x128xf32>
    %178 = arith.divf %176, %177 : vector<2x16x128xf32>
    %179 = arith.mulf %172, %178 : vector<2x16x128xf32>
    %c4_107 = arith.constant 4 : index
    %c0_108 = arith.constant 0 : index
    %c0_109 = arith.constant 0 : index
    %180 = vector.load %arg6[%c4_107, %c0_108, %c0_109] : memref<6x128x256xbf16, #tpu.memory_space<vmem>>, vector<1x128x256xbf16>
    %181 = vector.shape_cast %180 : vector<1x128x256xbf16> to vector<128x256xbf16>
    %c4_110 = arith.constant 4 : index
    %c0_111 = arith.constant 0 : index
    %c0_112 = arith.constant 0 : index
    %182 = vector.load %arg7[%c4_110, %c0_111, %c0_112] : memref<6x1x256xf32, #tpu.memory_space<vmem>>, vector<1x1x256xf32>
    %183 = vector.shape_cast %182 : vector<1x1x256xf32> to vector<1x256xf32>
    %184 = vector.shape_cast %179 : vector<2x16x128xf32> to vector<32x128xf32>
    %185 = arith.truncf %184 : vector<32x128xf32> to vector<32x128xbf16>
    %cst_113 = arith.constant dense<0.000000e+00> : vector<32x256xf32>
    %186 = tpu.matmul %185, %181, %cst_113 {dimension_numbers = #tpu.dot_dimension_numbers<[1], [0], [0], [1], [0, 0, 1, 1], [], []>} : vector<32x128xbf16>, vector<128x256xbf16>, vector<32x256xf32> -> vector<32x256xf32>
    %187 = vector.broadcast %183 : vector<1x256xf32> to vector<32x256xf32>
    %188 = arith.addf %186, %187 : vector<32x256xf32>
    %189 = vector.shape_cast %188 : vector<32x256xf32> to vector<2x16x256xf32>
    %190 = vector.extract_strided_slice %189 {offsets = [0, 0, 0], sizes = [2, 16, 128], strides = [1, 1, 1]} : vector<2x16x256xf32> to vector<2x16x128xf32>
    %191 = arith.addf %155, %190 : vector<2x16x128xf32>
    %192 = vector.extract_strided_slice %189 {offsets = [0, 0, 128], sizes = [2, 16, 128], strides = [1, 1, 1]} : vector<2x16x256xf32> to vector<2x16x128xf32>
    %193 = arith.addf %157, %192 : vector<2x16x128xf32>
    %194 = arith.truncf %191 : vector<2x16x128xf32> to vector<2x16x128xbf16>
    %c0_114 = arith.constant 0 : index
    %c16_115 = arith.constant 16 : index
    %c0_116 = arith.constant 0 : index
    %195 = vector.load %arg13[%c0_114, %c16_115, %c0_116] : memref<2x32x128xbf16, #tpu.memory_space<vmem>>, vector<2x16x128xbf16>
    tpu.vector_store %arg13[%c0_114, %c16_115, %c0_116], %194 {strides = array<i32>} : memref<2x32x128xbf16, #tpu.memory_space<vmem>>, vector<2x16x128xbf16>,
    %c0_117 = arith.constant 0 : index
    %c12_118 = arith.constant 12 : index
    %c0_119 = arith.constant 0 : index
    %196 = vector.load %arg13[%c0_117, %c12_118, %c0_119] : memref<2x32x128xbf16, #tpu.memory_space<vmem>>, vector<2x16x128xbf16>
    %197 = tpu.concatenate %196, %194 in 2 : vector<2x16x128xbf16>, vector<2x16x128xbf16> -> vector<2x16x256xbf16>
    %c5 = arith.constant 5 : index
    %c0_120 = arith.constant 0 : index
    %c0_121 = arith.constant 0 : index
    %198 = vector.load %arg4[%c5, %c0_120, %c0_121] : memref<6x256x256xbf16, #tpu.memory_space<vmem>>, vector<1x256x256xbf16>
    %199 = vector.shape_cast %198 : vector<1x256x256xbf16> to vector<256x256xbf16>
    %c5_122 = arith.constant 5 : index
    %c0_123 = arith.constant 0 : index
    %c0_124 = arith.constant 0 : index
    %200 = vector.load %arg5[%c5_122, %c0_123, %c0_124] : memref<6x1x256xf32, #tpu.memory_space<vmem>>, vector<1x1x256xf32>
    %201 = vector.shape_cast %200 : vector<1x1x256xf32> to vector<1x256xf32>
    %202 = vector.shape_cast %197 : vector<2x16x256xbf16> to vector<32x256xbf16>
    %cst_125 = arith.constant dense<0.000000e+00> : vector<32x256xf32>
    %203 = tpu.matmul %202, %199, %cst_125 {dimension_numbers = #tpu.dot_dimension_numbers<[1], [0], [0], [1], [0, 0, 1, 1], [], []>} : vector<32x256xbf16>, vector<256x256xbf16>, vector<32x256xf32> -> vector<32x256xf32>
    %204 = vector.broadcast %201 : vector<1x256xf32> to vector<32x256xf32>
    %205 = arith.addf %203, %204 : vector<32x256xf32>
    %206 = vector.shape_cast %205 : vector<32x256xf32> to vector<2x16x256xf32>
    %207 = vector.extract_strided_slice %206 {offsets = [0, 0, 0], sizes = [2, 16, 128], strides = [1, 1, 1]} : vector<2x16x256xf32> to vector<2x16x128xf32>
    %208 = math.tanh %207 : vector<2x16x128xf32>
    %209 = vector.extract_strided_slice %206 {offsets = [0, 0, 128], sizes = [2, 16, 128], strides = [1, 1, 1]} : vector<2x16x256xf32> to vector<2x16x128xf32>
    %210 = arith.negf %209 : vector<2x16x128xf32>
    %211 = math.exp %210 : vector<2x16x128xf32>
    %cst_126 = arith.constant 1.000000e+00 : f32
    %212 = vector.broadcast %cst_126 : f32 to vector<2x16x128xf32>
    %213 = arith.addf %212, %211 : vector<2x16x128xf32>
    %214 = arith.divf %212, %213 : vector<2x16x128xf32>
    %215 = arith.mulf %208, %214 : vector<2x16x128xf32>
    %c5_127 = arith.constant 5 : index
    %c0_128 = arith.constant 0 : index
    %c0_129 = arith.constant 0 : index
    %216 = vector.load %arg6[%c5_127, %c0_128, %c0_129] : memref<6x128x256xbf16, #tpu.memory_space<vmem>>, vector<1x128x256xbf16>
    %217 = vector.shape_cast %216 : vector<1x128x256xbf16> to vector<128x256xbf16>
    %c5_130 = arith.constant 5 : index
    %c0_131 = arith.constant 0 : index
    %c0_132 = arith.constant 0 : index
    %218 = vector.load %arg7[%c5_130, %c0_131, %c0_132] : memref<6x1x256xf32, #tpu.memory_space<vmem>>, vector<1x1x256xf32>
    %219 = vector.shape_cast %218 : vector<1x1x256xf32> to vector<1x256xf32>
    %220 = vector.shape_cast %215 : vector<2x16x128xf32> to vector<32x128xf32>
    %221 = arith.truncf %220 : vector<32x128xf32> to vector<32x128xbf16>
    %cst_133 = arith.constant dense<0.000000e+00> : vector<32x256xf32>
    %222 = tpu.matmul %221, %217, %cst_133 {dimension_numbers = #tpu.dot_dimension_numbers<[1], [0], [0], [1], [0, 0, 1, 1], [], []>} : vector<32x128xbf16>, vector<128x256xbf16>, vector<32x256xf32> -> vector<32x256xf32>
    %223 = vector.broadcast %219 : vector<1x256xf32> to vector<32x256xf32>
    %224 = arith.addf %222, %223 : vector<32x256xf32>
    %225 = vector.shape_cast %224 : vector<32x256xf32> to vector<2x16x256xf32>
    %226 = vector.extract_strided_slice %225 {offsets = [0, 0, 128], sizes = [2, 16, 128], strides = [1, 1, 1]} : vector<2x16x256xf32> to vector<2x16x128xf32>
    %227 = arith.addf %193, %226 : vector<2x16x128xf32>
    %cst_134 = arith.constant 0.000000e+00 : f32
    %228 = vector.broadcast %cst_134 : f32 to vector<2x16x128xf32>
    %229 = arith.maximumf %227, %228 : vector<2x16x128xf32>
    %c0_135 = arith.constant 0 : index
    %c0_136 = arith.constant 0 : index
    %230 = vector.load %arg8[%c0_135, %c0_136] : memref<128x128xbf16, #tpu.memory_space<vmem>>, vector<128x128xbf16>
    %c0_137 = arith.constant 0 : index
    %c0_138 = arith.constant 0 : index
    %231 = vector.load %arg9[%c0_137, %c0_138] : memref<1x128xf32, #tpu.memory_space<vmem>>, vector<1x128xf32>
    %232 = vector.shape_cast %229 : vector<2x16x128xf32> to vector<32x128xf32>
    %233 = arith.truncf %232 : vector<32x128xf32> to vector<32x128xbf16>
    %cst_139 = arith.constant dense<0.000000e+00> : vector<32x128xf32>
    %234 = tpu.matmul %233, %230, %cst_139 {dimension_numbers = #tpu.dot_dimension_numbers<[1], [0], [0], [1], [0, 0, 1, 1], [], []>} : vector<32x128xbf16>, vector<128x128xbf16>, vector<32x128xf32> -> vector<32x128xf32>
    %235 = vector.broadcast %231 : vector<1x128xf32> to vector<32x128xf32>
    %236 = arith.addf %234, %235 : vector<32x128xf32>
    %237 = vector.shape_cast %236 : vector<32x128xf32> to vector<2x16x128xf32>
    %cst_140 = arith.constant 0.000000e+00 : f32
    %238 = vector.broadcast %cst_140 : f32 to vector<2x16x128xf32>
    %239 = arith.maximumf %237, %238 : vector<2x16x128xf32>
    %c0_141 = arith.constant 0 : index
    %c0_142 = arith.constant 0 : index
    %240 = vector.load %arg10[%c0_141, %c0_142] : memref<128x128xbf16, #tpu.memory_space<vmem>>, vector<128x128xbf16>
    %c0_143 = arith.constant 0 : index
    %c0_144 = arith.constant 0 : index
    %241 = vector.load %arg11[%c0_143, %c0_144] : memref<1x128xf32, #tpu.memory_space<vmem>>, vector<1x128xf32>
    %242 = vector.shape_cast %239 : vector<2x16x128xf32> to vector<32x128xf32>
    %243 = arith.truncf %242 : vector<32x128xf32> to vector<32x128xbf16>
    %cst_145 = arith.constant dense<0.000000e+00> : vector<32x128xf32>
    %244 = tpu.matmul %243, %240, %cst_145 {dimension_numbers = #tpu.dot_dimension_numbers<[1], [0], [0], [1], [0, 0, 1, 1], [], []>} : vector<32x128xbf16>, vector<128x128xbf16>, vector<32x128xf32> -> vector<32x128xf32>
    %245 = vector.broadcast %241 : vector<1x128xf32> to vector<32x128xf32>
    %246 = arith.addf %244, %245 : vector<32x128xf32>
    %247 = vector.shape_cast %246 : vector<32x128xf32> to vector<2x16x128xf32>
    %248 = arith.truncf %247 : vector<2x16x128xf32> to vector<2x16x128xbf16>
    %c0_146 = arith.constant 0 : index
    %c0_147 = arith.constant 0 : index
    %c0_148 = arith.constant 0 : index
    %249 = vector.load %arg12[%c0_146, %c0_147, %c0_148] : memref<2x16x128xbf16, #tpu.memory_space<vmem>>, vector<2x16x128xbf16>
    tpu.vector_store %arg12[%c0_146, %c0_147, %c0_148], %248 {strides = array<i32>} : memref<2x16x128xbf16, #tpu.memory_space<vmem>>, vector<2x16x128xbf16>,
    return
  }
  func.func @transform_0(%arg0: i32) -> (i32, i32, i32) {
    %c0_i32 = arith.constant 0 : i32
    %c0_i32_0 = arith.constant 0 : i32
    %c0_i32_1 = arith.constant 0 : i32
    return %arg0, %c0_i32, %c0_i32_0 : i32, i32, i32
  }
  func.func @transform_1(%arg0: i32) -> (i32, i32) {
    %c0_i32 = arith.constant 0 : i32
    %c0_i32_0 = arith.constant 0 : i32
    %c0_i32_1 = arith.constant 0 : i32
    return %c0_i32, %c0_i32_0 : i32, i32
  }
  func.func @transform_2(%arg0: i32) -> (i32, i32) {
    %c0_i32 = arith.constant 0 : i32
    %c0_i32_0 = arith.constant 0 : i32
    %c0_i32_1 = arith.constant 0 : i32
    return %c0_i32, %c0_i32_0 : i32, i32
  }
  func.func @transform_3(%arg0: i32) -> (i32, i32, i32) {
    %c0_i32 = arith.constant 0 : i32
    %c0_i32_0 = arith.constant 0 : i32
    %c0_i32_1 = arith.constant 0 : i32
    %c0_i32_2 = arith.constant 0 : i32
    return %c0_i32, %c0_i32_0, %c0_i32_1 : i32, i32, i32
  }
  func.func @transform_4(%arg0: i32) -> (i32, i32, i32) {
    %c0_i32 = arith.constant 0 : i32
    %c0_i32_0 = arith.constant 0 : i32
    %c0_i32_1 = arith.constant 0 : i32
    %c0_i32_2 = arith.constant 0 : i32
    return %c0_i32, %c0_i32_0, %c0_i32_1 : i32, i32, i32
  }
  func.func @transform_5(%arg0: i32) -> (i32, i32, i32) {
    %c0_i32 = arith.constant 0 : i32
    %c0_i32_0 = arith.constant 0 : i32
    %c0_i32_1 = arith.constant 0 : i32
    %c0_i32_2 = arith.constant 0 : i32
    return %c0_i32, %c0_i32_0, %c0_i32_1 : i32, i32, i32
  }
  func.func @transform_6(%arg0: i32) -> (i32, i32, i32) {
    %c0_i32 = arith.constant 0 : i32
    %c0_i32_0 = arith.constant 0 : i32
    %c0_i32_1 = arith.constant 0 : i32
    %c0_i32_2 = arith.constant 0 : i32
    return %c0_i32, %c0_i32_0, %c0_i32_1 : i32, i32, i32
  }
  func.func @transform_7(%arg0: i32) -> (i32, i32) {
    %c0_i32 = arith.constant 0 : i32
    %c0_i32_0 = arith.constant 0 : i32
    %c0_i32_1 = arith.constant 0 : i32
    return %c0_i32, %c0_i32_0 : i32, i32
  }
  func.func @transform_8(%arg0: i32) -> (i32, i32) {
    %c0_i32 = arith.constant 0 : i32
    %c0_i32_0 = arith.constant 0 : i32
    %c0_i32_1 = arith.constant 0 : i32
    return %c0_i32, %c0_i32_0 : i32, i32
  }
  func.func @transform_9(%arg0: i32) -> (i32, i32) {
    %c0_i32 = arith.constant 0 : i32
    %c0_i32_0 = arith.constant 0 : i32
    %c0_i32_1 = arith.constant 0 : i32
    return %c0_i32, %c0_i32_0 : i32, i32
  }
  func.func @transform_10(%arg0: i32) -> (i32, i32) {
    %c0_i32 = arith.constant 0 : i32
    %c0_i32_0 = arith.constant 0 : i32
    %c0_i32_1 = arith.constant 0 : i32
    return %c0_i32, %c0_i32_0 : i32, i32
  }
  func.func @transform_11(%arg0: i32) -> (i32, i32, i32) {
    %c0_i32 = arith.constant 0 : i32
    %c0_i32_0 = arith.constant 0 : i32
    %c0_i32_1 = arith.constant 0 : i32
    return %arg0, %c0_i32, %c0_i32_0 : i32, i32, i32
  }
}

</mosaic_0001>

<bundles_post_ra>
// kernel: generator_with_wavenet.1
= control target key start
LH: loop header
LB: loop body
LE: loop exit
PB: predicated region body
PF: predicated region fallthrough
CT: control target
= control target key end

     0   :  { %v5346_v1 = vmov 0   ;;  %vm132_vm0 = vsmask.f32 4352  ;;  %vm993_vm1 = vcmask 1044480   ;;  %vm1516_vm2 = vcmask 1045504   ;;  %s6659_s1 = inlined_call_operand.vmem [shape: bf16[256,128], index: 1, kind: input, shape index: {}]   ;;  %s6660_s0 = inlined_call_operand.vmem [shape: bf16[2,16,128], index: 0, kind: input, shape index: {}]   ;;  %s6661_s3 = inlined_call_operand.vmem [shape: bf16[6,256,256], index: 3, kind: input, shape index: {}]   ;;  %s6662_s2 = inlined_call_operand.vmem [shape: f32[1,128], index: 2, kind: input, shape index: {}]   ;;  %s6663_s5 = inlined_call_operand.vmem [shape: bf16[6,128,256], index: 5, kind: input, shape index: {}]   ;;  %s6664_s4 = inlined_call_operand.vmem [shape: f32[6,1,256], index: 4, kind: input, shape index: {}]   ;;  %s6665_s6 = inlined_call_operand.vmem [shape: f32[6,1,256], index: 6, kind: input, shape index: {}]   ;;  %s6666_s7 = inlined_call_operand.vmem [shape: bf16[128,128], index: 7, kind: input, shape index: {}]   ;;  %s6667_s9 = inlined_call_operand.vmem [shape: bf16[128,128], index: 9, kind: input, shape index: {}]   ;;  %s6668_s8 = inlined_call_operand.vmem [shape: f32[1,128], index: 8, kind: input, shape index: {}]   ;;  %s6669_s10 = inlined_call_operand.vmem [shape: f32[1,128], index: 10, kind: input, shape index: {}]   ;;  %s6670_s11 = inlined_call_operand.vmem [shape: bf16[2,16,128], index: 11, kind: output, shape index: {}]  }
   0x1   :  { %v4708_v0 = vld [vmem:[%s6659_s1 + $0x78] sm:$0xff]   ;;  %40 = vst [vmem:[#allocation2 + $0x4] sm:$0xf] %v5346_v1  ;;  %42 = vst [vmem:[#allocation2 + $0x14] sm:$0xf] %v5346_v1  ;;  %v4710_v3 = vld [vmem:[%s6659_s1 + $0x70] sm:$0xff]  }
   0x2   :  { %v4709_v2 = vld [vmem:[%s6659_s1 + $0x38] sm:$0xff]   ;;  %4619 = vmatprep.subr.bf16.mxu0 %v4708_v0  ;;  %v4711_v4 = vld [vmem:[%s6659_s1 + $0x30] sm:$0xff]   ;;  %v4712_v5 = vld [vmem:[%s6659_s1 + $0x68] sm:$0xff]  }
   0x3   :  { %4620 = vmatpush3.bf16.msra.mxu0 %v4709_v2  ;;  %v4713_v6 = vld [vmem:[%s6659_s1 + $0x28] sm:$0xff]   ;;  %v4714_v7 = vld [vmem:[%s6659_s1 + $0x60] sm:$0xff]   ;;  %v4716_v9 = vld [vmem:[%s6659_s1 + $0x58] sm:$0xff]  }
   0x4   :  { %4621 = vmatprep.subr.bf16.mxu0 %v4710_v3  ;;  %v4715_v8 = vld [vmem:[%s6659_s1 + $0x20] sm:$0xff]   ;;  %v4717_v10 = vld [vmem:[%s6659_s1 + $0x18] sm:$0xff]   ;;  %v4718_v11 = vld [vmem:[%s6659_s1 + $0x50] sm:$0xff]  }
   0x5   :  { %v43_v12 = vld [vmem:[%s6660_s0] sm:$0xf]  ;;  %v44_v13 = vld [vmem:[%s6660_s0 + $0x4] sm:$0xf]  ;;  %v4719_v14 = vld [vmem:[%s6659_s1 + $0x10] sm:$0xff]  }
   0x6   :  { %47 = vst [vmem:[#allocation2 + $0x8] sm:$0xf] %v43_v12  ;;  %48 = vst [vmem:[#allocation2 + $0xc] sm:$0xf] %v44_v13  ;;  %v3849_v15 = vcombine.low %v43_v12, %v44_v13  ;;  %v45_v16 = vld [vmem:[%s6660_s0 + $0x8] sm:$0xf] }
   0x7   :  { %4622 = vmatpush3.bf16.msra.mxu0 %v4711_v4  ;;  %v46_v17 = vld [vmem:[%s6660_s0 + $0xc] sm:$0xf]  ;;  %49 = vst [vmem:[#allocation2 + $0x18] sm:$0xf] %v45_v16  ;;  %v4730_v19 = vld [vmem:[%s6661_s3 + $0x74] ss:$8 sps:$4 sm:$0xff]  }
   0x8   :  { %4623 = vmatprep.subr.bf16.mxu0 %v4712_v5  ;;  %50 = vst [vmem:[#allocation2 + $0x1c] sm:$0xf] %v46_v17  ;;  %v3850_v18 = vcombine.low %v45_v16, %v46_v17  ;;  %v84_v20 = vshrl.u32 %v3849_v15, 16  ;;  %v87_v21 = vshll.u32 %v3849_v15, 16  ;;  %v4732_v22 = vld [vmem:[%s6661_s3 + $0x70] ss:$8 sps:$4 sm:$0xff]   ;;  %658 = vmatprep.subr.bf16.mxu1 %v4730_v19 }
   0x9   :  { %v4720_v23 = vld [vmem:[%s6659_s1 + $0x48] sm:$0xff]   ;;  %659 = vmatpush1.bf16.msra.mxu1 %v4732_v22  ;;  %v4736_v33 = vld [vmem:[%s6661_s3 + $0x54] ss:$8 sps:$4 sm:$0xff]   ;;  %v4722_v34 = vld [vmem:[%s6659_s1 + $0x40] sm:$0xff]  }
   0xa   :  { %v92_v24 = vshrl.u32 %v3850_v18, 16  ;;  %v95_v25 = vshll.u32 %v3850_v18, 16  ;;  %v4733_v26 = vld [vmem:[%s6661_s3 + $0x64] ss:$8 sps:$4 sm:$0xff]   ;;  %v86_v28 = vrot.slane %v84_v20, 4  ;;  %v89_v29 = vrot.slane %v87_v21, 5 }
   0xb   :  { %4624 = vmatpush3.bf16.msra.mxu0 %v4713_v6  ;;  %v4721_v27 = vld [vmem:[%s6659_s1 + $0x8] sm:$0xff]   ;;  %660 = vmatprep.subr.bf16.mxu1 %v4733_v26  ;;  %v4738_v36 = vld [vmem:[%s6661_s3 + $0x50] ss:$8 sps:$4 sm:$0xff]   ;;  %v4723_v40 = vld [vmem:[%s6659_s1] sm:$0xff]  }
   0xc   :  { %4625 = vmatprep.subr.bf16.mxu0 %v4714_v7  ;;  %v4735_v30 = vld [vmem:[%s6661_s3 + $0x60] ss:$8 sps:$4 sm:$0xff]   ;;  %v94_v31 = vrot.slane %v92_v24, 4  ;;  %v97_v32 = vrot.slane %v95_v25, 5  ;;  %v90_v35 = vor.u32 %v89_v29, %v86_v28  ;;  %v4739_v39 = vld [vmem:[%s6661_s3 + $0x44] ss:$8 sps:$4 sm:$0xff]  }
   0xd   :  { %v4725_v37 = vld [vmem:[#allocation2 + $0x4] sm:$0xf8]   ;;  %v4726_v43 = vld [vmem:[#allocation2 + $0xc] ss:$0 sps:$4 sm:$0xff]   ;;  %661 = vmatpush1.bf16.msra.mxu1 %v4735_v30  ;;  %v4742_v3 = vld [vmem:[%s6661_s3 + $0x34] ss:$8 sps:$4 sm:$0xff]  }
   0xe   :  { %v98_v38 = vor.u32 %v97_v32, %v94_v31  ;;  %v151_v41 = vshrl.u32 %v90_v35, 16  ;;  %v154_v42 = vshll.u32 %v90_v35, 16  ;;  %v134_v44 = vshrl.u32 %v4725_v37, 16  ;;  %662 = vmatprep.subr.bf16.mxu1 %v4736_v33  ;;  %v4728_v52 = vld [vmem:[#allocation2 + $0x14] sm:$0xf8]  }
   0xf   :  { %4626 = vmatpush3.bf16.msra.mxu0 %v4715_v8  ;;  %v137_v45 = vshll.u32 %v4725_v37, 16  ;;  %v142_v50 = vshrl.u32 %v4726_v43, 16  ;;  %v145_v51 = vshll.u32 %v4726_v43, 16  ;;  %v4729_v57 = vld [vmem:[#allocation2 + $0x1c] ss:$0 sps:$4 sm:$0xff]   ;;  %v160_v61 = vshrl.u32 %v4728_v52, 16 }
  0x10   :  { %4627 = vmatprep.subr.bf16.mxu0 %v4716_v9  ;;  %v177_v46 = vshrl.u32 %v98_v38, 16  ;;  %v180_v47 = vshll.u32 %v98_v38, 16  ;;  %v153_v48 = vrot.slane %v151_v41, 3  ;;  %v156_v49 = vrot.slane %v154_v42, 4  ;;  %v4741_v62 = vld [vmem:[%s6661_s3 + $0x40] ss:$8 sps:$4 sm:$0xff]  }
  0x11   :  { %v136_v53 = vrot.slane %v134_v44, 3  ;;  %v139_v54 = vrot.slane %v137_v45, 4  ;;  %v144_v59 = vrot.slane %v142_v50, 3  ;;  %v147_v60 = vrot.slane %v145_v51, 4  ;;  %663 = vmatpush1.bf16.msra.mxu1 %v4738_v36  ;;  %v4744_v12 = vld [vmem:[%s6661_s3 + $0x30] ss:$8 sps:$4 sm:$0xff]  }
  0x12   :  { %v179_v55 = vrot.slane %v177_v46, 3  ;;  %v182_v56 = vrot.slane %v180_v47, 4  ;;  %v157_v58 = vor.u32 %v156_v49, %v153_v48  ;;  %v163_v0 = vshll.u32 %v4728_v52, 16  ;;  %664 = vmatprep.subr.bf16.mxu1 %v4739_v39  ;;  %v4745_v13 = vld [vmem:[%s6661_s3 + $0x24] ss:$8 sps:$4 sm:$0xff]  }
  0x13   :  { %4628 = vmatpush3.bf16.msra.mxu0 %v4717_v10  ;;  %v140_v63 = vor.u32 %v139_v54, %v136_v53  ;;  %v168_v2 = vshrl.u32 %v4729_v57, 16  ;;  %v148_v4 = vor.u32 %v147_v60, %v144_v59  ;;  %v162_v6 = vrot.slane %v160_v61, 3  ;;  %v4747_v16 = vld [vmem:[%s6661_s3 + $0x20] ss:$8 sps:$4 sm:$0xff]   ;;  %v4748_v17 = vld [vmem:[%s6661_s3 + $0x14] ss:$8 sps:$4 sm:$0xff]  }
  0x14   :  { %4629 = vmatprep.subr.bf16.mxu0 %v4718_v11  ;;  %323 = vmatprep.mubr.bf16.mxu0 %v157_v58  ;;  %v183_v5 = vor.u32 %v182_v56, %v179_v55  ;;  %v171_v7 = vshll.u32 %v4729_v57, 16  ;;  %v165_v8 = vrot.slane %v163_v0, 4  ;;  %v4750_v19 = vld [vmem:[%s6661_s3 + $0x10] ss:$8 sps:$4 sm:$0xff]   ;;  %v4751_v20 = vld [vmem:[%s6661_s3 + $0x4] ss:$8 sps:$4 sm:$0xff]  }
  0x15   :  { %v170_v9 = vrot.slane %v168_v2, 3  ;;  %v149_v10 = vsel %vm132_vm0, %v140_v63, %v148_v4  ;;  %665 = vmatpush1.bf16.msra.mxu1 %v4741_v62  ;;  %v4753_v21 = vld [vmem:[%s6661_s3] ss:$8 sps:$4 sm:$0xff]   ;;  %v4754_v22 = vld [vmem:[%s6661_s3 + $0xf4] ss:$8 sps:$4 sm:$0xff]  }
  0x16   :  { %v173_v11 = vrot.slane %v171_v7, 4  ;;  %666 = vmatprep.subr.bf16.mxu1 %v4742_v3  ;;  %v4757_v24 = vld [vmem:[%s6661_s3 + $0xe4] ss:$8 sps:$4 sm:$0xff]   ;;  %v4759_v25 = vld [vmem:[%s6661_s3 + $0xe0] ss:$8 sps:$4 sm:$0xff]  }
  0x17   :  { %4630 = vmatpush3.bf16.msra.mxu0 %v4719_v14  ;;  %v166_v14 = vor.u32 %v165_v8, %v162_v6  ;;  %v4760_v26 = vld [vmem:[%s6661_s3 + $0xd4] ss:$8 sps:$4 sm:$0xff]   ;;  %v4763_v28 = vld [vmem:[%s6661_s3 + $0xc4] ss:$8 sps:$4 sm:$0xff]   ;;  %v4765_v29 = vld [vmem:[%s6661_s3 + $0xc0] ss:$8 sps:$4 sm:$0xff]  }
  0x18   :  { %4631 = vmatprep.subr.bf16.mxu0 %v4720_v23  ;;  %v174_v15 = vor.u32 %v173_v11, %v170_v9  ;;  %v4756_v23 = vld [vmem:[%s6661_s3 + $0xf0] ss:$8 sps:$4 sm:$0xff]   ;;  %v4766_v30 = vld [vmem:[%s6661_s3 + $0xb4] ss:$8 sps:$4 sm:$0xff]   ;;  %v4769_v32 = vld [vmem:[%s6661_s3 + $0xa4] ss:$8 sps:$4 sm:$0xff]  }
  0x19   :  { %667 = vmatpush1.bf16.msra.mxu1 %v4744_v12  ;;  %v4768_v31 = vld [vmem:[%s6661_s3 + $0xb0] ss:$8 sps:$4 sm:$0xff]   ;;  %v4771_v33 = vld [vmem:[%s6661_s3 + $0xa0] ss:$8 sps:$4 sm:$0xff]   ;;  %v4775_v36 = vld [vmem:[%s6661_s3 + $0x84] ss:$8 sps:$4 sm:$0xff]  }
  0x1a   :  { %668 = vmatprep.subr.bf16.mxu1 %v4745_v13  ;;  %v175_v18 = vsel %vm132_vm0, %v166_v14, %v174_v15  ;;  %v4774_v35 = vld [vmem:[%s6661_s3 + $0x90] ss:$8 sps:$4 sm:$0xff]   ;;  %v4777_v37 = vld [vmem:[%s6661_s3 + $0x80] ss:$8 sps:$4 sm:$0xff]  }
  0x1b   :  { %4632 = vmatpush3.bf16.msra.mxu0 %v4721_v27  ;;  %v4762_v27 = vld [vmem:[%s6661_s3 + $0xd0] ss:$8 sps:$4 sm:$0xff]   ;;  %v3851_v42 = vld [vmem:[%s6662_s2] ss:$0 sm:$0xff] }
  0x1c   :  { %4633 = vmatprep.subr.bf16.mxu0 %v4722_v34  ;;  %v4772_v34 = vld [vmem:[%s6661_s3 + $0x94] ss:$8 sps:$4 sm:$0xff]  }
  0x1d   :  { %669 = vmatpush1.bf16.msra.mxu1 %v4747_v16 }
  0x1e   :  { %670 = vmatprep.subr.bf16.mxu1 %v4748_v17 }
  0x1f   :  { %4634 = vmatpush3.bf16.msra.mxu0 %v4723_v40 }
  0x21   :  { %671 = vmatpush1.bf16.msra.mxu1 %v4750_v19 }
  0x22   :  { %324 = vmatmul.mubr.bf16.vlgmr.msra.gmra.mxu0 %v149_v10  ;;  %672 = vmatprep.subr.bf16.mxu1 %v4751_v20 }
  0x23   :  { %331 = vmatprep.mubr.bf16.mxu0 %v183_v5 }
  0x25   :  { %673 = vmatpush1.bf16.msra.mxu1 %v4753_v21 }
  0x26   :  { %674 = vmatprep.subr.bf16.mxu1 %v4754_v22 }
  0x29   :  { %675 = vmatpush2.bf16.msra.mxu1 %v4756_v23 }
  0x2a   :  { %332 = vmatmul.mubr.bf16.gmra.mxu0 %v175_v18  ;;  %676 = vmatprep.subr.bf16.mxu1 %v4757_v24 }
  0x2b   :  { %885 = vmatprep.mubr.bf16.mxu0 %v5346_v1 }
  0x2d   :  { %677 = vmatpush2.bf16.msra.mxu1 %v4759_v25 }
  0x2e   :  { %678 = vmatprep.subr.bf16.mxu1 %v4760_v26 }
  0x31   :  { %679 = vmatpush2.bf16.msra.mxu1 %v4762_v27 }
  0x32   :  { %680 = vmatprep.subr.bf16.mxu1 %v4763_v28 }
  0x35   :  { %681 = vmatpush2.bf16.msra.mxu1 %v4765_v29 }
  0x36   :  { %682 = vmatprep.subr.bf16.mxu1 %v4766_v30 }
  0x39   :  { %683 = vmatpush2.bf16.msra.mxu1 %v4768_v31 }
  0x3a   :  { %684 = vmatprep.subr.bf16.mxu1 %v4769_v32 }
  0x3d   :  { %685 = vmatpush2.bf16.msra.mxu1 %v4771_v33 }
  0x3e   :  { %686 = vmatprep.subr.bf16.mxu1 %v4772_v34 }
  0x41   :  { %687 = vmatpush2.bf16.msra.mxu1 %v4774_v35 }
  0x42   :  { %688 = vmatprep.subr.bf16.mxu1 %v4775_v36 }
  0x45   :  { %689 = vmatpush2.bf16.msra.mxu1 %v4777_v37 }
  0xe2   :  { %v4635_v38 = vpop.f32.mrf.mxu0 }
  0xe4   :  { %v4636_v39 = vpop.f32.mrf.mxu0 }
  0xe5   :  { %v4637_v41 = vadd.f32 %v4636_v39, %v4635_v38 }
  0xe6   :  { %v4638_v40 = vpop.f32.mrf.mxu0 }
  0xe7   :  { %v5571_v46 = vadd.f32 %v4637_v41, %v3851_v42  ;;  %v4782_v41 = vld [vmem:[%s6663_s5 + $0x70] ss:$8 sps:$4 sm:$0xff]  }
  0xe8   :  { %v4639_v43 = vpop.f32.mrf.mxu0 }
  0xe9   :  { %v4640_v44 = vadd.f32 %v4639_v43, %v4638_v40  ;;  %v4784_v40 = vld [vmem:[%s6663_s5 + $0x74] ss:$8 sps:$4 sm:$0xff]   ;;  %v4785_v43 = vld [vmem:[%s6663_s5 + $0x60] ss:$8 sps:$4 sm:$0xff]  }
  0xea   :  { %v4641_v45 = vpop.f32.mrf.mxu0  ;;  %853 = vmatprep.subr.bf16.mxu0 %v4784_v40 }
  0xeb   :  { %v5573_v47 = vadd.f32 %v4640_v44, %v3851_v42  ;;  %854 = vmatpush1.bf16.msra.mxu0 %v4782_v41  ;;  %v4790_v44 = vld [vmem:[%s6663_s5 + $0x54] ss:$8 sps:$4 sm:$0xff]   ;;  %v4811_v41 = vld [vmem:[%s6661_s3 + $0x164] ss:$8 sps:$4 sm:$0xff]  }
  0xec   :  { %v4642_v48 = vpop.f32.mrf.mxu0 }
  0xed   :  { %v340_v49 = vpack.c.bf16 %v5573_v47, %v5571_v46  ;;  %v4643_v51 = vadd.f32 %v4642_v48, %v4641_v45  ;;  %v4788_v45 = vld [vmem:[%s6663_s5 + $0x50] ss:$8 sps:$4 sm:$0xff]   ;;  %v4793_v48 = vld [vmem:[%s6663_s5 + $0x44] ss:$8 sps:$4 sm:$0xff]  }
  0xee   :  { %v4644_v50 = vpop.f32.mrf.mxu0 }
  0xef   :  { %4606 = vst [vmem:[#allocation2 + $0x8] sm:$0xff] %v340_v49   ;;  %v383_v52 = vshrl.u32 %v340_v49, 16  ;;  %v386_v53 = vshll.u32 %v340_v49, 16  ;;  %v5577_v58 = vadd.f32 %v4643_v51, %v3851_v42  ;;  %v4791_v49 = vld [vmem:[%s6663_s5 + $0x40] ss:$8 sps:$4 sm:$0xff]  }
  0xf0   :  { %v4645_v54 = vpop.f32.mrf.mxu0  ;;  %v4794_v51 = vld [vmem:[%s6663_s5 + $0x30] ss:$8 sps:$4 sm:$0xff]  }
  0xf1   :  { %v4646_v55 = vadd.f32 %v4645_v54, %v4644_v50  ;;  %v385_v56 = vrot.slane %v383_v52, 4  ;;  %v388_v57 = vrot.slane %v386_v53, 5  ;;  %v4796_v50 = vld [vmem:[%s6663_s5 + $0x34] ss:$8 sps:$4 sm:$0xff]   ;;  %v4799_v52 = vld [vmem:[%s6663_s5 + $0x24] ss:$8 sps:$4 sm:$0xff]  }
  0xf2   :  { %v4797_v53 = vld [vmem:[%s6663_s5 + $0x20] ss:$8 sps:$4 sm:$0xff]   ;;  %v4800_v54 = vld [vmem:[%s6663_s5 + $0x10] ss:$8 sps:$4 sm:$0xff]  }
  0xf3   :  { %v5579_v59 = vadd.f32 %v4646_v55, %v3851_v42  ;;  %v389_v60 = vor.u32 %v388_v57, %v385_v56  ;;  %v4787_v42 = vld [vmem:[%s6663_s5 + $0x64] ss:$8 sps:$4 sm:$0xff]   ;;  %v4802_v55 = vld [vmem:[%s6663_s5 + $0x14] ss:$8 sps:$4 sm:$0xff]   ;;  %v4803_v57 = vld [vmem:[%s6663_s5] ss:$8 sps:$4 sm:$0xff]  }
  0xf4   :  { %855 = vmatprep.subr.bf16.mxu0 %v4787_v42  ;;  %v4805_v56 = vld [vmem:[%s6663_s5 + $0x4] ss:$8 sps:$4 sm:$0xff]  }
  0xf5   :  { %v341_v61 = vpack.c.bf16 %v5579_v59, %v5577_v58  ;;  %v449_v62 = vshrl.u32 %v389_v60, 16  ;;  %v452_v63 = vshll.u32 %v389_v60, 16  ;;  %856 = vmatpush1.bf16.msra.mxu0 %v4785_v43  ;;  %v4808_v60 = vld [vmem:[%s6661_s3 + $0x174] ss:$8 sps:$4 sm:$0xff]  }
  0xf6   :  { %v4778_v0 = vld [vmem:[#allocation2 + $0x4] sm:$0xf8]   ;;  %v4779_v6 = vld [vmem:[#allocation2 + $0xc] ss:$0 sps:$4 sm:$0xff]   ;;  %857 = vmatprep.subr.bf16.mxu0 %v4790_v44 }
  0xf7   :  { %4607 = vst [vmem:[#allocation2 + $0x18] sm:$0xff] %v341_v61   ;;  %v391_v2 = vshrl.u32 %v341_v61, 16  ;;  %v394_v3 = vshll.u32 %v341_v61, 16  ;;  %v451_v4 = vrot.slane %v449_v62, 3  ;;  %v454_v5 = vrot.slane %v452_v63, 4 }
  0xf8   :  { %v432_v7 = vshrl.u32 %v4778_v0, 16  ;;  %v435_v8 = vshll.u32 %v4778_v0, 16  ;;  %v440_v12 = vshrl.u32 %v4779_v6, 16  ;;  %v443_v15 = vshll.u32 %v4779_v6, 16  ;;  %v430_v0 = vld [vmem:[%s6664_s4] sm:$0x3] }
  0xf9   :  { %v393_v9 = vrot.slane %v391_v2, 4  ;;  %v396_v10 = vrot.slane %v394_v3, 5  ;;  %v455_v11 = vor.u32 %v454_v5, %v451_v4  ;;  %858 = vmatpush1.bf16.msra.mxu0 %v4788_v45  ;;  %v488_v61 = vlaneseq  ;;  %v4809_v44 = vld [vmem:[%s6661_s3 + $0x160] ss:$8 sps:$4 sm:$0xff]  }
  0xfa   :  { %v434_v13 = vrot.slane %v432_v7, 3  ;;  %v437_v14 = vrot.slane %v435_v8, 4  ;;  %v442_v16 = vrot.slane %v440_v12, 3  ;;  %v445_v19 = vrot.slane %v443_v15, 4  ;;  %859 = vmatprep.subr.bf16.mxu0 %v4793_v48  ;;  %v4814_v48 = vld [vmem:[%s6661_s3 + $0x154] ss:$8 sps:$4 sm:$0xff]  }
  0xfb   :  { %690 = vmatprep.mubr.bf16.mxu1 %v455_v11  ;;  %v397_v17 = vor.u32 %v396_v10, %v393_v9  ;;  %v489_v62 = vshrl.u32 %v488_v61, 7  ;;  %v4821_v61 = vld [vmem:[%s6661_s3 + $0x120] ss:$8 sps:$4 sm:$0xff]  }
  0xfc   :  { %v438_v18 = vor.u32 %v437_v14, %v434_v13  ;;  %v446_v22 = vor.u32 %v445_v19, %v442_v16 }
  0xfd   :  { %v475_v20 = vshrl.u32 %v397_v17, 16  ;;  %v478_v21 = vshll.u32 %v397_v17, 16  ;;  %860 = vmatpush1.bf16.msra.mxu0 %v4791_v49  ;;  %v5637_v63 = vsub.s32 1, %v489_v62  ;;  %v5643_v14 = vsub.s32 0, %v489_v62  ;;  %v4826_v62 = vld [vmem:[%s6661_s3 + $0x114] ss:$8 sps:$4 sm:$0xff]  }
  0xfe   :  { %v4780_v23 = vld [vmem:[#allocation2 + $0x14] sm:$0xf8]   ;;  %v4781_v26 = vld [vmem:[#allocation2 + $0x1c] ss:$0 sps:$4 sm:$0xff]   ;;  %v447_v27 = vsel %vm132_vm0, %v438_v18, %v446_v22  ;;  %861 = vmatprep.subr.bf16.mxu0 %v4796_v50 }
  0xff   :  { %v477_v24 = vrot.slane %v475_v20, 3  ;;  %v480_v25 = vrot.slane %v478_v21, 4  ;;  %v458_v28 = vshrl.u32 %v4780_v23, 16  ;;  %v461_v29 = vshll.u32 %v4780_v23, 16  ;;  %691 = vmatmul.mubr.bf16.vlgmr.msra.gmra.mxu1 %v447_v27 }
 0x100   :  { %v466_v31 = vshrl.u32 %v4781_v26, 16  ;;  %v469_v32 = vshll.u32 %v4781_v26, 16  ;;  %v495_v2 = vrot.slane %v430_v0, %v5637_v63  ;;  %v491_v19 = vrot.slane %v430_v0, %v5643_v14  ;;  %v4824_v0 = vld [vmem:[%s6661_s3 + $0x110] ss:$8 sps:$4 sm:$0xff]  }
 0x101   :  { %v481_v30 = vor.u32 %v480_v25, %v477_v24  ;;  %v460_v33 = vrot.slane %v458_v28, 3  ;;  %v463_v34 = vrot.slane %v461_v29, 4  ;;  %862 = vmatpush1.bf16.msra.mxu0 %v4794_v51 }
 0x102   :  { %v468_v35 = vrot.slane %v466_v31, 3  ;;  %v471_v36 = vrot.slane %v469_v32, 4  ;;  %863 = vmatprep.subr.bf16.mxu0 %v4799_v52  ;;  %v4812_v52 = vld [vmem:[%s6661_s3 + $0x150] ss:$8 sps:$4 sm:$0xff]  }
 0x103   :  { %700 = vmatprep.mubr.bf16.mxu1 %v481_v30  ;;  %v464_v37 = vor.u32 %v463_v34, %v460_v33 }
 0x104   :  { %v472_v38 = vor.u32 %v471_v36, %v468_v35 }
 0x105   :  { %864 = vmatpush1.bf16.msra.mxu0 %v4797_v53 }
 0x106   :  { %v473_v39 = vsel %vm132_vm0, %v464_v37, %v472_v38  ;;  %865 = vmatprep.subr.bf16.mxu0 %v4802_v55  ;;  %v4815_v55 = vld [vmem:[%s6661_s3 + $0x140] ss:$8 sps:$4 sm:$0xff]  }
 0x107   :  { %701 = vmatmul.mubr.bf16.gmra.mxu1 %v473_v39  ;;  %v4806_v39 = vld [vmem:[%s6661_s3 + $0x170] ss:$8 sps:$4 sm:$0xff]  }
 0x108   :  { %1408 = vmatprep.mubr.bf16.mxu1 %v5346_v1 }
 0x109   :  { %866 = vmatpush1.bf16.msra.mxu0 %v4800_v54  ;;  %v4817_v54 = vld [vmem:[%s6661_s3 + $0x144] ss:$8 sps:$4 sm:$0xff]  }
 0x10a   :  { %867 = vmatprep.subr.bf16.mxu0 %v4805_v56  ;;  %v4820_v56 = vld [vmem:[%s6661_s3 + $0x134] ss:$8 sps:$4 sm:$0xff]  }
 0x10d   :  { %868 = vmatpush1.bf16.msra.mxu0 %v4803_v57  ;;  %v4818_v57 = vld [vmem:[%s6661_s3 + $0x130] ss:$8 sps:$4 sm:$0xff]  }
 0x10e   :  { %1179 = vmatprep.subr.bf16.mxu0 %v4808_v60  ;;  %v4823_v60 = vld [vmem:[%s6661_s3 + $0x124] ss:$8 sps:$4 sm:$0xff]  }
 0x1bf   :  { %v692_v3 = vpop.f32.mrf.mxu1 }
 0x1c0   :  { %v693_v22 = vadd.f32 %v692_v3, %v491_v19  ;;  %v4827_v3 = vld [vmem:[%s6661_s3 + $0x100] ss:$8 sps:$4 sm:$0xff]  }
 0x1c1   :  { %v694_v4 = vpop.f32.mrf.mxu1 }
 0x1c2   :  { %v695_v5 = vadd.f32 %v694_v4, %v495_v2  ;;  %v4832_v4 = vld [vmem:[%s6661_s3 + $0x1f4] ss:$8 sps:$4 sm:$0xff]  }
 0x1c3   :  { %v696_v6 = vpop.f32.mrf.mxu1 }
 0x1c4   :  { %v3908_v7 = vmul.f32 -1.442695, %v695_v5  ;;  %v697_v24 = vadd.f32 %v696_v6, %v491_v19  ;;  %v4830_v5 = vld [vmem:[%s6661_s3 + $0x1f0] ss:$8 sps:$4 sm:$0xff]   ;;  %v4835_v6 = vld [vmem:[%s6661_s3 + $0x1e4] ss:$8 sps:$4 sm:$0xff]  }
 0x1c5   :  { %v698_v8 = vpop.f32.mrf.mxu1 }
 0x1c6   :  { %5202 = vpow2.f32 %v3908_v7  ;;  %v699_v9 = vadd.f32 %v698_v8, %v495_v2  ;;  %v4833_v7 = vld [vmem:[%s6661_s3 + $0x1e0] ss:$8 sps:$4 sm:$0xff]   ;;  %v4838_v8 = vld [vmem:[%s6661_s3 + $0x1d4] ss:$8 sps:$4 sm:$0xff]  }
 0x1c7   :  { %v702_v10 = vpop.f32.mrf.mxu1 }
 0x1c8   :  { %v3909_v11 = vmul.f32 -1.442695, %v699_v9  ;;  %v703_v28 = vadd.f32 %v702_v10, %v491_v19  ;;  %v4836_v9 = vld [vmem:[%s6661_s3 + $0x1d0] ss:$8 sps:$4 sm:$0xff]   ;;  %v4841_v10 = vld [vmem:[%s6661_s3 + $0x1c4] ss:$8 sps:$4 sm:$0xff]  }
 0x1c9   :  { %v704_v12 = vpop.f32.mrf.mxu1 }
 0x1ca   :  { %5204 = vpow2.f32 %v3909_v11  ;;  %v705_v13 = vadd.f32 %v704_v12, %v495_v2  ;;  %v4839_v11 = vld [vmem:[%s6661_s3 + $0x1c0] ss:$8 sps:$4 sm:$0xff]   ;;  %v4844_v12 = vld [vmem:[%s6661_s3 + $0x1b4] ss:$8 sps:$4 sm:$0xff]  }
 0x1cb   :  { %v706_v15 = vpop.f32.mrf.mxu1 }
 0x1cc   :  { %v3910_v16 = vmul.f32 -1.442695, %v705_v13  ;;  %v707_v30 = vadd.f32 %v706_v15, %v491_v19  ;;  %v4842_v13 = vld [vmem:[%s6661_s3 + $0x1b0] ss:$8 sps:$4 sm:$0xff]   ;;  %v4847_v15 = vld [vmem:[%s6661_s3 + $0x1a4] ss:$8 sps:$4 sm:$0xff]  }
 0x1cd   :  { %v708_v17 = vpop.f32.mrf.mxu1  ;;  %v4853_v19 = vld [vmem:[%s6661_s3 + $0x184] ss:$8 sps:$4 sm:$0xff]  }
 0x1ce   :  { %5206 = vpow2.f32 %v3910_v16  ;;  %v709_v18 = vadd.f32 %v708_v17, %v495_v2  ;;  %v4829_v2 = vld [vmem:[%s6661_s3 + $0x104] ss:$8 sps:$4 sm:$0xff]   ;;  %v4845_v16 = vld [vmem:[%s6661_s3 + $0x1a0] ss:$8 sps:$4 sm:$0xff]   ;;  %v4850_v17 = vld [vmem:[%s6661_s3 + $0x194] ss:$8 sps:$4 sm:$0xff]  }
 0x1d0   :  { %v3911_v20 = vmul.f32 -1.442695, %v709_v18  ;;  %v4848_v18 = vld [vmem:[%s6661_s3 + $0x190] ss:$8 sps:$4 sm:$0xff]  }
 0x1d2   :  { %5208 = vpow2.f32 %v3911_v20  ;;  %v4851_v20 = vld [vmem:[%s6661_s3 + $0x180] ss:$8 sps:$4 sm:$0xff]  }
 0x1d3   :  { %v5203_v21 = vpop.eup %5202  ;;  %5210 = vtanh.f32 %v693_v22 }
 0x1d4   :  { %v727_v23 = vadd.f32 1.0, %v5203_v21  ;;  %v5743_v21 = vld [vmem:[%s6665_s6] sm:$0x3] }
 0x1d5   :  { %v766_v22 = vrot.slane %v5743_v21, %v5643_v14 }
 0x1d6   :  { %5212 = vrcp.f32 %v727_v23 }
 0x1d7   :  { %v5205_v25 = vpop.eup %5204  ;;  %5214 = vtanh.f32 %v697_v24 }
 0x1d8   :  { %v728_v26 = vadd.f32 1.0, %v5205_v25 }
 0x1da   :  { %5216 = vrcp.f32 %v728_v26 }
 0x1db   :  { %v5207_v27 = vpop.eup %5206  ;;  %5218 = vtanh.f32 %v703_v28 }
 0x1dc   :  { %v729_v29 = vadd.f32 1.0, %v5207_v27 }
 0x1de   :  { %5220 = vrcp.f32 %v729_v29 }
 0x1df   :  { %v5209_v31 = vpop.eup %5208  ;;  %5222 = vtanh.f32 %v707_v30 }
 0x1e0   :  { %v730_v32 = vadd.f32 1.0, %v5209_v31  ;;  %v5211_v33 = vpop.eup %5210 }
 0x1e2   :  { %5224 = vrcp.f32 %v730_v32 }
 0x1e3   :  { %v5213_v34 = vpop.eup %5212 }
 0x1e4   :  { %v5215_v35 = vpop.eup %5214  ;;  %v739_v37 = vmul.f32 %v5213_v34, %v5211_v33 }
 0x1e7   :  { %v5217_v36 = vpop.eup %5216 }
 0x1e8   :  { %v740_v38 = vmul.f32 %v5217_v36, %v5215_v35  ;;  %v5219_v42 = vpop.eup %5218 }
 0x1ea   :  { %v760_v40 = vpack.c.bf16 %v740_v38, %v739_v37 }
 0x1eb   :  { %v5221_v43 = vpop.eup %5220 }
 0x1ec   :  { %886 = vmatmul.mubr.bf16.vlgmr.msra.gmra.mxu0 %v760_v40  ;;  %v5223_v45 = vpop.eup %5222  ;;  %v741_v50 = vmul.f32 %v5221_v43, %v5219_v42 }
 0x1ed   :  { %895 = vmatprep.mubr.bf16.mxu0 %v5346_v1  ;;  %1180 = vmatpush1.bf16.msra.mxu0 %v4806_v39 }
 0x1ee   :  { %1181 = vmatprep.subr.bf16.mxu0 %v4811_v41 }
 0x1ef   :  { %v5225_v49 = vpop.eup %5224 }
 0x1f0   :  { %v742_v51 = vmul.f32 %v5225_v49, %v5223_v45  ;;  %v4858_v49 = vld [vmem:[%s6663_s5 + $0xf0] ss:$8 sps:$4 sm:$0xff]  }
 0x1f1   :  { %1182 = vmatpush1.bf16.msra.mxu0 %v4809_v44 }
 0x1f2   :  { %v761_v53 = vpack.c.bf16 %v742_v51, %v741_v50  ;;  %1183 = vmatprep.subr.bf16.mxu0 %v4814_v48  ;;  %v4860_v48 = vld [vmem:[%s6663_s5 + $0xf4] ss:$8 sps:$4 sm:$0xff]   ;;  %v4863_v50 = vld [vmem:[%s6663_s5 + $0xe4] ss:$8 sps:$4 sm:$0xff]   ;;  %v4861_v51 = vld [vmem:[%s6663_s5 + $0xe0] ss:$8 sps:$4 sm:$0xff]  }
 0x1f3   :  { %1376 = vmatprep.subr.bf16.mxu1 %v4860_v48 }
 0x1f4   :  { %896 = vmatmul.mubr.bf16.gmra.mxu0 %v761_v53  ;;  %1377 = vmatpush1.bf16.msra.mxu1 %v4858_v49  ;;  %v4864_v53 = vld [vmem:[%s6663_s5 + $0xd0] ss:$8 sps:$4 sm:$0xff]  }
 0x1f5   :  { %1184 = vmatpush1.bf16.msra.mxu0 %v4812_v52  ;;  %1378 = vmatprep.subr.bf16.mxu1 %v4863_v50  ;;  %v4866_v52 = vld [vmem:[%s6663_s5 + $0xd4] ss:$8 sps:$4 sm:$0xff]   ;;  %v4882_v50 = vld [vmem:[%s6661_s3 + $0x270] ss:$8 sps:$4 sm:$0xff]  }
 0x1f6   :  { %1185 = vmatprep.subr.bf16.mxu0 %v4817_v54  ;;  %v4869_v54 = vld [vmem:[%s6663_s5 + $0xc4] ss:$8 sps:$4 sm:$0xff]  }
 0x1f8   :  { %1379 = vmatpush1.bf16.msra.mxu1 %v4861_v51 }
 0x1f9   :  { %1186 = vmatpush1.bf16.msra.mxu0 %v4815_v55  ;;  %1380 = vmatprep.subr.bf16.mxu1 %v4866_v52  ;;  %v4867_v55 = vld [vmem:[%s6663_s5 + $0xc0] ss:$8 sps:$4 sm:$0xff]   ;;  %v4887_v52 = vld [vmem:[%s6661_s3 + $0x264] ss:$8 sps:$4 sm:$0xff]  }
 0x1fa   :  { %1187 = vmatprep.subr.bf16.mxu0 %v4820_v56  ;;  %v4872_v56 = vld [vmem:[%s6663_s5 + $0xb4] ss:$8 sps:$4 sm:$0xff]  }
 0x1fc   :  { %1381 = vmatpush1.bf16.msra.mxu1 %v4864_v53 }
 0x1fd   :  { %1188 = vmatpush1.bf16.msra.mxu0 %v4818_v57  ;;  %1382 = vmatprep.subr.bf16.mxu1 %v4869_v54  ;;  %v4870_v57 = vld [vmem:[%s6663_s5 + $0xb0] ss:$8 sps:$4 sm:$0xff]  }
 0x1fe   :  { %1189 = vmatprep.subr.bf16.mxu0 %v4823_v60  ;;  %v4875_v60 = vld [vmem:[%s6663_s5 + $0xa4] ss:$8 sps:$4 sm:$0xff]  }
 0x200   :  { %1383 = vmatpush1.bf16.msra.mxu1 %v4867_v55  ;;  %v4885_v55 = vld [vmem:[%s6661_s3 + $0x260] ss:$8 sps:$4 sm:$0xff]  }
 0x201   :  { %1190 = vmatpush1.bf16.msra.mxu0 %v4821_v61  ;;  %1384 = vmatprep.subr.bf16.mxu1 %v4872_v56  ;;  %v4873_v61 = vld [vmem:[%s6663_s5 + $0xa0] ss:$8 sps:$4 sm:$0xff]  }
 0x202   :  { %1191 = vmatprep.subr.bf16.mxu0 %v4826_v62  ;;  %v4876_v62 = vld [vmem:[%s6663_s5 + $0x90] ss:$8 sps:$4 sm:$0xff]  }
 0x204   :  { %1385 = vmatpush1.bf16.msra.mxu1 %v4870_v57  ;;  %v4890_v57 = vld [vmem:[%s6661_s3 + $0x254] ss:$8 sps:$4 sm:$0xff]  }
 0x205   :  { %1192 = vmatpush1.bf16.msra.mxu0 %v4824_v0  ;;  %1386 = vmatprep.subr.bf16.mxu1 %v4875_v60  ;;  %v4878_v0 = vld [vmem:[%s6663_s5 + $0x94] ss:$8 sps:$4 sm:$0xff]  }
 0x206   :  { %1193 = vmatprep.subr.bf16.mxu0 %v4829_v2  ;;  %v4881_v2 = vld [vmem:[%s6663_s5 + $0x84] ss:$8 sps:$4 sm:$0xff]  }
 0x208   :  { %1387 = vmatpush1.bf16.msra.mxu1 %v4873_v61 }
 0x209   :  { %1194 = vmatpush1.bf16.msra.mxu0 %v4827_v3  ;;  %1388 = vmatprep.subr.bf16.mxu1 %v4878_v0  ;;  %v4879_v3 = vld [vmem:[%s6663_s5 + $0x80] ss:$8 sps:$4 sm:$0xff]   ;;  %v4888_v0 = vld [vmem:[%s6661_s3 + $0x250] ss:$8 sps:$4 sm:$0xff]  }
 0x20a   :  { %1195 = vmatprep.subr.bf16.mxu0 %v4832_v4  ;;  %v4884_v4 = vld [vmem:[%s6661_s3 + $0x274] ss:$8 sps:$4 sm:$0xff]  }
 0x20c   :  { %1389 = vmatpush1.bf16.msra.mxu1 %v4876_v62 }
 0x20d   :  { %1196 = vmatpush2.bf16.msra.mxu0 %v4830_v5  ;;  %1390 = vmatprep.subr.bf16.mxu1 %v4881_v2 }
 0x20e   :  { %1197 = vmatprep.subr.bf16.mxu0 %v4835_v6  ;;  %v3968_v6 = vld [vmem:[%s6664_s4 + $0x2] sm:$0x3] }
 0x210   :  { %1391 = vmatpush1.bf16.msra.mxu1 %v4879_v3  ;;  %v4893_v3 = vld [vmem:[%s6661_s3 + $0x244] ss:$8 sps:$4 sm:$0xff]  }
 0x211   :  { %1198 = vmatpush2.bf16.msra.mxu0 %v4833_v7  ;;  %1702 = vmatprep.subr.bf16.mxu1 %v4884_v4  ;;  %v1016_v7 = vrot.slane %v3968_v6, %v5637_v63  ;;  %v4891_v4 = vld [vmem:[%s6661_s3 + $0x240] ss:$8 sps:$4 sm:$0xff]  }
 0x212   :  { %1199 = vmatprep.subr.bf16.mxu0 %v4838_v8 }
 0x215   :  { %1200 = vmatpush2.bf16.msra.mxu0 %v4836_v9 }
 0x216   :  { %1201 = vmatprep.subr.bf16.mxu0 %v4841_v10 }
 0x219   :  { %1202 = vmatpush2.bf16.msra.mxu0 %v4839_v11 }
 0x21a   :  { %1203 = vmatprep.subr.bf16.mxu0 %v4844_v12 }
 0x21d   :  { %1204 = vmatpush2.bf16.msra.mxu0 %v4842_v13 }
 0x21e   :  { %1205 = vmatprep.subr.bf16.mxu0 %v4847_v15 }
 0x221   :  { %1206 = vmatpush2.bf16.msra.mxu0 %v4845_v16 }
 0x222   :  { %1207 = vmatprep.subr.bf16.mxu0 %v4850_v17 }
 0x225   :  { %1208 = vmatpush2.bf16.msra.mxu0 %v4848_v18 }
 0x226   :  { %1209 = vmatprep.subr.bf16.mxu0 %v4853_v19 }
 0x229   :  { %1210 = vmatpush2.bf16.msra.mxu0 %v4851_v20 }
 0x2ac   :  { %v887_v23 = vpop.f32.mrf.mxu0 }
 0x2ad   :  { %v888_v25 = vadd.f32 %v887_v23, %v766_v22 }
 0x2ae   :  { %v5747_v24 = vpop.f32.mrf.mxu0 }
 0x2af   :  { %v5752_v29 = vadd.f32 %v888_v25, %v5571_v46 }
 0x2b0   :  { %v891_v26 = vpop.f32.mrf.mxu0 }
 0x2b1   :  { %v892_v27 = vadd.f32 %v891_v26, %v766_v22  ;;  %v1012_v26 = vrot.slane %v3968_v6, %v5643_v14  ;;  %v4896_v6 = vld [vmem:[%s6661_s3 + $0x234] ss:$8 sps:$4 sm:$0xff]  }
 0x2b2   :  { %v5749_v28 = vpop.f32.mrf.mxu0 }
 0x2b3   :  { %v5755_v30 = vadd.f32 %v892_v27, %v5573_v47 }
 0x2b4   :  { %v897_v31 = vpop.f32.mrf.mxu0 }
 0x2b5   :  { %v914_v32 = vpack.c.bf16 %v5755_v30, %v5752_v29  ;;  %v898_v34 = vadd.f32 %v897_v31, %v766_v22 }
 0x2b6   :  { %v5759_v33 = vpop.f32.mrf.mxu0 }
 0x2b7   :  { %4608 = vst [vmem:[#allocation2 + $0x8] sm:$0xff] %v914_v32   ;;  %1211 = vmatprep.mubr.bf16.mxu0 %v914_v32  ;;  %v5762_v37 = vadd.f32 %v898_v34, %v5577_v58 }
 0x2b8   :  { %v901_v35 = vpop.f32.mrf.mxu0 }
 0x2b9   :  { %v902_v36 = vadd.f32 %v901_v35, %v766_v22 }
 0x2ba   :  { %v5823_v5 = vpop.f32.mrf.mxu0 }
 0x2bb   :  { %v5765_v46 = vadd.f32 %v902_v36, %v5579_v59 }
 0x2bd   :  { %v915_v47 = vpack.c.bf16 %v5765_v46, %v5762_v37 }
 0x2be   :  { %v4854_v38 = vld [vmem:[#allocation2 + $0x4] sm:$0xf8]   ;;  %v4855_v39 = vld [vmem:[#allocation2 + $0xc] ss:$0 sps:$4 sm:$0x77]  }
 0x2bf   :  { %4609 = vst [vmem:[#allocation2 + $0x18] sm:$0xff] %v915_v47   ;;  %v994_v40 = vrot.slane %v4854_v38, 3  ;;  %v995_v41 = vrot.slane %v4855_v39, 3 }
 0x2c1   :  { %v996_v42 = vsel %vm993_vm1, %v994_v40, %v995_v41 }
 0x2c2   :  { %1212 = vmatmul.mubr.bf16.vlgmr.msra.gmra.mxu0 %v996_v42 }
 0x2c3   :  { %1221 = vmatprep.mubr.bf16.mxu0 %v915_v47 }
 0x2c6   :  { %v4856_v43 = vld [vmem:[#allocation2 + $0x14] sm:$0xf8]   ;;  %v4857_v44 = vld [vmem:[#allocation2 + $0x1c] ss:$0 sps:$4 sm:$0x77]  }
 0x2c7   :  { %v999_v58 = vrot.slane %v4856_v43, 3  ;;  %v1000_v45 = vrot.slane %v4857_v44, 3 }
 0x2c9   :  { %v1001_v59 = vsel %vm993_vm1, %v999_v58, %v1000_v45 }
 0x2ca   :  { %1222 = vmatmul.mubr.bf16.gmra.mxu0 %v1001_v59 }
 0x2cb   :  { %1931 = vmatprep.mubr.bf16.mxu0 %v5346_v1 }
 0x382   :  { %v1213_v8 = vpop.f32.mrf.mxu0 }
 0x383   :  { %v1214_v32 = vadd.f32 %v1213_v8, %v1012_v26  ;;  %v4899_v8 = vld [vmem:[%s6661_s3 + $0x224] ss:$8 sps:$4 sm:$0xff]  }
 0x384   :  { %v1215_v9 = vpop.f32.mrf.mxu0 }
 0x385   :  { %v1216_v10 = vadd.f32 %v1215_v9, %v1016_v7  ;;  %v4897_v9 = vld [vmem:[%s6661_s3 + $0x220] ss:$8 sps:$4 sm:$0xff]  }
 0x386   :  { %v1217_v11 = vpop.f32.mrf.mxu0 }
 0x387   :  { %v4003_v12 = vmul.f32 -1.442695, %v1216_v10  ;;  %v1218_v35 = vadd.f32 %v1217_v11, %v1012_v26  ;;  %v4902_v10 = vld [vmem:[%s6661_s3 + $0x214] ss:$8 sps:$4 sm:$0xff]   ;;  %v4900_v11 = vld [vmem:[%s6661_s3 + $0x210] ss:$8 sps:$4 sm:$0xff]  }
 0x388   :  { %v1219_v13 = vpop.f32.mrf.mxu0 }
 0x389   :  { %5226 = vpow2.f32 %v4003_v12  ;;  %v1220_v15 = vadd.f32 %v1219_v13, %v1016_v7  ;;  %v4905_v12 = vld [vmem:[%s6661_s3 + $0x204] ss:$8 sps:$4 sm:$0xff]   ;;  %v4903_v13 = vld [vmem:[%s6661_s3 + $0x200] ss:$8 sps:$4 sm:$0xff]  }
 0x38a   :  { %v1223_v16 = vpop.f32.mrf.mxu0 }
 0x38b   :  { %v4004_v17 = vmul.f32 -1.442695, %v1220_v15  ;;  %v1224_v39 = vadd.f32 %v1223_v16, %v1012_v26  ;;  %v4908_v15 = vld [vmem:[%s6661_s3 + $0x2f4] ss:$8 sps:$4 sm:$0xff]   ;;  %v4906_v16 = vld [vmem:[%s6661_s3 + $0x2f0] ss:$8 sps:$4 sm:$0xff]  }
 0x38c   :  { %v1225_v18 = vpop.f32.mrf.mxu0 }
 0x38d   :  { %5228 = vpow2.f32 %v4004_v17  ;;  %v1226_v19 = vadd.f32 %v1225_v18, %v1016_v7  ;;  %v4911_v17 = vld [vmem:[%s6661_s3 + $0x2e4] ss:$8 sps:$4 sm:$0xff]   ;;  %v4909_v18 = vld [vmem:[%s6661_s3 + $0x2e0] ss:$8 sps:$4 sm:$0xff]  }
 0x38e   :  { %v1227_v20 = vpop.f32.mrf.mxu0 }
 0x38f   :  { %v4005_v22 = vmul.f32 -1.442695, %v1226_v19  ;;  %v1228_v41 = vadd.f32 %v1227_v20, %v1012_v26  ;;  %v4914_v19 = vld [vmem:[%s6661_s3 + $0x2d4] ss:$8 sps:$4 sm:$0xff]   ;;  %v4912_v20 = vld [vmem:[%s6661_s3 + $0x2d0] ss:$8 sps:$4 sm:$0xff]  }
 0x390   :  { %v1229_v23 = vpop.f32.mrf.mxu0  ;;  %v4918_v26 = vld [vmem:[%s6661_s3 + $0x2b0] ss:$8 sps:$4 sm:$0xff]  }
 0x391   :  { %5230 = vpow2.f32 %v4005_v22  ;;  %v1230_v25 = vadd.f32 %v1229_v23, %v1016_v7  ;;  %v4894_v7 = vld [vmem:[%s6661_s3 + $0x230] ss:$8 sps:$4 sm:$0xff]   ;;  %v4917_v22 = vld [vmem:[%s6661_s3 + $0x2c4] ss:$8 sps:$4 sm:$0xff]   ;;  %v4915_v23 = vld [vmem:[%s6661_s3 + $0x2c0] ss:$8 sps:$4 sm:$0xff]  }
 0x393   :  { %v4006_v27 = vmul.f32 -1.442695, %v1230_v25  ;;  %v4920_v25 = vld [vmem:[%s6661_s3 + $0x2b4] ss:$8 sps:$4 sm:$0xff]  }
 0x395   :  { %5232 = vpow2.f32 %v4006_v27  ;;  %v4923_v27 = vld [vmem:[%s6661_s3 + $0x2a4] ss:$8 sps:$4 sm:$0xff]  }
 0x396   :  { %v5227_v31 = vpop.eup %5226  ;;  %5234 = vtanh.f32 %v1214_v32  ;;  %v4926_v32 = vld [vmem:[%s6661_s3 + $0x294] ss:$8 sps:$4 sm:$0xff]  }
 0x397   :  { %v1248_v34 = vadd.f32 1.0, %v5227_v31  ;;  %v4921_v31 = vld [vmem:[%s6661_s3 + $0x2a0] ss:$8 sps:$4 sm:$0xff]  }
 0x399   :  { %5236 = vrcp.f32 %v1248_v34  ;;  %v4924_v34 = vld [vmem:[%s6661_s3 + $0x290] ss:$8 sps:$4 sm:$0xff]  }
 0x39a   :  { %v5229_v36 = vpop.eup %5228  ;;  %5238 = vtanh.f32 %v1218_v35  ;;  %v4927_v35 = vld [vmem:[%s6661_s3 + $0x280] ss:$8 sps:$4 sm:$0xff]  }
 0x39b   :  { %v1249_v47 = vadd.f32 1.0, %v5229_v36  ;;  %v4929_v36 = vld [vmem:[%s6661_s3 + $0x284] ss:$8 sps:$4 sm:$0xff]  }
 0x39d   :  { %5240 = vrcp.f32 %v1249_v47  ;;  %v4023_v47 = vld [vmem:[%s6665_s6 + $0x2] sm:$0x3] }
 0x39e   :  { %v5231_v38 = vpop.eup %5230  ;;  %5242 = vtanh.f32 %v1224_v39  ;;  %v1289_v39 = vrot.slane %v4023_v47, %v5643_v14 }
 0x39f   :  { %v1250_v40 = vadd.f32 1.0, %v5231_v38  ;;  %v5929_v38 = vrot.slane %v5743_v21, %v5637_v63 }
 0x3a1   :  { %5244 = vrcp.f32 %v1250_v40  ;;  %v5933_v40 = vrot.slane %v4023_v47, %v5637_v63  ;;  %v894_v21 = vadd.f32 %v5749_v28, %v5929_v38 }
 0x3a2   :  { %v5233_v42 = vpop.eup %5232  ;;  %5246 = vtanh.f32 %v1228_v41 }
 0x3a3   :  { %v1251_v43 = vadd.f32 1.0, %v5233_v42  ;;  %v5235_v44 = vpop.eup %5234 }
 0x3a5   :  { %5248 = vrcp.f32 %v1251_v43  ;;  %v890_v43 = vadd.f32 %v5747_v24, %v5929_v38 }
 0x3a6   :  { %v5237_v58 = vpop.eup %5236 }
 0x3a7   :  { %v5239_v45 = vpop.eup %5238  ;;  %v1260_v48 = vmul.f32 %v5237_v58, %v5235_v44 }
 0x3aa   :  { %v5241_v59 = vpop.eup %5240 }
 0x3ab   :  { %v1261_v49 = vmul.f32 %v5241_v59, %v5239_v45  ;;  %v5243_v53 = vpop.eup %5242 }
 0x3ad   :  { %v1283_v51 = vpack.c.bf16 %v1261_v49, %v1260_v48 }
 0x3ae   :  { %v5245_v54 = vpop.eup %5244 }
 0x3af   :  { %1409 = vmatmul.mubr.bf16.vlgmr.msra.gmra.mxu1 %v1283_v51  ;;  %v5247_v56 = vpop.eup %5246  ;;  %v1262_v61 = vmul.f32 %v5245_v54, %v5243_v53 }
 0x3b0   :  { %1418 = vmatprep.mubr.bf16.mxu1 %v5346_v1  ;;  %1703 = vmatpush1.bf16.msra.mxu1 %v4882_v50 }
 0x3b1   :  { %1704 = vmatprep.subr.bf16.mxu1 %v4887_v52 }
 0x3b2   :  { %v5249_v60 = vpop.eup %5248 }
 0x3b3   :  { %v1263_v62 = vmul.f32 %v5249_v60, %v5247_v56  ;;  %v900_v56 = vadd.f32 %v5759_v33, %v5929_v38 }
 0x3b4   :  { %1705 = vmatpush1.bf16.msra.mxu1 %v4885_v55 }
 0x3b5   :  { %v1284_v2 = vpack.c.bf16 %v1263_v62, %v1262_v61  ;;  %1706 = vmatprep.subr.bf16.mxu1 %v4890_v57 }
 0x3b7   :  { %1419 = vmatmul.mubr.bf16.gmra.mxu1 %v1284_v2 }
 0x3b8   :  { %1707 = vmatpush1.bf16.msra.mxu1 %v4888_v0 }
 0x3b9   :  { %1708 = vmatprep.subr.bf16.mxu1 %v4893_v3 }
 0x3bc   :  { %1709 = vmatpush1.bf16.msra.mxu1 %v4891_v4 }
 0x3bd   :  { %1710 = vmatprep.subr.bf16.mxu1 %v4896_v6 }
 0x3c0   :  { %1711 = vmatpush1.bf16.msra.mxu1 %v4894_v7 }
 0x3c1   :  { %1712 = vmatprep.subr.bf16.mxu1 %v4899_v8 }
 0x3c4   :  { %1713 = vmatpush1.bf16.msra.mxu1 %v4897_v9 }
 0x3c5   :  { %1714 = vmatprep.subr.bf16.mxu1 %v4902_v10  ;;  %v4936_v10 = vld [vmem:[%s6663_s5 + $0x174] ss:$8 sps:$4 sm:$0xff]  }
 0x3c6   :  { %1899 = vmatprep.subr.bf16.mxu0 %v4936_v10 }
 0x3c8   :  { %1715 = vmatpush1.bf16.msra.mxu1 %v4900_v11  ;;  %v4934_v11 = vld [vmem:[%s6663_s5 + $0x170] ss:$8 sps:$4 sm:$0xff]  }
 0x3c9   :  { %1716 = vmatprep.subr.bf16.mxu1 %v4905_v12  ;;  %1900 = vmatpush1.bf16.msra.mxu0 %v4934_v11  ;;  %v4939_v12 = vld [vmem:[%s6663_s5 + $0x164] ss:$8 sps:$4 sm:$0xff]  }
 0x3ca   :  { %1901 = vmatprep.subr.bf16.mxu0 %v4939_v12 }
 0x3cc   :  { %1717 = vmatpush1.bf16.msra.mxu1 %v4903_v13  ;;  %v4937_v13 = vld [vmem:[%s6663_s5 + $0x160] ss:$8 sps:$4 sm:$0xff]  }
 0x3cd   :  { %1718 = vmatprep.subr.bf16.mxu1 %v4908_v15  ;;  %1902 = vmatpush1.bf16.msra.mxu0 %v4937_v13  ;;  %v4942_v15 = vld [vmem:[%s6663_s5 + $0x154] ss:$8 sps:$4 sm:$0xff]  }
 0x3ce   :  { %1903 = vmatprep.subr.bf16.mxu0 %v4942_v15  ;;  %v4958_v15 = vld [vmem:[%s6661_s3 + $0x370] ss:$8 sps:$4 sm:$0xff]  }
 0x3d0   :  { %1719 = vmatpush2.bf16.msra.mxu1 %v4906_v16  ;;  %v4940_v16 = vld [vmem:[%s6663_s5 + $0x150] ss:$8 sps:$4 sm:$0xff]  }
 0x3d1   :  { %1720 = vmatprep.subr.bf16.mxu1 %v4911_v17  ;;  %1904 = vmatpush1.bf16.msra.mxu0 %v4940_v16  ;;  %v4945_v17 = vld [vmem:[%s6663_s5 + $0x144] ss:$8 sps:$4 sm:$0xff]  }
 0x3d2   :  { %1905 = vmatprep.subr.bf16.mxu0 %v4945_v17  ;;  %v4963_v17 = vld [vmem:[%s6661_s3 + $0x364] ss:$8 sps:$4 sm:$0xff]  }
 0x3d4   :  { %1721 = vmatpush2.bf16.msra.mxu1 %v4909_v18  ;;  %v4943_v18 = vld [vmem:[%s6663_s5 + $0x140] ss:$8 sps:$4 sm:$0xff]  }
 0x3d5   :  { %1722 = vmatprep.subr.bf16.mxu1 %v4914_v19  ;;  %1906 = vmatpush1.bf16.msra.mxu0 %v4943_v18  ;;  %v4948_v19 = vld [vmem:[%s6663_s5 + $0x134] ss:$8 sps:$4 sm:$0xff]  }
 0x3d6   :  { %1907 = vmatprep.subr.bf16.mxu0 %v4948_v19 }
 0x3d8   :  { %1723 = vmatpush2.bf16.msra.mxu1 %v4912_v20  ;;  %v4946_v20 = vld [vmem:[%s6663_s5 + $0x130] ss:$8 sps:$4 sm:$0xff]  }
 0x3d9   :  { %1724 = vmatprep.subr.bf16.mxu1 %v4917_v22  ;;  %1908 = vmatpush1.bf16.msra.mxu0 %v4946_v20  ;;  %v4951_v22 = vld [vmem:[%s6663_s5 + $0x124] ss:$8 sps:$4 sm:$0xff]   ;;  %v4961_v20 = vld [vmem:[%s6661_s3 + $0x360] ss:$8 sps:$4 sm:$0xff]  }
 0x3da   :  { %1909 = vmatprep.subr.bf16.mxu0 %v4951_v22 }
 0x3dc   :  { %1725 = vmatpush2.bf16.msra.mxu1 %v4915_v23  ;;  %v4949_v23 = vld [vmem:[%s6663_s5 + $0x120] ss:$8 sps:$4 sm:$0xff]  }
 0x3dd   :  { %1726 = vmatprep.subr.bf16.mxu1 %v4920_v25  ;;  %1910 = vmatpush1.bf16.msra.mxu0 %v4949_v23  ;;  %v4952_v25 = vld [vmem:[%s6663_s5 + $0x110] ss:$8 sps:$4 sm:$0xff]   ;;  %v4966_v23 = vld [vmem:[%s6661_s3 + $0x354] ss:$8 sps:$4 sm:$0xff]  }
 0x3e0   :  { %1727 = vmatpush2.bf16.msra.mxu1 %v4918_v26  ;;  %v4954_v26 = vld [vmem:[%s6663_s5 + $0x114] ss:$8 sps:$4 sm:$0xff]  }
 0x3e1   :  { %1728 = vmatprep.subr.bf16.mxu1 %v4923_v27  ;;  %v4957_v27 = vld [vmem:[%s6663_s5 + $0x104] ss:$8 sps:$4 sm:$0xff]   ;;  %1911 = vmatprep.subr.bf16.mxu0 %v4954_v26 }
 0x3e2   :  { %1912 = vmatpush1.bf16.msra.mxu0 %v4952_v25 }
 0x3e3   :  { %1913 = vmatprep.subr.bf16.mxu0 %v4957_v27 }
 0x3e4   :  { %1729 = vmatpush2.bf16.msra.mxu1 %v4921_v31  ;;  %v4955_v31 = vld [vmem:[%s6663_s5 + $0x100] ss:$8 sps:$4 sm:$0xff]  }
 0x3e5   :  { %1730 = vmatprep.subr.bf16.mxu1 %v4926_v32  ;;  %v4960_v32 = vld [vmem:[%s6661_s3 + $0x374] ss:$8 sps:$4 sm:$0xff]  }
 0x3e6   :  { %1914 = vmatpush1.bf16.msra.mxu0 %v4955_v31  ;;  %v4964_v31 = vld [vmem:[%s6661_s3 + $0x350] ss:$8 sps:$4 sm:$0xff]  }
 0x3e7   :  { %2280 = vmatprep.subr.bf16.mxu0 %v4960_v32 }
 0x3e8   :  { %1731 = vmatpush2.bf16.msra.mxu1 %v4924_v34 }
 0x3e9   :  { %1732 = vmatprep.subr.bf16.mxu1 %v4929_v36 }
 0x3ec   :  { %1733 = vmatpush2.bf16.msra.mxu1 %v4927_v35  ;;  %v4080_v35 = vld [vmem:[%s6664_s4 + $0x4] sm:$0x3] }
 0x3ed   :  { %v1539_v36 = vrot.slane %v4080_v35, %v5637_v63 }
 0x46f   :  { %v1410_v41 = vpop.f32.mrf.mxu1 }
 0x470   :  { %v1411_v44 = vadd.f32 %v1410_v41, %v1289_v39 }
 0x471   :  { %v1412_v42 = vpop.f32.mrf.mxu1 }
 0x472   :  { %v1413_v58 = vadd.f32 %v1412_v42, %v5933_v40  ;;  %v5943_v50 = vadd.f32 %v1411_v44, %v5752_v29 }
 0x473   :  { %v1414_v45 = vpop.f32.mrf.mxu1 }
 0x474   :  { %v5938_v59 = vadd.f32 %v1413_v58, %v890_v43  ;;  %v1415_v48 = vadd.f32 %v1414_v45, %v1289_v39 }
 0x475   :  { %v1416_v49 = vpop.f32.mrf.mxu1 }
 0x476   :  { %v5946_v51 = vadd.f32 %v1415_v48, %v5755_v30  ;;  %v1417_v52 = vadd.f32 %v1416_v49, %v5933_v40 }
 0x477   :  { %v1420_v24 = vpop.f32.mrf.mxu1 }
 0x478   :  { %v5949_v53 = vadd.f32 %v1417_v52, %v894_v21  ;;  %v1437_v54 = vpack.c.bf16 %v5946_v51, %v5943_v50  ;;  %v1421_v57 = vadd.f32 %v1420_v24, %v1289_v39 }
 0x479   :  { %v1422_v55 = vpop.f32.mrf.mxu1 }
 0x47a   :  { %v1423_v28 = vadd.f32 %v1422_v55, %v5933_v40  ;;  %4610 = vst [vmem:[#allocation2 + $0x8] sm:$0xff] %v1437_v54   ;;  %1734 = vmatprep.mubr.bf16.mxu1 %v1437_v54  ;;  %v5959_v61 = vadd.f32 %v1421_v57, %v5762_v37 }
 0x47b   :  { %v1424_v29 = vpop.f32.mrf.mxu1 }
 0x47c   :  { %v5956_v30 = vadd.f32 %v1423_v28, %v900_v56  ;;  %v1425_v60 = vadd.f32 %v1424_v29, %v1289_v39  ;;  %v1535_v56 = vrot.slane %v4080_v35, %v5643_v14  ;;  %v4969_v35 = vld [vmem:[%s6661_s3 + $0x344] ss:$8 sps:$4 sm:$0xff]  }
 0x47d   :  { %v6020_v34 = vpop.f32.mrf.mxu1 }
 0x47e   :  { %v5962_v62 = vadd.f32 %v1425_v60, %v5765_v46 }
 0x480   :  { %v1438_v0 = vpack.c.bf16 %v5962_v62, %v5959_v61 }
 0x481   :  { %v4930_v2 = vld [vmem:[#allocation2 + $0x4] sm:$0xfc]   ;;  %v4931_v33 = vld [vmem:[#allocation2 + $0xc] ss:$0 sps:$4 sm:$0x33]  }
 0x482   :  { %4611 = vst [vmem:[#allocation2 + $0x18] sm:$0xff] %v1438_v0   ;;  %v1517_v3 = vrot.slane %v4930_v2, 2  ;;  %v1518_v4 = vrot.slane %v4931_v33, 2 }
 0x484   :  { %v1519_v6 = vsel %vm1516_vm2, %v1517_v3, %v1518_v4 }
 0x485   :  { %1735 = vmatmul.mubr.bf16.vlgmr.msra.gmra.mxu1 %v1519_v6 }
 0x486   :  { %1744 = vmatprep.mubr.bf16.mxu1 %v1438_v0 }
 0x489   :  { %v4932_v7 = vld [vmem:[#allocation2 + $0x14] sm:$0xfc]   ;;  %v4933_v8 = vld [vmem:[#allocation2 + $0x1c] ss:$0 sps:$4 sm:$0x33]  }
 0x48a   :  { %v1522_v37 = vrot.slane %v4932_v7, 2  ;;  %v1523_v9 = vrot.slane %v4933_v8, 2 }
 0x48c   :  { %v1524_v46 = vsel %vm1516_vm2, %v1522_v37, %v1523_v9 }
 0x48d   :  { %1745 = vmatmul.mubr.bf16.gmra.mxu1 %v1524_v46 }
 0x48e   :  { %2509 = vmatprep.mubr.bf16.mxu1 %v5346_v1 }
 0x545   :  { %v1736_v47 = vpop.f32.mrf.mxu1 }
 0x546   :  { %v1737_v29 = vadd.f32 %v1736_v47, %v1535_v56  ;;  %v4972_v47 = vld [vmem:[%s6661_s3 + $0x334] ss:$8 sps:$4 sm:$0xff]  }
 0x547   :  { %v1738_v39 = vpop.f32.mrf.mxu1 }
 0x548   :  { %v1739_v41 = vadd.f32 %v1738_v39, %v1539_v36  ;;  %v4970_v39 = vld [vmem:[%s6661_s3 + $0x330] ss:$8 sps:$4 sm:$0xff]  }
 0x549   :  { %v1740_v42 = vpop.f32.mrf.mxu1 }
 0x54a   :  { %v4115_v43 = vmul.f32 -1.442695, %v1739_v41  ;;  %v1741_v0 = vadd.f32 %v1740_v42, %v1535_v56  ;;  %v4975_v41 = vld [vmem:[%s6661_s3 + $0x324] ss:$8 sps:$4 sm:$0xff]   ;;  %v4973_v42 = vld [vmem:[%s6661_s3 + $0x320] ss:$8 sps:$4 sm:$0xff]  }
 0x54b   :  { %v1742_v44 = vpop.f32.mrf.mxu1 }
 0x54c   :  { %5250 = vpow2.f32 %v4115_v43  ;;  %v1743_v58 = vadd.f32 %v1742_v44, %v1539_v36  ;;  %v4978_v43 = vld [vmem:[%s6661_s3 + $0x314] ss:$8 sps:$4 sm:$0xff]   ;;  %v4976_v44 = vld [vmem:[%s6661_s3 + $0x310] ss:$8 sps:$4 sm:$0xff]  }
 0x54d   :  { %v1746_v45 = vpop.f32.mrf.mxu1 }
 0x54e   :  { %v4116_v48 = vmul.f32 -1.442695, %v1743_v58  ;;  %v1747_v4 = vadd.f32 %v1746_v45, %v1535_v56  ;;  %v4981_v58 = vld [vmem:[%s6661_s3 + $0x304] ss:$8 sps:$4 sm:$0xff]   ;;  %v4979_v45 = vld [vmem:[%s6661_s3 + $0x300] ss:$8 sps:$4 sm:$0xff]  }
 0x54f   :  { %v1748_v49 = vpop.f32.mrf.mxu1 }
 0x550   :  { %5252 = vpow2.f32 %v4116_v48  ;;  %v1749_v21 = vadd.f32 %v1748_v49, %v1539_v36  ;;  %v4984_v48 = vld [vmem:[%s6661_s3 + $0x3f4] ss:$8 sps:$4 sm:$0xff]   ;;  %v4982_v49 = vld [vmem:[%s6661_s3 + $0x3f0] ss:$8 sps:$4 sm:$0xff]  }
 0x551   :  { %v1750_v52 = vpop.f32.mrf.mxu1 }
 0x552   :  { %v4117_v24 = vmul.f32 -1.442695, %v1749_v21  ;;  %v1751_v7 = vadd.f32 %v1750_v52, %v1535_v56  ;;  %v4987_v21 = vld [vmem:[%s6661_s3 + $0x3e4] ss:$8 sps:$4 sm:$0xff]   ;;  %v4985_v52 = vld [vmem:[%s6661_s3 + $0x3e0] ss:$8 sps:$4 sm:$0xff]  }
 0x553   :  { %v1752_v54 = vpop.f32.mrf.mxu1  ;;  %v4991_v56 = vld [vmem:[%s6661_s3 + $0x3c0] ss:$8 sps:$4 sm:$0xff]  }
 0x554   :  { %5254 = vpow2.f32 %v4117_v24  ;;  %v1753_v55 = vadd.f32 %v1752_v54, %v1539_v36  ;;  %v4967_v36 = vld [vmem:[%s6661_s3 + $0x340] ss:$8 sps:$4 sm:$0xff]   ;;  %v4990_v24 = vld [vmem:[%s6661_s3 + $0x3d4] ss:$8 sps:$4 sm:$0xff]   ;;  %v4988_v54 = vld [vmem:[%s6661_s3 + $0x3d0] ss:$8 sps:$4 sm:$0xff]  }
 0x556   :  { %v4118_v57 = vmul.f32 -1.442695, %v1753_v55  ;;  %v4993_v55 = vld [vmem:[%s6661_s3 + $0x3c4] ss:$8 sps:$4 sm:$0xff]  }
 0x558   :  { %5256 = vpow2.f32 %v4118_v57  ;;  %v4996_v57 = vld [vmem:[%s6661_s3 + $0x3b4] ss:$8 sps:$4 sm:$0xff]  }
 0x559   :  { %v5251_v28 = vpop.eup %5250  ;;  %5258 = vtanh.f32 %v1737_v29  ;;  %v4999_v29 = vld [vmem:[%s6661_s3 + $0x3a4] ss:$8 sps:$4 sm:$0xff]  }
 0x55a   :  { %v1771_v60 = vadd.f32 1.0, %v5251_v28  ;;  %v4994_v28 = vld [vmem:[%s6661_s3 + $0x3b0] ss:$8 sps:$4 sm:$0xff]  }
 0x55c   :  { %5260 = vrcp.f32 %v1771_v60  ;;  %v4997_v60 = vld [vmem:[%s6661_s3 + $0x3a0] ss:$8 sps:$4 sm:$0xff]  }
 0x55d   :  { %v5253_v2 = vpop.eup %5252  ;;  %5262 = vtanh.f32 %v1741_v0  ;;  %v5002_v0 = vld [vmem:[%s6661_s3 + $0x394] ss:$8 sps:$4 sm:$0xff]  }
 0x55e   :  { %v1772_v33 = vadd.f32 1.0, %v5253_v2  ;;  %v5000_v2 = vld [vmem:[%s6661_s3 + $0x390] ss:$8 sps:$4 sm:$0xff]  }
 0x560   :  { %5264 = vrcp.f32 %v1772_v33  ;;  %v5005_v33 = vld [vmem:[%s6661_s3 + $0x384] ss:$8 sps:$4 sm:$0xff]  }
 0x561   :  { %v5255_v3 = vpop.eup %5254  ;;  %5266 = vtanh.f32 %v1747_v4  ;;  %v4135_v4 = vld [vmem:[%s6665_s6 + $0x4] sm:$0x3] }
 0x562   :  { %v1773_v6 = vadd.f32 1.0, %v5255_v3  ;;  %v5003_v3 = vld [vmem:[%s6661_s3 + $0x380] ss:$8 sps:$4 sm:$0xff]  }
 0x564   :  { %5268 = vrcp.f32 %v1773_v6  ;;  %v1812_v6 = vrot.slane %v4135_v4, %v5643_v14 }
 0x565   :  { %v5257_v8 = vpop.eup %5256  ;;  %5270 = vtanh.f32 %v1751_v7  ;;  %v6126_v7 = vrot.slane %v4135_v4, %v5637_v63 }
 0x566   :  { %v1774_v37 = vadd.f32 1.0, %v5257_v8  ;;  %v5259_v9 = vpop.eup %5258 }
 0x568   :  { %5272 = vrcp.f32 %v1774_v37 }
 0x569   :  { %v5261_v46 = vpop.eup %5260 }
 0x56a   :  { %v5263_v10 = vpop.eup %5262  ;;  %v1783_v12 = vmul.f32 %v5261_v46, %v5259_v9 }
 0x56d   :  { %v5265_v11 = vpop.eup %5264 }
 0x56e   :  { %v1784_v13 = vmul.f32 %v5265_v11, %v5263_v10  ;;  %v5267_v18 = vpop.eup %5266 }
 0x570   :  { %v1806_v16 = vpack.c.bf16 %v1784_v13, %v1783_v12 }
 0x571   :  { %v5269_v19 = vpop.eup %5268 }
 0x572   :  { %1932 = vmatmul.mubr.bf16.vlgmr.msra.gmra.mxu0 %v1806_v16  ;;  %v5271_v22 = vpop.eup %5270  ;;  %v1785_v26 = vmul.f32 %v5269_v19, %v5267_v18 }
 0x573   :  { %1941 = vmatprep.mubr.bf16.mxu0 %v5346_v1  ;;  %2281 = vmatpush1.bf16.msra.mxu0 %v4958_v15 }
 0x574   :  { %2282 = vmatprep.subr.bf16.mxu0 %v4963_v17 }
 0x575   :  { %v5273_v25 = vpop.eup %5272 }
 0x576   :  { %v1786_v27 = vmul.f32 %v5273_v25, %v5271_v22 }
 0x577   :  { %2283 = vmatpush1.bf16.msra.mxu0 %v4961_v20 }
 0x578   :  { %v1807_v32 = vpack.c.bf16 %v1786_v27, %v1785_v26  ;;  %2284 = vmatprep.subr.bf16.mxu0 %v4966_v23 }
 0x57a   :  { %1942 = vmatmul.mubr.bf16.gmra.mxu0 %v1807_v32 }
 0x57b   :  { %2285 = vmatpush1.bf16.msra.mxu0 %v4964_v31 }
 0x57c   :  { %2286 = vmatprep.subr.bf16.mxu0 %v4969_v35 }
 0x57f   :  { %2287 = vmatpush1.bf16.msra.mxu0 %v4967_v36 }
 0x580   :  { %2288 = vmatprep.subr.bf16.mxu0 %v4972_v47 }
 0x583   :  { %2289 = vmatpush1.bf16.msra.mxu0 %v4970_v39 }
 0x584   :  { %2290 = vmatprep.subr.bf16.mxu0 %v4975_v41 }
 0x587   :  { %2291 = vmatpush1.bf16.msra.mxu0 %v4973_v42 }
 0x588   :  { %2292 = vmatprep.subr.bf16.mxu0 %v4978_v43 }
 0x58b   :  { %2293 = vmatpush1.bf16.msra.mxu0 %v4976_v44 }
 0x58c   :  { %2294 = vmatprep.subr.bf16.mxu0 %v4981_v58 }
 0x58f   :  { %2295 = vmatpush1.bf16.msra.mxu0 %v4979_v45 }
 0x590   :  { %2296 = vmatprep.subr.bf16.mxu0 %v4984_v48 }
 0x593   :  { %2297 = vmatpush2.bf16.msra.mxu0 %v4982_v49 }
 0x594   :  { %2298 = vmatprep.subr.bf16.mxu0 %v4987_v21 }
 0x597   :  { %2299 = vmatpush2.bf16.msra.mxu0 %v4985_v52 }
 0x598   :  { %2300 = vmatprep.subr.bf16.mxu0 %v4990_v24 }
 0x59b   :  { %2301 = vmatpush2.bf16.msra.mxu0 %v4988_v54 }
 0x59c   :  { %2302 = vmatprep.subr.bf16.mxu0 %v4993_v55 }
 0x59f   :  { %2303 = vmatpush2.bf16.msra.mxu0 %v4991_v56 }
 0x5a0   :  { %2304 = vmatprep.subr.bf16.mxu0 %v4996_v57 }
 0x5a3   :  { %2305 = vmatpush2.bf16.msra.mxu0 %v4994_v28 }
 0x5a4   :  { %2306 = vmatprep.subr.bf16.mxu0 %v4999_v29 }
 0x5a7   :  { %2307 = vmatpush2.bf16.msra.mxu0 %v4997_v60 }
 0x5a8   :  { %2308 = vmatprep.subr.bf16.mxu0 %v5002_v0 }
 0x5ab   :  { %2309 = vmatpush2.bf16.msra.mxu0 %v5000_v2 }
 0x5ac   :  { %2310 = vmatprep.subr.bf16.mxu0 %v5005_v33 }
 0x5af   :  { %2311 = vmatpush2.bf16.msra.mxu0 %v5003_v3 }
 0x632   :  { %v1933_v8 = vpop.f32.mrf.mxu0 }
 0x633   :  { %v1934_v9 = vadd.f32 %v1933_v8, %v1812_v6 }
 0x634   :  { %v1935_v37 = vpop.f32.mrf.mxu0 }
 0x635   :  { %v1936_v46 = vadd.f32 %v1935_v37, %v6126_v7  ;;  %v6133_v15 = vadd.f32 %v1934_v9, %v5943_v50 }
 0x636   :  { %v1937_v10 = vpop.f32.mrf.mxu0 }
 0x637   :  { %v6130_v11 = vadd.f32 %v1936_v46, %v5938_v59  ;;  %v1938_v12 = vadd.f32 %v1937_v10, %v1812_v6 }
 0x638   :  { %v1939_v13 = vpop.f32.mrf.mxu0 }
 0x639   :  { %v6136_v16 = vadd.f32 %v1938_v12, %v5946_v51  ;;  %v1940_v17 = vadd.f32 %v1939_v13, %v6126_v7 }
 0x63a   :  { %v1943_v18 = vpop.f32.mrf.mxu0 }
 0x63b   :  { %v1960_v19 = vpack.c.bf16 %v6136_v16, %v6133_v15  ;;  %v6142_v20 = vadd.f32 %v1940_v17, %v5949_v53  ;;  %v1944_v25 = vadd.f32 %v1943_v18, %v1812_v6 }
 0x63c   :  { %v1945_v22 = vpop.f32.mrf.mxu0 }
 0x63d   :  { %4612 = vst [vmem:[#allocation2 + $0x8] sm:$0xff] %v1960_v19   ;;  %v2003_v59 = vshrl.u32 %v1960_v19, 16  ;;  %v2006_v23 = vshll.u32 %v1960_v19, 16  ;;  %v1946_v50 = vadd.f32 %v1945_v22, %v6126_v7  ;;  %v6149_v35 = vadd.f32 %v1944_v25, %v5959_v61  ;;  %v5012_v25 = vld [vmem:[%s6663_s5 + $0x1f4] ss:$8 sps:$4 sm:$0xff]  }
 0x63e   :  { %v1947_v26 = vpop.f32.mrf.mxu0  ;;  %2477 = vmatprep.subr.bf16.mxu1 %v5012_v25 }
 0x63f   :  { %v2005_v27 = vrot.slane %v2003_v59, 4  ;;  %v2008_v51 = vrot.slane %v2006_v23, 5  ;;  %v6146_v31 = vadd.f32 %v1946_v50, %v5956_v30  ;;  %v1948_v32 = vadd.f32 %v1947_v26, %v1812_v6  ;;  %v5010_v50 = vld [vmem:[%s6663_s5 + $0x1f0] ss:$8 sps:$4 sm:$0xff]   ;;  %v5015_v26 = vld [vmem:[%s6663_s5 + $0x1e4] ss:$8 sps:$4 sm:$0xff]  }
 0x640   :  { %2478 = vmatpush1.bf16.msra.mxu1 %v5010_v50 }
 0x641   :  { %v6152_v53 = vadd.f32 %v1948_v32, %v5962_v62  ;;  %v2009_v36 = vor.u32 %v2008_v51, %v2005_v27  ;;  %v5013_v27 = vld [vmem:[%s6663_s5 + $0x1e0] ss:$8 sps:$4 sm:$0xff]   ;;  %2479 = vmatprep.subr.bf16.mxu1 %v5015_v26  ;;  %v5018_v51 = vld [vmem:[%s6663_s5 + $0x1d4] ss:$8 sps:$4 sm:$0xff]   ;;  %v5016_v32 = vld [vmem:[%s6663_s5 + $0x1d0] ss:$8 sps:$4 sm:$0xff]  }
 0x643   :  { %v1961_v47 = vpack.c.bf16 %v6152_v53, %v6149_v35  ;;  %v2071_v39 = vshrl.u32 %v2009_v36, 16  ;;  %v2074_v41 = vshll.u32 %v2009_v36, 16  ;;  %v5021_v36 = vld [vmem:[%s6663_s5 + $0x1c4] ss:$8 sps:$4 sm:$0xff]  }
 0x644   :  { %v5006_v42 = vld [vmem:[#allocation2 + $0x4] sm:$0xf8]   ;;  %v5007_v45 = vld [vmem:[#allocation2 + $0xc] ss:$0 sps:$4 sm:$0xff]   ;;  %2480 = vmatpush1.bf16.msra.mxu1 %v5013_v27 }
 0x645   :  { %4613 = vst [vmem:[#allocation2 + $0x18] sm:$0xff] %v1961_v47   ;;  %v2011_v43 = vshrl.u32 %v1961_v47, 16  ;;  %v2014_v44 = vshll.u32 %v1961_v47, 16  ;;  %v2073_v58 = vrot.slane %v2071_v39, 3  ;;  %v2076_v30 = vrot.slane %v2074_v41, 4  ;;  %2481 = vmatprep.subr.bf16.mxu1 %v5018_v51 }
 0x646   :  { %v2054_v48 = vshrl.u32 %v5006_v42, 16  ;;  %v2057_v49 = vshll.u32 %v5006_v42, 16  ;;  %v2062_v62 = vshrl.u32 %v5007_v45, 16  ;;  %v2065_v55 = vshll.u32 %v5007_v45, 16  ;;  %v5019_v47 = vld [vmem:[%s6663_s5 + $0x1c0] ss:$8 sps:$4 sm:$0xff]  }
 0x647   :  { %v2013_v61 = vrot.slane %v2011_v43, 4  ;;  %v2016_v21 = vrot.slane %v2014_v44, 5  ;;  %v2077_v52 = vor.u32 %v2076_v30, %v2073_v58  ;;  %v5024_v39 = vld [vmem:[%s6663_s5 + $0x1b4] ss:$8 sps:$4 sm:$0xff]   ;;  %v5022_v41 = vld [vmem:[%s6663_s5 + $0x1b0] ss:$8 sps:$4 sm:$0xff]  }
 0x648   :  { %v2056_v24 = vrot.slane %v2054_v48, 3  ;;  %v2059_v54 = vrot.slane %v2057_v49, 4  ;;  %v2064_v56 = vrot.slane %v2062_v62, 3  ;;  %v2067_v29 = vrot.slane %v2065_v55, 4  ;;  %2482 = vmatpush1.bf16.msra.mxu1 %v5016_v32  ;;  %v5027_v42 = vld [vmem:[%s6663_s5 + $0x1a4] ss:$8 sps:$4 sm:$0xff]   ;;  %v6210_v49 = vpop.f32.mrf.mxu0 }
 0x649   :  { %2312 = vmatprep.mubr.bf16.mxu0 %v2077_v52  ;;  %v2017_v57 = vor.u32 %v2016_v21, %v2013_v61  ;;  %2483 = vmatprep.subr.bf16.mxu1 %v5021_v36  ;;  %v5025_v43 = vld [vmem:[%s6663_s5 + $0x1a0] ss:$8 sps:$4 sm:$0xff]   ;;  %v5028_v44 = vld [vmem:[%s6663_s5 + $0x190] ss:$8 sps:$4 sm:$0xff]   ;;  %v5030_v58 = vld [vmem:[%s6663_s5 + $0x194] ss:$8 sps:$4 sm:$0xff]  }
 0x64a   :  { %v2060_v28 = vor.u32 %v2059_v54, %v2056_v24  ;;  %v2068_v2 = vor.u32 %v2067_v29, %v2064_v56  ;;  %v5033_v30 = vld [vmem:[%s6663_s5 + $0x184] ss:$8 sps:$4 sm:$0xff]   ;;  %v5031_v45 = vld [vmem:[%s6663_s5 + $0x180] ss:$8 sps:$4 sm:$0xff]   ;;  %v5036_v48 = vld [vmem:[%s6661_s3 + $0x474] ss:$8 sps:$4 sm:$0xff]  }
 0x64b   :  { %v2097_v60 = vshrl.u32 %v2017_v57, 16  ;;  %v2100_v0 = vshll.u32 %v2017_v57, 16  ;;  %v4192_v61 = vld [vmem:[%s6664_s4 + $0x6] sm:$0x3]  ;;  %v5034_v36 = vld [vmem:[%s6661_s3 + $0x470] ss:$8 sps:$4 sm:$0xff]  }
 0x64c   :  { %v5008_v33 = vld [vmem:[#allocation2 + $0x14] sm:$0xf8]   ;;  %v5009_v6 = vld [vmem:[#allocation2 + $0x1c] ss:$0 sps:$4 sm:$0xff]   ;;  %v2069_v8 = vsel %vm132_vm0, %v2060_v28, %v2068_v2  ;;  %2484 = vmatpush1.bf16.msra.mxu1 %v5019_v47  ;;  %v2117_v21 = vrot.slane %v4192_v61, %v5637_v63 }
 0x64d   :  { %v2099_v3 = vrot.slane %v2097_v60, 3  ;;  %v2102_v4 = vrot.slane %v2100_v0, 4  ;;  %v2080_v37 = vshrl.u32 %v5008_v33, 16  ;;  %v2083_v9 = vshll.u32 %v5008_v33, 16  ;;  %2313 = vmatmul.mubr.bf16.vlgmr.msra.gmra.mxu0 %v2069_v8  ;;  %2485 = vmatprep.subr.bf16.mxu1 %v5024_v39  ;;  %v5039_v39 = vld [vmem:[%s6661_s3 + $0x464] ss:$8 sps:$4 sm:$0xff]  }
 0x64e   :  { %v2088_v10 = vshrl.u32 %v5009_v6, 16  ;;  %v2091_v12 = vshll.u32 %v5009_v6, 16  ;;  %v2113_v6 = vrot.slane %v4192_v61, %v5643_v14  ;;  %v5040_v61 = vld [vmem:[%s6661_s3 + $0x450] ss:$8 sps:$4 sm:$0xff]  }
 0x64f   :  { %v2103_v46 = vor.u32 %v2102_v4, %v2099_v3  ;;  %v2082_v13 = vrot.slane %v2080_v37, 3  ;;  %v2085_v17 = vrot.slane %v2083_v9, 4 }
 0x650   :  { %v2090_v18 = vrot.slane %v2088_v10, 3  ;;  %v2093_v19 = vrot.slane %v2091_v12, 4  ;;  %2486 = vmatpush1.bf16.msra.mxu1 %v5022_v41 }
 0x651   :  { %2322 = vmatprep.mubr.bf16.mxu0 %v2103_v46  ;;  %v2086_v22 = vor.u32 %v2085_v17, %v2082_v13  ;;  %2487 = vmatprep.subr.bf16.mxu1 %v5027_v42 }
 0x652   :  { %v2094_v59 = vor.u32 %v2093_v19, %v2090_v18 }
 0x654   :  { %v2095_v23 = vsel %vm132_vm0, %v2086_v22, %v2094_v59  ;;  %2488 = vmatpush1.bf16.msra.mxu1 %v5025_v43  ;;  %v5037_v43 = vld [vmem:[%s6661_s3 + $0x460] ss:$8 sps:$4 sm:$0xff]  }
 0x655   :  { %2323 = vmatmul.mubr.bf16.gmra.mxu0 %v2095_v23  ;;  %2489 = vmatprep.subr.bf16.mxu1 %v5030_v58  ;;  %v5042_v58 = vld [vmem:[%s6661_s3 + $0x454] ss:$8 sps:$4 sm:$0xff]  }
 0x656   :  { %3031 = vmatprep.mubr.bf16.mxu0 %v5346_v1 }
 0x658   :  { %2490 = vmatpush1.bf16.msra.mxu1 %v5028_v44 }
 0x659   :  { %2491 = vmatprep.subr.bf16.mxu1 %v5033_v30 }
 0x65c   :  { %2492 = vmatpush1.bf16.msra.mxu1 %v5031_v45 }
 0x65d   :  { %2802 = vmatprep.subr.bf16.mxu1 %v5036_v48 }
 0x70d   :  { %v2314_v52 = vpop.f32.mrf.mxu0 }
 0x70e   :  { %v2315_v9 = vadd.f32 %v2314_v52, %v2113_v6  ;;  %v5045_v52 = vld [vmem:[%s6661_s3 + $0x444] ss:$8 sps:$4 sm:$0xff]  }
 0x70f   :  { %v2316_v62 = vpop.f32.mrf.mxu0 }
 0x710   :  { %v2317_v24 = vadd.f32 %v2316_v62, %v2117_v21  ;;  %v5043_v62 = vld [vmem:[%s6661_s3 + $0x440] ss:$8 sps:$4 sm:$0xff]  }
 0x711   :  { %v2318_v54 = vpop.f32.mrf.mxu0 }
 0x712   :  { %v4225_v55 = vmul.f32 -1.442695, %v2317_v24  ;;  %v2319_v10 = vadd.f32 %v2318_v54, %v2113_v6  ;;  %v5048_v24 = vld [vmem:[%s6661_s3 + $0x434] ss:$8 sps:$4 sm:$0xff]   ;;  %v5046_v54 = vld [vmem:[%s6661_s3 + $0x430] ss:$8 sps:$4 sm:$0xff]  }
 0x713   :  { %v2320_v56 = vpop.f32.mrf.mxu0 }
 0x714   :  { %5274 = vpow2.f32 %v4225_v55  ;;  %v2321_v57 = vadd.f32 %v2320_v56, %v2117_v21  ;;  %v5051_v55 = vld [vmem:[%s6661_s3 + $0x424] ss:$8 sps:$4 sm:$0xff]   ;;  %v5049_v56 = vld [vmem:[%s6661_s3 + $0x420] ss:$8 sps:$4 sm:$0xff]  }
 0x715   :  { %v2324_v28 = vpop.f32.mrf.mxu0 }
 0x716   :  { %v4226_v29 = vmul.f32 -1.442695, %v2321_v57  ;;  %v2325_v18 = vadd.f32 %v2324_v28, %v2113_v6  ;;  %v5054_v57 = vld [vmem:[%s6661_s3 + $0x414] ss:$8 sps:$4 sm:$0xff]   ;;  %v5052_v28 = vld [vmem:[%s6661_s3 + $0x410] ss:$8 sps:$4 sm:$0xff]  }
 0x717   :  { %v2326_v60 = vpop.f32.mrf.mxu0 }
 0x718   :  { %5276 = vpow2.f32 %v4226_v29  ;;  %v2327_v0 = vadd.f32 %v2326_v60, %v2117_v21  ;;  %v5057_v29 = vld [vmem:[%s6661_s3 + $0x404] ss:$8 sps:$4 sm:$0xff]   ;;  %v5055_v60 = vld [vmem:[%s6661_s3 + $0x400] ss:$8 sps:$4 sm:$0xff]  }
 0x719   :  { %v2328_v2 = vpop.f32.mrf.mxu0 }
 0x71a   :  { %v4227_v33 = vmul.f32 -1.442695, %v2327_v0  ;;  %v2329_v22 = vadd.f32 %v2328_v2, %v2113_v6  ;;  %v5060_v0 = vld [vmem:[%s6661_s3 + $0x4f4] ss:$8 sps:$4 sm:$0xff]   ;;  %v5058_v2 = vld [vmem:[%s6661_s3 + $0x4f0] ss:$8 sps:$4 sm:$0xff]  }
 0x71b   :  { %v2330_v3 = vpop.f32.mrf.mxu0  ;;  %v5064_v6 = vld [vmem:[%s6661_s3 + $0x4d0] ss:$8 sps:$4 sm:$0xff]  }
 0x71c   :  { %5278 = vpow2.f32 %v4227_v33  ;;  %v2331_v4 = vadd.f32 %v2330_v3, %v2117_v21  ;;  %v5063_v33 = vld [vmem:[%s6661_s3 + $0x4e4] ss:$8 sps:$4 sm:$0xff]   ;;  %v5061_v3 = vld [vmem:[%s6661_s3 + $0x4e0] ss:$8 sps:$4 sm:$0xff]  }
 0x71e   :  { %v4228_v8 = vmul.f32 -1.442695, %v2331_v4  ;;  %v5066_v4 = vld [vmem:[%s6661_s3 + $0x4d4] ss:$8 sps:$4 sm:$0xff]  }
 0x720   :  { %5280 = vpow2.f32 %v4228_v8  ;;  %v5069_v8 = vld [vmem:[%s6661_s3 + $0x4c4] ss:$8 sps:$4 sm:$0xff]  }
 0x721   :  { %v5275_v37 = vpop.eup %5274  ;;  %5282 = vtanh.f32 %v2315_v9  ;;  %v5072_v9 = vld [vmem:[%s6661_s3 + $0x4b4] ss:$8 sps:$4 sm:$0xff]  }
 0x722   :  { %v2349_v46 = vadd.f32 1.0, %v5275_v37  ;;  %v5067_v37 = vld [vmem:[%s6661_s3 + $0x4c0] ss:$8 sps:$4 sm:$0xff]  }
 0x724   :  { %5284 = vrcp.f32 %v2349_v46  ;;  %v5070_v46 = vld [vmem:[%s6661_s3 + $0x4b0] ss:$8 sps:$4 sm:$0xff]  }
 0x725   :  { %v5277_v12 = vpop.eup %5276  ;;  %5286 = vtanh.f32 %v2319_v10  ;;  %v5075_v10 = vld [vmem:[%s6661_s3 + $0x4a4] ss:$8 sps:$4 sm:$0xff]  }
 0x726   :  { %v2350_v13 = vadd.f32 1.0, %v5277_v12  ;;  %v5073_v12 = vld [vmem:[%s6661_s3 + $0x4a0] ss:$8 sps:$4 sm:$0xff]  }
 0x728   :  { %5288 = vrcp.f32 %v2350_v13  ;;  %v5078_v13 = vld [vmem:[%s6661_s3 + $0x494] ss:$8 sps:$4 sm:$0xff]  }
 0x729   :  { %v5279_v17 = vpop.eup %5278  ;;  %5290 = vtanh.f32 %v2325_v18  ;;  %v5079_v18 = vld [vmem:[%s6661_s3 + $0x480] ss:$8 sps:$4 sm:$0xff]  }
 0x72a   :  { %v2351_v19 = vadd.f32 1.0, %v5279_v17  ;;  %v5076_v17 = vld [vmem:[%s6661_s3 + $0x490] ss:$8 sps:$4 sm:$0xff]  }
 0x72c   :  { %5292 = vrcp.f32 %v2351_v19  ;;  %v5081_v19 = vld [vmem:[%s6661_s3 + $0x484] ss:$8 sps:$4 sm:$0xff]  }
 0x72d   :  { %v5281_v59 = vpop.eup %5280  ;;  %5294 = vtanh.f32 %v2329_v22  ;;  %v4245_v22 = vld [vmem:[%s6665_s6 + $0x6] sm:$0x3] }
 0x72e   :  { %v2352_v23 = vadd.f32 1.0, %v5281_v59  ;;  %v5283_v25 = vpop.eup %5282  ;;  %v2390_v59 = vrot.slane %v4245_v22, %v5643_v14 }
 0x730   :  { %5296 = vrcp.f32 %v2352_v23  ;;  %v6316_v23 = vrot.slane %v4245_v22, %v5637_v63 }
 0x731   :  { %v5285_v50 = vpop.eup %5284 }
 0x732   :  { %v5287_v26 = vpop.eup %5286  ;;  %v2361_v51 = vmul.f32 %v5285_v50, %v5283_v25 }
 0x735   :  { %v5289_v27 = vpop.eup %5288 }
 0x736   :  { %v2362_v32 = vmul.f32 %v5289_v27, %v5287_v26  ;;  %v5291_v41 = vpop.eup %5290 }
 0x738   :  { %v2384_v47 = vpack.c.bf16 %v2362_v32, %v2361_v51 }
 0x739   :  { %v5293_v42 = vpop.eup %5292 }
 0x73a   :  { %2510 = vmatmul.mubr.bf16.vlgmr.msra.gmra.mxu1 %v2384_v47  ;;  %v5295_v44 = vpop.eup %5294  ;;  %v2363_v45 = vmul.f32 %v5293_v42, %v5291_v41 }
 0x73b   :  { %2519 = vmatprep.mubr.bf16.mxu1 %v5346_v1  ;;  %2803 = vmatpush1.bf16.msra.mxu1 %v5034_v36 }
 0x73c   :  { %2804 = vmatprep.subr.bf16.mxu1 %v5039_v39 }
 0x73d   :  { %v5297_v30 = vpop.eup %5296 }
 0x73e   :  { %v2364_v48 = vmul.f32 %v5297_v30, %v5295_v44 }
 0x73f   :  { %2805 = vmatpush1.bf16.msra.mxu1 %v5037_v43 }
 0x740   :  { %v2385_v21 = vpack.c.bf16 %v2364_v48, %v2363_v45  ;;  %2806 = vmatprep.subr.bf16.mxu1 %v5042_v58 }
 0x742   :  { %2520 = vmatmul.mubr.bf16.gmra.mxu1 %v2385_v21 }
 0x743   :  { %2807 = vmatpush1.bf16.msra.mxu1 %v5040_v61 }
 0x744   :  { %2808 = vmatprep.subr.bf16.mxu1 %v5045_v52 }
 0x747   :  { %2809 = vmatpush1.bf16.msra.mxu1 %v5043_v62 }
 0x748   :  { %2810 = vmatprep.subr.bf16.mxu1 %v5048_v24 }
 0x74b   :  { %2811 = vmatpush1.bf16.msra.mxu1 %v5046_v54 }
 0x74c   :  { %2812 = vmatprep.subr.bf16.mxu1 %v5051_v55 }
 0x74f   :  { %2813 = vmatpush1.bf16.msra.mxu1 %v5049_v56 }
 0x750   :  { %2814 = vmatprep.subr.bf16.mxu1 %v5054_v57 }
 0x753   :  { %2815 = vmatpush1.bf16.msra.mxu1 %v5052_v28 }
 0x754   :  { %2816 = vmatprep.subr.bf16.mxu1 %v5057_v29  ;;  %v5086_v29 = vld [vmem:[%s6663_s5 + $0x270] ss:$8 sps:$4 sm:$0xff]  }
 0x757   :  { %2817 = vmatpush1.bf16.msra.mxu1 %v5055_v60  ;;  %v5091_v60 = vld [vmem:[%s6663_s5 + $0x264] ss:$8 sps:$4 sm:$0xff]  }
 0x758   :  { %2818 = vmatprep.subr.bf16.mxu1 %v5060_v0  ;;  %v5089_v0 = vld [vmem:[%s6663_s5 + $0x260] ss:$8 sps:$4 sm:$0xff]  }
 0x75b   :  { %2819 = vmatpush2.bf16.msra.mxu1 %v5058_v2  ;;  %v5094_v2 = vld [vmem:[%s6663_s5 + $0x254] ss:$8 sps:$4 sm:$0xff]  }
 0x75c   :  { %2820 = vmatprep.subr.bf16.mxu1 %v5063_v33  ;;  %v5092_v33 = vld [vmem:[%s6663_s5 + $0x250] ss:$8 sps:$4 sm:$0xff]  }
 0x75f   :  { %2821 = vmatpush2.bf16.msra.mxu1 %v5061_v3  ;;  %v5097_v3 = vld [vmem:[%s6663_s5 + $0x244] ss:$8 sps:$4 sm:$0xff]  }
 0x760   :  { %2822 = vmatprep.subr.bf16.mxu1 %v5066_v4  ;;  %v5095_v4 = vld [vmem:[%s6663_s5 + $0x240] ss:$8 sps:$4 sm:$0xff]  }
 0x763   :  { %2823 = vmatpush2.bf16.msra.mxu1 %v5064_v6  ;;  %v5100_v6 = vld [vmem:[%s6663_s5 + $0x234] ss:$8 sps:$4 sm:$0xff]  }
 0x764   :  { %2824 = vmatprep.subr.bf16.mxu1 %v5069_v8  ;;  %v5098_v8 = vld [vmem:[%s6663_s5 + $0x230] ss:$8 sps:$4 sm:$0xff]  }
 0x767   :  { %2825 = vmatpush2.bf16.msra.mxu1 %v5067_v37  ;;  %v5103_v37 = vld [vmem:[%s6663_s5 + $0x224] ss:$8 sps:$4 sm:$0xff]  }
 0x768   :  { %2826 = vmatprep.subr.bf16.mxu1 %v5072_v9  ;;  %v5101_v9 = vld [vmem:[%s6663_s5 + $0x220] ss:$8 sps:$4 sm:$0xff]  }
 0x76b   :  { %2827 = vmatpush2.bf16.msra.mxu1 %v5070_v46  ;;  %v5104_v46 = vld [vmem:[%s6663_s5 + $0x210] ss:$8 sps:$4 sm:$0xff]  }
 0x76c   :  { %2828 = vmatprep.subr.bf16.mxu1 %v5075_v10  ;;  %v5106_v10 = vld [vmem:[%s6663_s5 + $0x214] ss:$8 sps:$4 sm:$0xff]  }
 0x76f   :  { %2829 = vmatpush2.bf16.msra.mxu1 %v5073_v12  ;;  %v5109_v12 = vld [vmem:[%s6663_s5 + $0x204] ss:$8 sps:$4 sm:$0xff]  }
 0x770   :  { %2830 = vmatprep.subr.bf16.mxu1 %v5078_v13  ;;  %v5107_v13 = vld [vmem:[%s6663_s5 + $0x200] ss:$8 sps:$4 sm:$0xff]  }
 0x773   :  { %2831 = vmatpush2.bf16.msra.mxu1 %v5076_v17  ;;  %v5112_v17 = vld [vmem:[%s6661_s3 + $0x574] ss:$8 sps:$4 sm:$0xff]  }
 0x774   :  { %2832 = vmatprep.subr.bf16.mxu1 %v5081_v19  ;;  %v4302_v19 = vld [vmem:[%s6664_s4 + $0x8] sm:$0x3] }
 0x775   :  { %v2639_v22 = vrot.slane %v4302_v19, %v5637_v63 }
 0x777   :  { %2833 = vmatpush2.bf16.msra.mxu1 %v5079_v18 }
 0x7fa   :  { %v2511_v25 = vpop.f32.mrf.mxu1 }
 0x7fb   :  { %v2512_v26 = vadd.f32 %v2511_v25, %v2390_v59 }
 0x7fc   :  { %v2513_v50 = vpop.f32.mrf.mxu1 }
 0x7fd   :  { %v2514_v27 = vadd.f32 %v2513_v50, %v6316_v23  ;;  %v6323_v39 = vadd.f32 %v2512_v26, %v6133_v15 }
 0x7fe   :  { %v2515_v51 = vpop.f32.mrf.mxu1 }
 0x7ff   :  { %v6320_v32 = vadd.f32 %v2514_v27, %v6130_v11  ;;  %v2516_v36 = vadd.f32 %v2515_v51, %v2390_v59 }
 0x800   :  { %v2517_v47 = vpop.f32.mrf.mxu1 }
 0x801   :  { %v6326_v41 = vadd.f32 %v2516_v36, %v6136_v16  ;;  %v2518_v42 = vadd.f32 %v2517_v47, %v6316_v23 }
 0x802   :  { %v2521_v43 = vpop.f32.mrf.mxu1 }
 0x803   :  { %v6330_v44 = vadd.f32 %v2518_v42, %v6142_v20  ;;  %v2538_v58 = vpack.c.bf16 %v6326_v41, %v6323_v39  ;;  %v2522_v11 = vadd.f32 %v2521_v43, %v2390_v59 }
 0x804   :  { %v2523_v30 = vpop.f32.mrf.mxu1 }
 0x805   :  { %v2524_v45 = vadd.f32 %v2523_v30, %v6316_v23  ;;  %4614 = vst [vmem:[#allocation2 + $0x8] sm:$0xff] %v2538_v58   ;;  %2834 = vmatprep.mubr.bf16.mxu1 %v2538_v58  ;;  %v6339_v61 = vadd.f32 %v2522_v11, %v6149_v35 }
 0x806   :  { %v2525_v15 = vpop.f32.mrf.mxu1 }
 0x807   :  { %v6336_v48 = vadd.f32 %v2524_v45, %v6146_v31  ;;  %v2526_v16 = vadd.f32 %v2525_v15, %v2390_v59 }
 0x808   :  { %v6400_v18 = vpop.f32.mrf.mxu1 }
 0x809   :  { %v6342_v20 = vadd.f32 %v2526_v16, %v6152_v53  ;;  %v5088_v53 = vld [vmem:[%s6663_s5 + $0x274] ss:$8 sps:$4 sm:$0xff]   ;;  %v2635_v16 = vrot.slane %v4302_v19, %v5643_v14 }
 0x80a   :  { %2999 = vmatprep.subr.bf16.mxu0 %v5088_v53 }
 0x80b   :  { %v2539_v21 = vpack.c.bf16 %v6342_v20, %v6339_v61  ;;  %3000 = vmatpush1.bf16.msra.mxu0 %v5086_v29 }
 0x80c   :  { %v5082_v52 = vld [vmem:[#allocation2 + $0x4] sm:$0xf8]   ;;  %v5083_v62 = vld [vmem:[#allocation2 + $0xc] ss:$0 sps:$4 sm:$0x77]   ;;  %3001 = vmatprep.subr.bf16.mxu0 %v5091_v60 }
 0x80d   :  { %4615 = vst [vmem:[#allocation2 + $0x18] sm:$0xff] %v2539_v21   ;;  %v2617_v24 = vrot.slane %v5082_v52, 3  ;;  %v2618_v54 = vrot.slane %v5083_v62, 3 }
 0x80f   :  { %v2619_v55 = vsel %vm993_vm1, %v2617_v24, %v2618_v54  ;;  %3002 = vmatpush1.bf16.msra.mxu0 %v5089_v0 }
 0x810   :  { %2835 = vmatmul.mubr.bf16.vlgmr.msra.gmra.mxu1 %v2619_v55  ;;  %3003 = vmatprep.subr.bf16.mxu0 %v5094_v2 }
 0x811   :  { %2844 = vmatprep.mubr.bf16.mxu1 %v2539_v21 }
 0x813   :  { %3004 = vmatpush1.bf16.msra.mxu0 %v5092_v33 }
 0x814   :  { %v5084_v31 = vld [vmem:[#allocation2 + $0x14] sm:$0xf8]   ;;  %v5085_v56 = vld [vmem:[#allocation2 + $0x1c] ss:$0 sps:$4 sm:$0x77]   ;;  %3005 = vmatprep.subr.bf16.mxu0 %v5097_v3 }
 0x815   :  { %v2622_v57 = vrot.slane %v5084_v31, 3  ;;  %v2623_v35 = vrot.slane %v5085_v56, 3 }
 0x817   :  { %v2624_v28 = vsel %vm993_vm1, %v2622_v57, %v2623_v35  ;;  %3006 = vmatpush1.bf16.msra.mxu0 %v5095_v4 }
 0x818   :  { %2845 = vmatmul.mubr.bf16.gmra.mxu1 %v2624_v28  ;;  %3007 = vmatprep.subr.bf16.mxu0 %v5100_v6  ;;  %v5110_v6 = vld [vmem:[%s6661_s3 + $0x570] ss:$8 sps:$4 sm:$0xff]  }
 0x819   :  { %3548 = vmatprep.mubr.bf16.mxu1 %v5346_v1 }
 0x81b   :  { %3008 = vmatpush1.bf16.msra.mxu0 %v5098_v8 }
 0x81c   :  { %3009 = vmatprep.subr.bf16.mxu0 %v5103_v37  ;;  %v5115_v37 = vld [vmem:[%s6661_s3 + $0x564] ss:$8 sps:$4 sm:$0xff]  }
 0x81f   :  { %3010 = vmatpush1.bf16.msra.mxu0 %v5101_v9 }
 0x820   :  { %3011 = vmatprep.subr.bf16.mxu0 %v5106_v10  ;;  %v5113_v10 = vld [vmem:[%s6661_s3 + $0x560] ss:$8 sps:$4 sm:$0xff]  }
 0x823   :  { %3012 = vmatpush1.bf16.msra.mxu0 %v5104_v46 }
 0x824   :  { %3013 = vmatprep.subr.bf16.mxu0 %v5109_v12 }
 0x827   :  { %3014 = vmatpush1.bf16.msra.mxu0 %v5107_v13  ;;  %v5118_v13 = vld [vmem:[%s6661_s3 + $0x554] ss:$8 sps:$4 sm:$0xff]  }
 0x828   :  { %3324 = vmatprep.subr.bf16.mxu0 %v5112_v17 }
 0x8d0   :  { %v2836_v59 = vpop.f32.mrf.mxu1 }
 0x8d1   :  { %v2837_v62 = vadd.f32 %v2836_v59, %v2635_v16  ;;  %v5116_v59 = vld [vmem:[%s6661_s3 + $0x550] ss:$8 sps:$4 sm:$0xff]  }
 0x8d2   :  { %v2838_v25 = vpop.f32.mrf.mxu1 }
 0x8d3   :  { %v2839_v50 = vadd.f32 %v2838_v25, %v2639_v22 }
 0x8d4   :  { %v2840_v26 = vpop.f32.mrf.mxu1 }
 0x8d5   :  { %v4337_v27 = vmul.f32 -1.442695, %v2839_v50  ;;  %v2841_v54 = vadd.f32 %v2840_v26, %v2635_v16  ;;  %v5121_v50 = vld [vmem:[%s6661_s3 + $0x544] ss:$8 sps:$4 sm:$0xff]   ;;  %v5119_v26 = vld [vmem:[%s6661_s3 + $0x540] ss:$8 sps:$4 sm:$0xff]  }
 0x8d6   :  { %v2842_v51 = vpop.f32.mrf.mxu1 }
 0x8d7   :  { %5298 = vpow2.f32 %v4337_v27  ;;  %v2843_v36 = vadd.f32 %v2842_v51, %v2639_v22  ;;  %v5124_v27 = vld [vmem:[%s6661_s3 + $0x534] ss:$8 sps:$4 sm:$0xff]   ;;  %v5122_v51 = vld [vmem:[%s6661_s3 + $0x530] ss:$8 sps:$4 sm:$0xff]  }
 0x8d8   :  { %v2846_v47 = vpop.f32.mrf.mxu1 }
 0x8d9   :  { %v4338_v42 = vmul.f32 -1.442695, %v2843_v36  ;;  %v2847_v57 = vadd.f32 %v2846_v47, %v2635_v16  ;;  %v5127_v36 = vld [vmem:[%s6661_s3 + $0x524] ss:$8 sps:$4 sm:$0xff]   ;;  %v5125_v47 = vld [vmem:[%s6661_s3 + $0x520] ss:$8 sps:$4 sm:$0xff]  }
 0x8da   :  { %v2848_v43 = vpop.f32.mrf.mxu1 }
 0x8db   :  { %5300 = vpow2.f32 %v4338_v42  ;;  %v2849_v58 = vadd.f32 %v2848_v43, %v2639_v22  ;;  %v5130_v42 = vld [vmem:[%s6661_s3 + $0x514] ss:$8 sps:$4 sm:$0xff]   ;;  %v5128_v43 = vld [vmem:[%s6661_s3 + $0x510] ss:$8 sps:$4 sm:$0xff]  }
 0x8dc   :  { %v2850_v30 = vpop.f32.mrf.mxu1 }
 0x8dd   :  { %v4339_v11 = vmul.f32 -1.442695, %v2849_v58  ;;  %v2851_v28 = vadd.f32 %v2850_v30, %v2635_v16  ;;  %v5133_v58 = vld [vmem:[%s6661_s3 + $0x504] ss:$8 sps:$4 sm:$0xff]   ;;  %v5131_v30 = vld [vmem:[%s6661_s3 + $0x500] ss:$8 sps:$4 sm:$0xff]  }
 0x8de   :  { %v2852_v45 = vpop.f32.mrf.mxu1  ;;  %v5137_v16 = vld [vmem:[%s6661_s3 + $0x5e0] ss:$8 sps:$4 sm:$0xff]  }
 0x8df   :  { %5302 = vpow2.f32 %v4339_v11  ;;  %v2853_v15 = vadd.f32 %v2852_v45, %v2639_v22  ;;  %v5136_v11 = vld [vmem:[%s6661_s3 + $0x5f4] ss:$8 sps:$4 sm:$0xff]   ;;  %v5134_v45 = vld [vmem:[%s6661_s3 + $0x5f0] ss:$8 sps:$4 sm:$0xff]  }
 0x8e1   :  { %v4340_v21 = vmul.f32 -1.442695, %v2853_v15  ;;  %v5139_v15 = vld [vmem:[%s6661_s3 + $0x5e4] ss:$8 sps:$4 sm:$0xff]  }
 0x8e3   :  { %5304 = vpow2.f32 %v4340_v21  ;;  %v5142_v21 = vld [vmem:[%s6661_s3 + $0x5d4] ss:$8 sps:$4 sm:$0xff]  }
 0x8e4   :  { %v5299_v52 = vpop.eup %5298  ;;  %5306 = vtanh.f32 %v2837_v62  ;;  %v5145_v62 = vld [vmem:[%s6661_s3 + $0x5c4] ss:$8 sps:$4 sm:$0xff]  }
 0x8e5   :  { %v2871_v24 = vadd.f32 1.0, %v5299_v52  ;;  %v5140_v52 = vld [vmem:[%s6661_s3 + $0x5d0] ss:$8 sps:$4 sm:$0xff]  }
 0x8e7   :  { %5308 = vrcp.f32 %v2871_v24  ;;  %v5143_v24 = vld [vmem:[%s6661_s3 + $0x5c0] ss:$8 sps:$4 sm:$0xff]  }
 0x8e8   :  { %v5301_v55 = vpop.eup %5300  ;;  %5310 = vtanh.f32 %v2841_v54  ;;  %v5148_v54 = vld [vmem:[%s6661_s3 + $0x5b4] ss:$8 sps:$4 sm:$0xff]  }
 0x8e9   :  { %v2872_v31 = vadd.f32 1.0, %v5301_v55  ;;  %v5146_v55 = vld [vmem:[%s6661_s3 + $0x5b0] ss:$8 sps:$4 sm:$0xff]  }
 0x8eb   :  { %5312 = vrcp.f32 %v2872_v31  ;;  %v5151_v31 = vld [vmem:[%s6661_s3 + $0x5a4] ss:$8 sps:$4 sm:$0xff]  }
 0x8ec   :  { %v5303_v56 = vpop.eup %5302  ;;  %5314 = vtanh.f32 %v2847_v57  ;;  %v5154_v57 = vld [vmem:[%s6661_s3 + $0x594] ss:$8 sps:$4 sm:$0xff]  }
 0x8ed   :  { %v2873_v35 = vadd.f32 1.0, %v5303_v56  ;;  %v5149_v56 = vld [vmem:[%s6661_s3 + $0x5a0] ss:$8 sps:$4 sm:$0xff]  }
 0x8ef   :  { %5316 = vrcp.f32 %v2873_v35  ;;  %v5152_v35 = vld [vmem:[%s6661_s3 + $0x590] ss:$8 sps:$4 sm:$0xff]  }
 0x8f0   :  { %v5305_v53 = vpop.eup %5304  ;;  %5318 = vtanh.f32 %v2851_v28  ;;  %v5155_v28 = vld [vmem:[%s6661_s3 + $0x580] ss:$8 sps:$4 sm:$0xff]  }
 0x8f1   :  { %v2874_v29 = vadd.f32 1.0, %v5305_v53  ;;  %v5307_v60 = vpop.eup %5306  ;;  %v5157_v53 = vld [vmem:[%s6661_s3 + $0x584] ss:$8 sps:$4 sm:$0xff]  }
 0x8f3   :  { %5320 = vrcp.f32 %v2874_v29  ;;  %v4357_v29 = vld [vmem:[%s6665_s6 + $0x8] sm:$0x3] }
 0x8f4   :  { %v5309_v0 = vpop.eup %5308 }
 0x8f5   :  { %v5311_v2 = vpop.eup %5310  ;;  %v2883_v3 = vmul.f32 %v5309_v0, %v5307_v60  ;;  %v2912_v60 = vrot.slane %v4357_v29, %v5643_v14  ;;  %v6506_v0 = vrot.slane %v4357_v29, %v5637_v63 }
 0x8f8   :  { %v5313_v33 = vpop.eup %5312 }
 0x8f9   :  { %v2884_v4 = vmul.f32 %v5313_v33, %v5311_v2  ;;  %v5315_v9 = vpop.eup %5314 }
 0x8fb   :  { %v2906_v8 = vpack.c.bf16 %v2884_v4, %v2883_v3 }
 0x8fc   :  { %v5317_v46 = vpop.eup %5316 }
 0x8fd   :  { %3032 = vmatmul.mubr.bf16.vlgmr.msra.gmra.mxu0 %v2906_v8  ;;  %v5319_v12 = vpop.eup %5318  ;;  %v2885_v19 = vmul.f32 %v5317_v46, %v5315_v9 }
 0x8fe   :  { %3041 = vmatprep.mubr.bf16.mxu0 %v5346_v1  ;;  %3325 = vmatpush1.bf16.msra.mxu0 %v5110_v6 }
 0x8ff   :  { %3326 = vmatprep.subr.bf16.mxu0 %v5115_v37 }
 0x900   :  { %v5321_v17 = vpop.eup %5320 }
 0x901   :  { %v2886_v22 = vmul.f32 %v5321_v17, %v5319_v12 }
 0x902   :  { %3327 = vmatpush1.bf16.msra.mxu0 %v5113_v10 }
 0x903   :  { %v2907_v25 = vpack.c.bf16 %v2886_v22, %v2885_v19  ;;  %3328 = vmatprep.subr.bf16.mxu0 %v5118_v13 }
 0x905   :  { %3042 = vmatmul.mubr.bf16.gmra.mxu0 %v2907_v25 }
 0x906   :  { %3329 = vmatpush1.bf16.msra.mxu0 %v5116_v59 }
 0x907   :  { %3330 = vmatprep.subr.bf16.mxu0 %v5121_v50 }
 0x90a   :  { %3331 = vmatpush1.bf16.msra.mxu0 %v5119_v26 }
 0x90b   :  { %3332 = vmatprep.subr.bf16.mxu0 %v5124_v27 }
 0x90e   :  { %3333 = vmatpush1.bf16.msra.mxu0 %v5122_v51 }
 0x90f   :  { %3334 = vmatprep.subr.bf16.mxu0 %v5127_v36 }
 0x912   :  { %3335 = vmatpush1.bf16.msra.mxu0 %v5125_v47 }
 0x913   :  { %3336 = vmatprep.subr.bf16.mxu0 %v5130_v42 }
 0x916   :  { %3337 = vmatpush1.bf16.msra.mxu0 %v5128_v43 }
 0x917   :  { %3338 = vmatprep.subr.bf16.mxu0 %v5133_v58 }
 0x91a   :  { %3339 = vmatpush1.bf16.msra.mxu0 %v5131_v30 }
 0x91b   :  { %3340 = vmatprep.subr.bf16.mxu0 %v5136_v11 }
 0x91e   :  { %3341 = vmatpush2.bf16.msra.mxu0 %v5134_v45  ;;  %v5167_v45 = vld [vmem:[%s6663_s5 + $0x2e4] ss:$8 sps:$4 sm:$0xff]  }
 0x91f   :  { %3342 = vmatprep.subr.bf16.mxu0 %v5139_v15  ;;  %v5165_v15 = vld [vmem:[%s6663_s5 + $0x2e0] ss:$8 sps:$4 sm:$0xff]  }
 0x922   :  { %3343 = vmatpush2.bf16.msra.mxu0 %v5137_v16  ;;  %v5170_v16 = vld [vmem:[%s6663_s5 + $0x2d4] ss:$8 sps:$4 sm:$0xff]  }
 0x923   :  { %3344 = vmatprep.subr.bf16.mxu0 %v5142_v21  ;;  %v5168_v21 = vld [vmem:[%s6663_s5 + $0x2d0] ss:$8 sps:$4 sm:$0xff]  }
 0x926   :  { %3345 = vmatpush2.bf16.msra.mxu0 %v5140_v52  ;;  %v5173_v52 = vld [vmem:[%s6663_s5 + $0x2c4] ss:$8 sps:$4 sm:$0xff]  }
 0x927   :  { %3346 = vmatprep.subr.bf16.mxu0 %v5145_v62  ;;  %v5171_v62 = vld [vmem:[%s6663_s5 + $0x2c0] ss:$8 sps:$4 sm:$0xff]  }
 0x92a   :  { %3347 = vmatpush2.bf16.msra.mxu0 %v5143_v24  ;;  %v5176_v24 = vld [vmem:[%s6663_s5 + $0x2b4] ss:$8 sps:$4 sm:$0xff]  }
 0x92b   :  { %3348 = vmatprep.subr.bf16.mxu0 %v5148_v54  ;;  %v5174_v54 = vld [vmem:[%s6663_s5 + $0x2b0] ss:$8 sps:$4 sm:$0xff]  }
 0x92e   :  { %3349 = vmatpush2.bf16.msra.mxu0 %v5146_v55  ;;  %v5179_v55 = vld [vmem:[%s6663_s5 + $0x2a4] ss:$8 sps:$4 sm:$0xff]  }
 0x92f   :  { %3350 = vmatprep.subr.bf16.mxu0 %v5151_v31  ;;  %v5177_v31 = vld [vmem:[%s6663_s5 + $0x2a0] ss:$8 sps:$4 sm:$0xff]  }
 0x932   :  { %3351 = vmatpush2.bf16.msra.mxu0 %v5149_v56  ;;  %v5180_v56 = vld [vmem:[%s6663_s5 + $0x290] ss:$8 sps:$4 sm:$0xff]  }
 0x933   :  { %3352 = vmatprep.subr.bf16.mxu0 %v5154_v57  ;;  %v5182_v57 = vld [vmem:[%s6663_s5 + $0x294] ss:$8 sps:$4 sm:$0xff]  }
 0x936   :  { %3353 = vmatpush2.bf16.msra.mxu0 %v5152_v35  ;;  %v5185_v35 = vld [vmem:[%s6663_s5 + $0x284] ss:$8 sps:$4 sm:$0xff]  }
 0x937   :  { %3354 = vmatprep.subr.bf16.mxu0 %v5157_v53  ;;  %v5186_v53 = vld [vmem:[%s6666_s7 + $0x38] sm:$0xff]  }
 0x93a   :  { %3355 = vmatpush2.bf16.msra.mxu0 %v5155_v28  ;;  %v5183_v28 = vld [vmem:[%s6663_s5 + $0x280] ss:$8 sps:$4 sm:$0xff]  }
 0x9bd   :  { %v3033_v2 = vpop.f32.mrf.mxu0 }
 0x9be   :  { %v3034_v3 = vadd.f32 %v3033_v2, %v2912_v60 }
 0x9bf   :  { %v3035_v33 = vpop.f32.mrf.mxu0 }
 0x9c0   :  { %v3036_v4 = vadd.f32 %v3035_v33, %v6506_v0  ;;  %v3052_v46 = vadd.f32 %v3034_v3, %v6323_v39 }
 0x9c1   :  { %v3037_v6 = vpop.f32.mrf.mxu0 }
 0x9c2   :  { %v6510_v8 = vadd.f32 %v3036_v4, %v6320_v32  ;;  %v3038_v37 = vadd.f32 %v3037_v6, %v2912_v60 }
 0x9c3   :  { %v3039_v9 = vpop.f32.mrf.mxu0 }
 0x9c4   :  { %v3053_v10 = vadd.f32 %v3038_v37, %v6326_v41  ;;  %v3040_v12 = vadd.f32 %v3039_v9, %v6506_v0 }
 0x9c5   :  { %v3043_v13 = vpop.f32.mrf.mxu0 }
 0x9c6   :  { %v6516_v17 = vadd.f32 %v3040_v12, %v6330_v44  ;;  %v3060_v19 = vpack.c.bf16 %v3053_v10, %v3052_v46  ;;  %v3044_v59 = vadd.f32 %v3043_v13, %v2912_v60 }
 0x9c7   :  { %v3045_v22 = vpop.f32.mrf.mxu0 }
 0x9c8   :  { %v3046_v25 = vadd.f32 %v3045_v22, %v6506_v0  ;;  %3356 = vmatprep.mubr.bf16.mxu0 %v3060_v19  ;;  %4616 = vst [vmem:[#allocation2 + $0x8] sm:$0xff] %v3060_v19   ;;  %v3054_v41 = vadd.f32 %v3044_v59, %v6339_v61  ;;  %v5164_v61 = vld [vmem:[%s6663_s5 + $0x2f4] ss:$8 sps:$4 sm:$0xff]  }
 0x9c9   :  { %v3047_v32 = vpop.f32.mrf.mxu0  ;;  %3516 = vmatprep.subr.bf16.mxu1 %v5164_v61 }
 0x9ca   :  { %v6520_v50 = vadd.f32 %v3046_v25, %v6336_v48  ;;  %v3048_v39 = vadd.f32 %v3047_v32, %v2912_v60  ;;  %v4414_v60 = vld [vmem:[%s6664_s4 + $0xa] sm:$0x3] }
 0x9cb   :  { %v6577_v29 = vpop.f32.mrf.mxu0  ;;  %v3161_v2 = vrot.slane %v4414_v60, %v5637_v63 }
 0x9cc   :  { %v3055_v26 = vadd.f32 %v3048_v39, %v6342_v20  ;;  %v5162_v20 = vld [vmem:[%s6663_s5 + $0x2f0] ss:$8 sps:$4 sm:$0xff]   ;;  %v3157_v39 = vrot.slane %v4414_v60, %v5643_v14  ;;  %v5192_v60 = vld [vmem:[%s6666_s7 + $0x8] sm:$0xff]  }
 0x9cd   :  { %3517 = vmatpush1.bf16.msra.mxu1 %v5162_v20 }
 0x9ce   :  { %v3061_v27 = vpack.c.bf16 %v3055_v26, %v3054_v41  ;;  %3518 = vmatprep.subr.bf16.mxu1 %v5167_v45 }
 0x9cf   :  { %v5158_v51 = vld [vmem:[#allocation2 + $0x4] sm:$0xfc]   ;;  %v5159_v44 = vld [vmem:[#allocation2 + $0xc] ss:$0 sps:$4 sm:$0x33]  }
 0x9d0   :  { %4617 = vst [vmem:[#allocation2 + $0x18] sm:$0xff] %v3061_v27   ;;  %v3139_v36 = vrot.slane %v5158_v51, 2  ;;  %v3140_v47 = vrot.slane %v5159_v44, 2 }
 0x9d1   :  { %3519 = vmatpush1.bf16.msra.mxu1 %v5165_v15 }
 0x9d2   :  { %v3141_v42 = vsel %vm1516_vm2, %v3139_v36, %v3140_v47  ;;  %3520 = vmatprep.subr.bf16.mxu1 %v5170_v16 }
 0x9d3   :  { %3357 = vmatmul.mubr.bf16.vlgmr.msra.gmra.mxu0 %v3141_v42 }
 0x9d4   :  { %3366 = vmatprep.mubr.bf16.mxu0 %v3061_v27 }
 0x9d5   :  { %3521 = vmatpush1.bf16.msra.mxu1 %v5168_v21 }
 0x9d6   :  { %3522 = vmatprep.subr.bf16.mxu1 %v5173_v52  ;;  %v5187_v52 = vld [vmem:[%s6666_s7 + $0x30] sm:$0xff]  }
 0x9d7   :  { %v5160_v43 = vld [vmem:[#allocation2 + $0x14] sm:$0xfc]   ;;  %v5161_v58 = vld [vmem:[#allocation2 + $0x1c] ss:$0 sps:$4 sm:$0x33]  }
 0x9d8   :  { %v3144_v30 = vrot.slane %v5160_v43, 2  ;;  %v3145_v48 = vrot.slane %v5161_v58, 2 }
 0x9d9   :  { %3523 = vmatpush1.bf16.msra.mxu1 %v5171_v62 }
 0x9da   :  { %v3146_v11 = vsel %vm1516_vm2, %v3144_v30, %v3145_v48  ;;  %3524 = vmatprep.subr.bf16.mxu1 %v5176_v24 }
 0x9db   :  { %3367 = vmatmul.mubr.bf16.gmra.mxu0 %v3146_v11 }
 0x9dd   :  { %3525 = vmatpush1.bf16.msra.mxu1 %v5174_v54 }
 0x9de   :  { %3526 = vmatprep.subr.bf16.mxu1 %v5179_v55  ;;  %v5188_v55 = vld [vmem:[%s6666_s7 + $0x28] sm:$0xff]  }
 0x9e1   :  { %3527 = vmatpush1.bf16.msra.mxu1 %v5177_v31 }
 0x9e2   :  { %3528 = vmatprep.subr.bf16.mxu1 %v5182_v57 }
 0x9e5   :  { %3529 = vmatpush1.bf16.msra.mxu1 %v5180_v56 }
 0x9e6   :  { %3530 = vmatprep.subr.bf16.mxu1 %v5185_v35 }
 0x9e9   :  { %3531 = vmatpush1.bf16.msra.mxu1 %v5183_v28  ;;  %v5189_v28 = vld [vmem:[%s6666_s7 + $0x20] sm:$0xff]  }
 0x9ea   :  { %4667 = vmatprep.subr.bf16.mxu1 %v5186_v53 }
 0xa93   :  { %v3358_v33 = vpop.f32.mrf.mxu0 }
 0xa94   :  { %v3359_v27 = vadd.f32 %v3358_v33, %v3157_v39  ;;  %v5194_v33 = vld [vmem:[%s6667_s9 + $0x38] sm:$0xff]  }
 0xa95   :  { %v3360_v3 = vpop.f32.mrf.mxu0  ;;  %4687 = vmatprep.subr.bf16.mxu0 %v5194_v33 }
 0xa96   :  { %v3361_v4 = vadd.f32 %v3360_v3, %v3161_v2  ;;  %v5195_v3 = vld [vmem:[%s6667_s9 + $0x30] sm:$0xff]   ;;  %4688 = vmatpush3.bf16.msra.mxu0 %v5194_v33 }
 0xa97   :  { %v3362_v6 = vpop.f32.mrf.mxu0  ;;  %4689 = vmatprep.subr.bf16.mxu0 %v5195_v3 }
 0xa98   :  { %v4449_v37 = vmul.f32 -1.442695, %v3361_v4  ;;  %v3363_v44 = vadd.f32 %v3362_v6, %v3157_v39  ;;  %v5196_v4 = vld [vmem:[%s6667_s9 + $0x28] sm:$0xff]   ;;  %v5197_v6 = vld [vmem:[%s6667_s9 + $0x20] sm:$0xff]  }
 0xa99   :  { %v3364_v9 = vpop.f32.mrf.mxu0 }
 0xa9a   :  { %5322 = vpow2.f32 %v4449_v37  ;;  %v3365_v46 = vadd.f32 %v3364_v9, %v3161_v2  ;;  %4690 = vmatpush3.bf16.msra.mxu0 %v5195_v3  ;;  %v5198_v37 = vld [vmem:[%s6667_s9 + $0x18] sm:$0xff]   ;;  %v4469_v9 = vld [vmem:[%s6665_s6 + $0xa] sm:$0x3] }
 0xa9b   :  { %v3368_v10 = vpop.f32.mrf.mxu0  ;;  %4691 = vmatprep.subr.bf16.mxu0 %v5196_v4 }
 0xa9c   :  { %v4450_v12 = vmul.f32 -1.442695, %v3365_v46  ;;  %v3369_v43 = vadd.f32 %v3368_v10, %v3157_v39  ;;  %v3434_v46 = vrot.slane %v4469_v9, %v5637_v63  ;;  %v2528_v63 = vadd.f32 %v6400_v18, %v6316_v23 }
 0xa9d   :  { %v3370_v13 = vpop.f32.mrf.mxu0 }
 0xa9e   :  { %5324 = vpow2.f32 %v4450_v12  ;;  %v3371_v19 = vadd.f32 %v3370_v13, %v3161_v2  ;;  %4692 = vmatpush3.bf16.msra.mxu0 %v5196_v4 }
 0xa9f   :  { %v3372_v22 = vpop.f32.mrf.mxu0  ;;  %4693 = vmatprep.subr.bf16.mxu0 %v5197_v6 }
 0xaa0   :  { %v4451_v59 = vmul.f32 -1.442695, %v3371_v19  ;;  %v3373_v30 = vadd.f32 %v3372_v22, %v3157_v39  ;;  %v1427_v19 = vadd.f32 %v6020_v34, %v5933_v40  ;;  %v3050_v34 = vadd.f32 %v6577_v29, %v6506_v0  ;;  %v5199_v0 = vld [vmem:[%s6667_s9 + $0x10] sm:$0xff]   ;;  %v5200_v29 = vld [vmem:[%s6667_s9 + $0x8] sm:$0xff]  }
 0xaa1   :  { %v3374_v25 = vpop.f32.mrf.mxu0 }
 0xaa2   :  { %5326 = vpow2.f32 %v4451_v59  ;;  %v3375_v32 = vadd.f32 %v3374_v25, %v3161_v2  ;;  %v5193_v2 = vld [vmem:[%s6666_s7] sm:$0xff]   ;;  %4694 = vmatpush3.bf16.msra.mxu0 %v5197_v6  ;;  %v904_v59 = vadd.f32 %v5823_v5, %v5929_v38  ;;  %v1950_v25 = vadd.f32 %v6210_v49, %v6126_v7 }
 0xaa3   :  { %4695 = vmatprep.subr.bf16.mxu0 %v5198_v37 }
 0xaa4   :  { %v4452_v41 = vmul.f32 -1.442695, %v3375_v32 }
 0xaa6   :  { %5328 = vpow2.f32 %v4452_v41  ;;  %4696 = vmatpush3.bf16.msra.mxu0 %v5198_v37 }
 0xaa7   :  { %v5323_v26 = vpop.eup %5322  ;;  %5330 = vtanh.f32 %v3359_v27  ;;  %4697 = vmatprep.subr.bf16.mxu0 %v5199_v0 }
 0xaa8   :  { %v3393_v51 = vadd.f32 1.0, %v5323_v26  ;;  %v1436_v26 = vadd.f32 %v1427_v19, %v904_v59 }
 0xaaa   :  { %5332 = vrcp.f32 %v3393_v51  ;;  %4698 = vmatpush3.bf16.msra.mxu0 %v5199_v0 }
 0xaab   :  { %v5325_v36 = vpop.eup %5324  ;;  %5334 = vtanh.f32 %v3363_v44  ;;  %v1959_v44 = vadd.f32 %v1950_v25, %v1436_v26  ;;  %4699 = vmatprep.subr.bf16.mxu0 %v5200_v29 }
 0xaac   :  { %v3394_v47 = vadd.f32 1.0, %v5325_v36 }
 0xaad   :  { %v2537_v49 = vadd.f32 %v2528_v63, %v1959_v44 }
 0xaae   :  { %5336 = vrcp.f32 %v3394_v47  ;;  %4700 = vmatpush3.bf16.msra.mxu0 %v5200_v29 }
 0xaaf   :  { %v5327_v42 = vpop.eup %5326  ;;  %5338 = vtanh.f32 %v3369_v43 }
 0xab0   :  { %v3395_v58 = vadd.f32 1.0, %v5327_v42  ;;  %v3059_v42 = vadd.f32 %v3050_v34, %v2537_v49 }
 0xab2   :  { %5340 = vrcp.f32 %v3395_v58 }
 0xab3   :  { %v5329_v48 = vpop.eup %5328  ;;  %5342 = vtanh.f32 %v3373_v30 }
 0xab4   :  { %v3396_v14 = vadd.f32 1.0, %v5329_v48  ;;  %v5331_v11 = vpop.eup %5330 }
 0xab6   :  { %5344 = vrcp.f32 %v3396_v14 }
 0xab7   :  { %v5333_v61 = vpop.eup %5332 }
 0xab8   :  { %v5335_v20 = vpop.eup %5334  ;;  %v3405_v15 = vmul.f32 %v5333_v61, %v5331_v11  ;;  %v4486_v11 = vld [vmem:[%s6668_s8] ss:$0 sm:$0xff] }
 0xabb   :  { %v5337_v45 = vpop.eup %5336 }
 0xabc   :  { %v3406_v16 = vmul.f32 %v5337_v45, %v5335_v20  ;;  %v5339_v62 = vpop.eup %5338 }
 0xabe   :  { %v3428_v21 = vpack.c.bf16 %v3406_v16, %v3405_v15 }
 0xabf   :  { %v5341_v24 = vpop.eup %5340 }
 0xac0   :  { %3549 = vmatmul.mubr.bf16.vlgmr.msra.gmra.mxu1 %v3428_v21  ;;  %v5343_v54 = vpop.eup %5342  ;;  %v3407_v56 = vmul.f32 %v5341_v24, %v5339_v62 }
 0xac1   :  { %3556 = vmatprep.mubr.bf16.mxu1 %v5346_v1  ;;  %4668 = vmatpush3.bf16.msra.mxu1 %v5186_v53  ;;  %v5190_v1 = vld [vmem:[%s6666_s7 + $0x18] sm:$0xff]   ;;  %v5191_v53 = vld [vmem:[%s6666_s7 + $0x10] sm:$0xff]  }
 0xac2   :  { %4669 = vmatprep.subr.bf16.mxu1 %v5187_v52 }
 0xac3   :  { %v5345_v31 = vpop.eup %5344 }
 0xac4   :  { %v3408_v57 = vmul.f32 %v5345_v31, %v5343_v54 }
 0xac5   :  { %4670 = vmatpush3.bf16.msra.mxu1 %v5187_v52 }
 0xac6   :  { %v3429_v35 = vpack.c.bf16 %v3408_v57, %v3407_v56  ;;  %4671 = vmatprep.subr.bf16.mxu1 %v5188_v55  ;;  %v4495_v57 = vld [vmem:[%s6669_s10] ss:$0 sm:$0xff] }
 0xac8   :  { %3557 = vmatmul.mubr.bf16.gmra.mxu1 %v3429_v35 }
 0xac9   :  { %4672 = vmatpush3.bf16.msra.mxu1 %v5188_v55 }
 0xaca   :  { %4673 = vmatprep.subr.bf16.mxu1 %v5189_v28 }
 0xacd   :  { %4674 = vmatpush3.bf16.msra.mxu1 %v5189_v28 }
 0xace   :  { %4675 = vmatprep.subr.bf16.mxu1 %v5190_v1 }
 0xad1   :  { %4676 = vmatpush3.bf16.msra.mxu1 %v5190_v1 }
 0xad2   :  { %4677 = vmatprep.subr.bf16.mxu1 %v5191_v53 }
 0xad5   :  { %4678 = vmatpush3.bf16.msra.mxu1 %v5191_v53 }
 0xad6   :  { %4679 = vmatprep.subr.bf16.mxu1 %v5192_v60 }
 0xad9   :  { %4680 = vmatpush3.bf16.msra.mxu1 %v5192_v60 }
 0xada   :  { %4681 = vmatprep.subr.bf16.mxu1 %v5193_v2 }
 0xadd   :  { %4682 = vmatpush3.bf16.msra.mxu1 %v5193_v2 }
 0xb80   :  { %v3550_v10 = vpop.f32.mrf.mxu1 }
 0xb82   :  { %v3551_v12 = vpop.f32.mrf.mxu1 }
 0xb83   :  { %v3552_v13 = vadd.f32 %v3551_v12, %v3434_v46 }
 0xb84   :  { %v3553_v22 = vpop.f32.mrf.mxu1 }
 0xb85   :  { %v3565_v39 = vadd.f32 %v3552_v13, %v6510_v8 }
 0xb86   :  { %v3554_v32 = vpop.f32.mrf.mxu1 }
 0xb87   :  { %v3555_v41 = vadd.f32 %v3554_v32, %v3434_v46  ;;  %v3569_v5 = vmax.f32 %v3565_v39, 0.0 }
 0xb88   :  { %v3558_v27 = vpop.f32.mrf.mxu1 }
 0xb89   :  { %v3566_v51 = vadd.f32 %v3555_v41, %v6516_v17 }
 0xb8a   :  { %v3559_v40 = vpop.f32.mrf.mxu1 }
 0xb8b   :  { %v3570_v38 = vmax.f32 %v3566_v51, 0.0  ;;  %v3560_v36 = vadd.f32 %v3559_v40, %v3434_v46 }
 0xb8c   :  { %v3561_v7 = vpop.f32.mrf.mxu1 }
 0xb8d   :  { %v3590_v47 = vpack.c.bf16 %v3570_v38, %v3569_v5  ;;  %v3567_v43 = vadd.f32 %v3560_v36, %v6520_v50  ;;  %v5201_v50 = vld [vmem:[%s6667_s9] sm:$0xff]  }
 0xb8e   :  { %v3562_v8 = vpop.f32.mrf.mxu1  ;;  %4701 = vmatprep.subr.bf16.mxu0 %v5201_v50 }
 0xb8f   :  { %v3563_v58 = vadd.f32 %v3562_v8, %v3434_v46  ;;  %4683 = vmatprep.mubr.bf16.mxu1 %v3590_v47  ;;  %v3571_v18 = vmax.f32 %v3567_v43, 0.0  ;;  %4702 = vmatpush3.bf16.msra.mxu0 %v5201_v50 }
 0xb91   :  { %v3568_v23 = vadd.f32 %v3563_v58, %v3059_v42 }
 0xb93   :  { %v3572_v17 = vmax.f32 %v3568_v23, 0.0 }
 0xb95   :  { %v3591_v30 = vpack.c.bf16 %v3572_v17, %v3571_v18 }
 0xb97   :  { %4684 = vmatmul.mubr.bf16.vlgmr.msra.gmra.mxu1 %v3591_v30 }
 0xc57   :  { %v4685_v48 = vpop.f32.mrf.mxu1 }
 0xc58   :  { %v3689_v15 = vadd.f32 %v4685_v48, %v4486_v11 }
 0xc59   :  { %v3680_v14 = vpop.f32.mrf.mxu1 }
 0xc5a   :  { %v3681_v20 = vadd.f32 %v4486_v11, %v3680_v14  ;;  %v3697_v54 = vmax.f32 %v3689_v15, 0.0 }
 0xc5b   :  { %v4686_v61 = vpop.f32.mrf.mxu1 }
 0xc5c   :  { %v3692_v45 = vadd.f32 %v4686_v61, %v4486_v11  ;;  %v3695_v62 = vmax.f32 %v3681_v20, 0.0 }
 0xc5d   :  { %v3683_v16 = vpop.f32.mrf.mxu1 }
 0xc5e   :  { %v3684_v21 = vadd.f32 %v4486_v11, %v3683_v16  ;;  %v3698_v52 = vmax.f32 %v3692_v45, 0.0 }
 0xc60   :  { %v3696_v24 = vmax.f32 %v3684_v21, 0.0  ;;  %v3717_v31 = vpack.c.bf16 %v3698_v52, %v3697_v54 }
 0xc62   :  { %v3716_v55 = vpack.c.bf16 %v3696_v24, %v3695_v62 }
 0xc64   :  { %4703 = vmatprep.mubr.bf16.mxu0 %v3716_v55 }
 0xc65   :  { %4704 = vmatmul.mubr.bf16.vlgmr.msra.gmra.mxu0 %v3717_v31 }
 0xd25   :  { %v4705_v56 = vpop.f32.mrf.mxu0 }
 0xd26   :  { %v3815_v1 = vadd.f32 %v4705_v56, %v4495_v57 }
 0xd27   :  { %v3806_v35 = vpop.f32.mrf.mxu0 }
 0xd28   :  { %v3807_v2 = vadd.f32 %v4495_v57, %v3806_v35 }
 0xd29   :  { %v4706_v28 = vpop.f32.mrf.mxu0 }
 0xd2a   :  { %v3818_v53 = vadd.f32 %v4706_v28, %v4495_v57 }
 0xd2b   :  { %v3809_v60 = vpop.f32.mrf.mxu0 }
 0xd2c   :  { %v4604_v33 = vpack.c.bf16 %v3818_v53, %v3815_v1  ;;  %v3810_v3 = vadd.f32 %v4495_v57, %v3809_v60 }
 0xd2e   :  { %4618 = vst [vmem:[%s6670_s11 + $0x8] sm:$0xff] %v4604_v33   ;;  %v4599_v4 = vpack.c.bf16 %v3810_v3, %v3807_v2 }
 0xd30   :  { %4600 = vst [vmem:[%s6670_s11] sm:$0xff] %v4599_v4  }

</bundles_post_ra>
